<compile_context>
chip_gen: v6e
topology: v6e:2x2x1
jax: 0.10.0
libtpu: 0.0.40
codegen_flags: <defaults>
</compile_context>

<pallas_src>
import functools

import jax
import jax.numpy as jnp
from jax.experimental import pallas as pl
from jax.experimental.pallas import tpu as pltpu


_ACT_DTYPE = jnp.bfloat16
_VMEM_LIMIT = 32 * 1024 * 1024   # explicit budget; fits v7x (64 MiB) and v5e/v6e


# --------------------------------------------------------------------------
# Small helpers
# --------------------------------------------------------------------------
def _round_up(x, m):
    return (x + m - 1) // m * m


def _choose_tile(dim, target, unit):
    """Pick a tile size (multiple of `unit`) and the padded dim it divides."""
    if dim <= target:
        t = _round_up(dim, unit)
        return t, t
    return target, _round_up(dim, target)


# --------------------------------------------------------------------------
# Pallas kernels
# --------------------------------------------------------------------------
def _make_conv_kernel(apply_relu: bool, has_residual: bool):
    """Tiled matmul with f32 accumulator + fused BN-bias / residual / ReLU epilogue."""

    def kernel(x_ref, w_ref, b_ref, *rest):
        if has_residual:
            r_ref, o_ref, acc_ref = rest
        else:
            o_ref, acc_ref = rest

        kq = pl.program_id(2)

        @pl.when(kq == 0)
        def _():
            acc_ref[...] = jnp.zeros_like(acc_ref)

        acc_ref[...] += jnp.dot(
            x_ref[...], w_ref[...], preferred_element_type=jnp.float32)

        @pl.when(kq == pl.num_programs(2) - 1)
        def _():
            y = acc_ref[...] + b_ref[...]              # BN bias (scale folded into w)
            if has_residual:
                y = y + r_ref[...].astype(jnp.float32)
            if apply_relu:
                y = jnp.maximum(y, 0.0)
            o_ref[...] = y.astype(o_ref.dtype)

    return kernel


def _maxpool_kernel(*refs):
    """k*k shifted-view refs -> elementwise max (Python-unrolled VPU tree)."""
    o_ref = refs[-1]
    o_ref[...] = functools.reduce(jnp.maximum, [r[...] for r in refs[:-1]])


# --------------------------------------------------------------------------
# Glue: shifted-window extraction / im2col (reshape + strided slice only)
# --------------------------------------------------------------------------
def _shifted_windows(x_padded, kh, kw, stride, Ho, Wo):
    """List of (N, Ho, Wo, C) strided views of the padded NHWC input."""
    N, _, _, C = x_padded.shape
    views = []
    for i in range(kh):
        for j in range(kw):
            views.append(
                jax.lax.slice(
                    x_padded,
                    (0, i, j, 0),
                    (N, i + stride * (Ho - 1) + 1, j + stride * (Wo - 1) + 1, C),
                    (1, stride, stride, 1),
                )
            )
    return views


def _im2col(x, k, stride, pad):
    N, H, W, C = x.shape
    xp = jnp.pad(x, ((0, 0), (pad, pad), (pad, pad), (0, 0)))
    Ho = (H + 2 * pad - k) // stride + 1
    Wo = (W + 2 * pad - k) // stride + 1
    views = _shifted_windows(xp, k, k, stride, Ho, Wo)
    patches = jnp.stack(views, axis=3)                   # (N, Ho, Wo, k*k, C)
    return patches.reshape(N * Ho * Wo, k * k * C), Ho, Wo


# --------------------------------------------------------------------------
# Layer wrappers (pallas_call with tiled grids)
# --------------------------------------------------------------------------
def conv_bn_act(x, w, scale, bias, *, k, stride, pad, relu, residual=None,
                tm_target=512, tn_target=256, tk_target=1024):
    """x: (N,H,W,C>=cin) bf16, channel-padded activation.
    w: (Cout, Cin, k, k) f32 (PyTorch layout). Returns (N,Ho,Wo,Cout_pad) bf16,
    where Cout_pad is a multiple of 128 and padded channels are exactly 0."""
    cout, cin = w.shape[0], w.shape[1]
    N = x.shape[0]

    # Use only the real input channels so K = k*k*cin stays small.
    cols, Ho, Wo = _im2col(x[..., :cin], k, stride, pad)
    M, K = cols.shape

    tm, M_pad = _choose_tile(M, tm_target, 16)       # 16: bf16 sublane packing
    tk, K_pad = _choose_tile(K, tk_target, 128)
    tn, C_pad = _choose_tile(cout, tn_target, 128)   # lane-dense output channels

    cols = jnp.pad(cols, ((0, M_pad - M), (0, K_pad - K))).astype(_ACT_DTYPE)

    # Fold BN scale into the weight columns; the kernel only adds bias.
    wmat = jnp.transpose(w, (2, 3, 1, 0)).reshape(K, cout) * scale[None, :]
    wmat = jnp.pad(wmat, ((0, K_pad - K), (0, C_pad - cout))).astype(_ACT_DTYPE)
    bvec = jnp.pad(bias, (0, C_pad - cout)).astype(jnp.float32).reshape(1, C_pad)

    in_specs = [
        pl.BlockSpec((tm, tk), lambda i, j, kq: (i, kq)),   # activation patches
        pl.BlockSpec((tk, tn), lambda i, j, kq: (kq, j)),   # scaled weights (M-invariant)
        pl.BlockSpec((1, tn), lambda i, j, kq: (0, j)),     # BN bias (M/K-invariant)
    ]
    args = [cols, wmat, bvec]

    if residual is not None:
        r = residual[..., :cout].reshape(-1, cout)
        r = jnp.pad(r, ((0, M_pad - r.shape[0]), (0, C_pad - cout))).astype(_ACT_DTYPE)
        in_specs.append(pl.BlockSpec((tm, tn), lambda i, j, kq: (i, j)))
        args.append(r)

    out = pl.pallas_call(
        _make_conv_kernel(relu, residual is not None),
        out_shape=jax.ShapeDtypeStruct((M_pad, C_pad), _ACT_DTYPE),
        grid_spec=pltpu.PrefetchScalarGridSpec(
            num_scalar_prefetch=0,
            grid=(M_pad // tm, C_pad // tn, K_pad // tk),
            in_specs=in_specs,
            out_specs=pl.BlockSpec((tm, tn), lambda i, j, kq: (i, j)),
            scratch_shapes=[pltpu.VMEM((tm, tn), jnp.float32)],
        ),
        compiler_params=pltpu.CompilerParams(
            dimension_semantics=("parallel", "parallel", "arbitrary"),
            vmem_limit_bytes=_VMEM_LIMIT,
        ),
    )(*args)

    return out[:M].reshape(N, Ho, Wo, C_pad)


def maxpool(x, *, k=3, stride=2, pad=1, tm_target=512):
    """x: (N,H,W,C) bf16 (C already a multiple of 128). MaxPool2d(k, stride, pad)."""
    N, H, W, C = x.shape
    neg = jnp.finfo(x.dtype).min
    xp = jnp.pad(x, ((0, 0), (pad, pad), (pad, pad), (0, 0)), constant_values=neg)
    Ho = (H + 2 * pad - k) // stride + 1
    Wo = (W + 2 * pad - k) // stride + 1
    views = _shifted_windows(xp, k, k, stride, Ho, Wo)

    M = N * Ho * Wo
    tm, M_pad = _choose_tile(M, tm_target, 16)
    C_pad = _round_up(C, 128)
    views = [jnp.pad(v.reshape(M, C), ((0, M_pad - M), (0, C_pad - C)))
             for v in views]

    spec = pl.BlockSpec((tm, C_pad), lambda i: (i, 0))
    out = pl.pallas_call(
        _maxpool_kernel,
        out_shape=jax.ShapeDtypeStruct((M_pad, C_pad), x.dtype),
        grid_spec=pltpu.PrefetchScalarGridSpec(
            num_scalar_prefetch=0,
            grid=(M_pad // tm,),
            in_specs=[spec] * len(views),
            out_specs=spec,
        ),
        compiler_params=pltpu.CompilerParams(
            dimension_semantics=("parallel",),
            vmem_limit_bytes=_VMEM_LIMIT,
        ),
    )(*views)
    return out[:M].reshape(N, Ho, Wo, C_pad)


# --------------------------------------------------------------------------
# Deterministic parameter init (shapes from the torch module's __init__)
# --------------------------------------------------------------------------
_BN_EPS = 1e-5


def init_conv_bn(key, in_ch, out_ch, k):
    k1, k2, k3 = jax.random.split(key, 3)
    w = 0.1 * jax.random.normal(k1, (out_ch, in_ch, k, k), jnp.float32)
    gamma = 1.0 + 0.1 * jax.random.normal(k2, (out_ch,), jnp.float32)
    beta = 0.1 * jax.random.normal(k3, (out_ch,), jnp.float32)
    running_mean = jnp.zeros((out_ch,), jnp.float32)
    running_var = jnp.ones((out_ch,), jnp.float32)
    scale = gamma / jnp.sqrt(running_var + _BN_EPS)
    bias = beta - running_mean * scale
    return {"w": w, "scale": scale, "bias": bias}


def init_residual(key, in_ch, out_ch, s):
    k1, k2, k3 = jax.random.split(key, 3)
    blk = {
        "s": s,
        "add_m": (s != 1 or in_ch != out_ch),
        "conv1": init_conv_bn(k1, in_ch, out_ch, 3),
        "conv2": init_conv_bn(k2, out_ch, out_ch, 3),
    }
    if blk["add_m"]:
        blk["conv3"] = init_conv_bn(k3, in_ch, out_ch, 1)
    return blk


def init_resnet(key, filters):
    keys = list(jax.random.split(key, 16))
    ki = iter(keys)
    return {
        "p1": init_conv_bn(next(ki), filters[0], filters[1], 7),
        "p2": [init_residual(next(ki), filters[1], filters[1], 1),
               init_residual(next(ki), filters[1], filters[1], 1)],
        "p3": [init_residual(next(ki), filters[1], filters[2], 2),
               init_residual(next(ki), filters[2], filters[2], 1)],
        "p4": [init_residual(next(ki), filters[2], filters[3], 2),
               init_residual(next(ki), filters[3], filters[3], 1)],
        "p5": [init_residual(next(ki), filters[3], filters[4], 2),
               init_residual(next(ki), filters[4], filters[4], 1)],
    }


# --------------------------------------------------------------------------
# Forward pass (mirrors torch ResNet.forward)
# --------------------------------------------------------------------------
def residual_forward(blk, x):
    c1, c2 = blk["conv1"], blk["conv2"]
    y = conv_bn_act(x, c1["w"], c1["scale"], c1["bias"],
                    k=3, stride=blk["s"], pad=1, relu=True)
    if blk["add_m"]:
        c3 = blk["conv3"]
        shortcut = conv_bn_act(x, c3["w"], c3["scale"], c3["bias"],
                               k=1, stride=blk["s"], pad=0, relu=False)
    else:
        shortcut = x
    # conv2 + BN + residual add + final ReLU fused into one tiled Pallas kernel.
    return conv_bn_act(y, c2["w"], c2["scale"], c2["bias"],
                       k=3, stride=1, pad=1, relu=True, residual=shortcut)


def _to_nchw(t, c_real):
    return jnp.transpose(t[..., :c_real], (0, 3, 1, 2)).astype(jnp.float32)


def resnet_forward(params, x_nchw):
    # NCHW -> NHWC internal layout, bf16 activations (MXU-native feed).
    x = jnp.transpose(x_nchw, (0, 2, 3, 1)).astype(_ACT_DTYPE)

    p1p = params["p1"]
    x = conv_bn_act(x, p1p["w"], p1p["scale"], p1p["bias"],
                    k=7, stride=2, pad=3, relu=True)

    x = maxpool(x, k=3, stride=2, pad=1)
    for blk in params["p2"]:
        x = residual_forward(blk, x)
    p2 = x
    for blk in params["p3"]:
        x = residual_forward(blk, x)
    p3 = x
    for blk in params["p4"]:
        x = residual_forward(blk, x)
    p4 = x
    for blk in params["p5"]:
        x = residual_forward(blk, x)
    p5 = x

    c2 = params["p2"][-1]["conv2"]["w"].shape[0]
    c3 = params["p3"][-1]["conv2"]["w"].shape[0]
    c4 = params["p4"][-1]["conv2"]["w"].shape[0]
    c5 = params["p5"][-1]["conv2"]["w"].shape[0]
    return _to_nchw(p2, c2), _to_nchw(p3, c3), _to_nchw(p4, c4), _to_nchw(p5, c5)


# --------------------------------------------------------------------------
if __name__ == "__main__":
    key = jax.random.PRNGKey(0)
    k_param, k_x = jax.random.split(key)

    filters = [4, 8, 16, 32, 64]            # [in_ch, f1, f2, f3, f4]
    params = init_resnet(k_param, filters)

    x = jax.random.normal(k_x, (2, 4, 32, 32), jnp.float32)   # NCHW, like torch

    fwd = jax.jit(lambda xx: resnet_forward(params, xx))
    p2, p3, p4, p5 = fwd(x)
    jax.block_until_ready((p2, p3, p4, p5))

    assert p2.shape == (2, filters[1], 8, 8), p2.shape
    assert p3.shape == (2, filters[2], 4, 4), p3.shape
    assert p4.shape == (2, filters[3], 2, 2), p4.shape
    assert p5.shape == (2, filters[4], 1, 1), p5.shape
    assert bool(jnp.all(jnp.isfinite(p5)))

    print("KERNEL_OK")
</pallas_src>

<mosaic_0001>
module attributes {stable_mosaic.version = 11 : i64} {
  func.func @kernel(%arg0: i32, %arg1: i32, %arg2: i32, %arg3: memref<512x256xbf16, #tpu.memory_space<vmem>>, %arg4: memref<256x128xbf16, #tpu.memory_space<vmem>>, %arg5: memref<1x128xf32, #tpu.memory_space<vmem>>, %arg6: memref<512x128xbf16, #tpu.memory_space<vmem>>, %arg7: memref<512x128xf32, #tpu.memory_space<vmem>>) attributes {dimension_semantics = [#tpu.dimension_semantics<parallel>, #tpu.dimension_semantics<parallel>, #tpu.dimension_semantics<arbitrary>], iteration_bounds = array<i64: 1, 1, 1>, scalar_prefetch = 0 : i64, scratch_operands = 1 : i64, tpu.core_type = #tpu.core_type<tc>, window_params = [{transform_indices = @transform_0, window_bounds = array<i64: 512, 256>}, {transform_indices = @transform_1, window_bounds = array<i64: 256, 128>}, {transform_indices = @transform_2, window_bounds = array<i64: 1, 128>}, {transform_indices = @transform_3, window_bounds = array<i64: 512, 128>}]} {
    %c0_i32 = arith.constant 0 : i32
    %0 = arith.cmpi eq, %arg2, %c0_i32 : i32
    %1 = arith.extui %0 : i1 to i32
    %c0_i32_0 = arith.constant 0 : i32
    %2 = arith.cmpi ne, %1, %c0_i32_0 : i32
    scf.if %2 {
      %cst_10 = arith.constant 0.000000e+00 : f32
      %12 = vector.broadcast %cst_10 : f32 to vector<512x128xf32>
      %c0_11 = arith.constant 0 : index
      %c0_12 = arith.constant 0 : index
      %13 = vector.load %arg7[%c0_11, %c0_12] : memref<512x128xf32, #tpu.memory_space<vmem>>, vector<512x128xf32>
      tpu.vector_store %arg7[%c0_11, %c0_12], %12 {strides = array<i32>} : memref<512x128xf32, #tpu.memory_space<vmem>>, vector<512x128xf32>,
    } else {
    }
    %c0 = arith.constant 0 : index
    %c0_1 = arith.constant 0 : index
    %3 = vector.load %arg7[%c0, %c0_1] : memref<512x128xf32, #tpu.memory_space<vmem>>, vector<512x128xf32>
    %c0_2 = arith.constant 0 : index
    %c0_3 = arith.constant 0 : index
    %4 = vector.load %arg3[%c0_2, %c0_3] : memref<512x256xbf16, #tpu.memory_space<vmem>>, vector<512x256xbf16>
    %c0_4 = arith.constant 0 : index
    %c0_5 = arith.constant 0 : index
    %5 = vector.load %arg4[%c0_4, %c0_5] : memref<256x128xbf16, #tpu.memory_space<vmem>>, vector<256x128xbf16>
    %cst = arith.constant dense<0.000000e+00> : vector<512x128xf32>
    %6 = tpu.matmul %4, %5, %cst {dimension_numbers = #tpu.dot_dimension_numbers<[1], [0], [0], [1], [0, 0, 1, 1], [], []>} : vector<512x256xbf16>, vector<256x128xbf16>, vector<512x128xf32> -> vector<512x128xf32>
    %7 = arith.addf %3, %6 : vector<512x128xf32>
    %c0_6 = arith.constant 0 : index
    %c0_7 = arith.constant 0 : index
    %8 = vector.load %arg7[%c0_6, %c0_7] : memref<512x128xf32, #tpu.memory_space<vmem>>, vector<512x128xf32>
    tpu.vector_store %arg7[%c0_6, %c0_7], %7 {strides = array<i32>} : memref<512x128xf32, #tpu.memory_space<vmem>>, vector<512x128xf32>,
    %c0_i32_8 = arith.constant 0 : i32
    %9 = arith.cmpi eq, %arg2, %c0_i32_8 : i32
    %10 = arith.extui %9 : i1 to i32
    %c0_i32_9 = arith.constant 0 : i32
    %11 = arith.cmpi ne, %10, %c0_i32_9 : i32
    scf.if %11 {
      %c0_10 = arith.constant 0 : index
      %c0_11 = arith.constant 0 : index
      %12 = vector.load %arg7[%c0_10, %c0_11] : memref<512x128xf32, #tpu.memory_space<vmem>>, vector<512x128xf32>
      %c0_12 = arith.constant 0 : index
      %c0_13 = arith.constant 0 : index
      %13 = vector.load %arg5[%c0_12, %c0_13] : memref<1x128xf32, #tpu.memory_space<vmem>>, vector<1x128xf32>
      %14 = vector.broadcast %13 : vector<1x128xf32> to vector<512x128xf32>
      %15 = arith.addf %12, %14 : vector<512x128xf32>
      %cst_14 = arith.constant 0.000000e+00 : f32
      %16 = vector.broadcast %cst_14 : f32 to vector<512x128xf32>
      %17 = arith.maximumf %15, %16 : vector<512x128xf32>
      %18 = arith.truncf %17 : vector<512x128xf32> to vector<512x128xbf16>
      %c0_15 = arith.constant 0 : index
      %c0_16 = arith.constant 0 : index
      %19 = vector.load %arg6[%c0_15, %c0_16] : memref<512x128xbf16, #tpu.memory_space<vmem>>, vector<512x128xbf16>
      tpu.vector_store %arg6[%c0_15, %c0_16], %18 {strides = array<i32>} : memref<512x128xbf16, #tpu.memory_space<vmem>>, vector<512x128xbf16>,
    } else {
    }
    return
  }
  func.func @transform_0(%arg0: i32, %arg1: i32, %arg2: i32) -> (i32, i32) {
    %c0_i32 = arith.constant 0 : i32
    return %arg0, %arg2 : i32, i32
  }
  func.func @transform_1(%arg0: i32, %arg1: i32, %arg2: i32) -> (i32, i32) {
    %c0_i32 = arith.constant 0 : i32
    return %arg2, %arg1 : i32, i32
  }
  func.func @transform_2(%arg0: i32, %arg1: i32, %arg2: i32) -> (i32, i32) {
    %c0_i32 = arith.constant 0 : i32
    %c0_i32_0 = arith.constant 0 : i32
    return %c0_i32, %arg1 : i32, i32
  }
  func.func @transform_3(%arg0: i32, %arg1: i32, %arg2: i32) -> (i32, i32) {
    %c0_i32 = arith.constant 0 : i32
    return %arg0, %arg1 : i32, i32
  }
}

module attributes {stable_mosaic.version = 11 : i64} {
  func.func @_maxpool_kernel(%arg0: i32, %arg1: memref<128x128xbf16, #tpu.memory_space<vmem>>, %arg2: memref<128x128xbf16, #tpu.memory_space<vmem>>, %arg3: memref<128x128xbf16, #tpu.memory_space<vmem>>, %arg4: memref<128x128xbf16, #tpu.memory_space<vmem>>, %arg5: memref<128x128xbf16, #tpu.memory_space<vmem>>, %arg6: memref<128x128xbf16, #tpu.memory_space<vmem>>, %arg7: memref<128x128xbf16, #tpu.memory_space<vmem>>, %arg8: memref<128x128xbf16, #tpu.memory_space<vmem>>, %arg9: memref<128x128xbf16, #tpu.memory_space<vmem>>, %arg10: memref<128x128xbf16, #tpu.memory_space<vmem>>) attributes {dimension_semantics = [#tpu.dimension_semantics<parallel>], iteration_bounds = array<i64: 1>, scalar_prefetch = 0 : i64, scratch_operands = 0 : i64, tpu.core_type = #tpu.core_type<tc>, window_params = [{transform_indices = @transform_0, window_bounds = array<i64: 128, 128>}, {transform_indices = @transform_1, window_bounds = array<i64: 128, 128>}, {transform_indices = @transform_2, window_bounds = array<i64: 128, 128>}, {transform_indices = @transform_3, window_bounds = array<i64: 128, 128>}, {transform_indices = @transform_4, window_bounds = array<i64: 128, 128>}, {transform_indices = @transform_5, window_bounds = array<i64: 128, 128>}, {transform_indices = @transform_6, window_bounds = array<i64: 128, 128>}, {transform_indices = @transform_7, window_bounds = array<i64: 128, 128>}, {transform_indices = @transform_8, window_bounds = array<i64: 128, 128>}, {transform_indices = @transform_9, window_bounds = array<i64: 128, 128>}]} {
    %c0 = arith.constant 0 : index
    %c0_0 = arith.constant 0 : index
    %0 = vector.load %arg1[%c0, %c0_0] : memref<128x128xbf16, #tpu.memory_space<vmem>>, vector<128x128xbf16>
    %c0_1 = arith.constant 0 : index
    %c0_2 = arith.constant 0 : index
    %1 = vector.load %arg2[%c0_1, %c0_2] : memref<128x128xbf16, #tpu.memory_space<vmem>>, vector<128x128xbf16>
    %c0_3 = arith.constant 0 : index
    %c0_4 = arith.constant 0 : index
    %2 = vector.load %arg3[%c0_3, %c0_4] : memref<128x128xbf16, #tpu.memory_space<vmem>>, vector<128x128xbf16>
    %c0_5 = arith.constant 0 : index
    %c0_6 = arith.constant 0 : index
    %3 = vector.load %arg4[%c0_5, %c0_6] : memref<128x128xbf16, #tpu.memory_space<vmem>>, vector<128x128xbf16>
    %c0_7 = arith.constant 0 : index
    %c0_8 = arith.constant 0 : index
    %4 = vector.load %arg5[%c0_7, %c0_8] : memref<128x128xbf16, #tpu.memory_space<vmem>>, vector<128x128xbf16>
    %c0_9 = arith.constant 0 : index
    %c0_10 = arith.constant 0 : index
    %5 = vector.load %arg6[%c0_9, %c0_10] : memref<128x128xbf16, #tpu.memory_space<vmem>>, vector<128x128xbf16>
    %c0_11 = arith.constant 0 : index
    %c0_12 = arith.constant 0 : index
    %6 = vector.load %arg7[%c0_11, %c0_12] : memref<128x128xbf16, #tpu.memory_space<vmem>>, vector<128x128xbf16>
    %c0_13 = arith.constant 0 : index
    %c0_14 = arith.constant 0 : index
    %7 = vector.load %arg8[%c0_13, %c0_14] : memref<128x128xbf16, #tpu.memory_space<vmem>>, vector<128x128xbf16>
    %c0_15 = arith.constant 0 : index
    %c0_16 = arith.constant 0 : index
    %8 = vector.load %arg9[%c0_15, %c0_16] : memref<128x128xbf16, #tpu.memory_space<vmem>>, vector<128x128xbf16>
    %9 = arith.maximumf %0, %1 : vector<128x128xbf16>
    %10 = arith.maximumf %9, %2 : vector<128x128xbf16>
    %11 = arith.maximumf %10, %3 : vector<128x128xbf16>
    %12 = arith.maximumf %11, %4 : vector<128x128xbf16>
    %13 = arith.maximumf %12, %5 : vector<128x128xbf16>
    %14 = arith.maximumf %13, %6 : vector<128x128xbf16>
    %15 = arith.maximumf %14, %7 : vector<128x128xbf16>
    %16 = arith.maximumf %15, %8 : vector<128x128xbf16>
    %c0_17 = arith.constant 0 : index
    %c0_18 = arith.constant 0 : index
    %17 = vector.load %arg10[%c0_17, %c0_18] : memref<128x128xbf16, #tpu.memory_space<vmem>>, vector<128x128xbf16>
    tpu.vector_store %arg10[%c0_17, %c0_18], %16 {strides = array<i32>} : memref<128x128xbf16, #tpu.memory_space<vmem>>, vector<128x128xbf16>,
    return
  }
  func.func @transform_0(%arg0: i32) -> (i32, i32) {
    %c0_i32 = arith.constant 0 : i32
    %c0_i32_0 = arith.constant 0 : i32
    return %arg0, %c0_i32 : i32, i32
  }
  func.func @transform_1(%arg0: i32) -> (i32, i32) {
    %c0_i32 = arith.constant 0 : i32
    %c0_i32_0 = arith.constant 0 : i32
    return %arg0, %c0_i32 : i32, i32
  }
  func.func @transform_2(%arg0: i32) -> (i32, i32) {
    %c0_i32 = arith.constant 0 : i32
    %c0_i32_0 = arith.constant 0 : i32
    return %arg0, %c0_i32 : i32, i32
  }
  func.func @transform_3(%arg0: i32) -> (i32, i32) {
    %c0_i32 = arith.constant 0 : i32
    %c0_i32_0 = arith.constant 0 : i32
    return %arg0, %c0_i32 : i32, i32
  }
  func.func @transform_4(%arg0: i32) -> (i32, i32) {
    %c0_i32 = arith.constant 0 : i32
    %c0_i32_0 = arith.constant 0 : i32
    return %arg0, %c0_i32 : i32, i32
  }
  func.func @transform_5(%arg0: i32) -> (i32, i32) {
    %c0_i32 = arith.constant 0 : i32
    %c0_i32_0 = arith.constant 0 : i32
    return %arg0, %c0_i32 : i32, i32
  }
  func.func @transform_6(%arg0: i32) -> (i32, i32) {
    %c0_i32 = arith.constant 0 : i32
    %c0_i32_0 = arith.constant 0 : i32
    return %arg0, %c0_i32 : i32, i32
  }
  func.func @transform_7(%arg0: i32) -> (i32, i32) {
    %c0_i32 = arith.constant 0 : i32
    %c0_i32_0 = arith.constant 0 : i32
    return %arg0, %c0_i32 : i32, i32
  }
  func.func @transform_8(%arg0: i32) -> (i32, i32) {
    %c0_i32 = arith.constant 0 : i32
    %c0_i32_0 = arith.constant 0 : i32
    return %arg0, %c0_i32 : i32, i32
  }
  func.func @transform_9(%arg0: i32) -> (i32, i32) {
    %c0_i32 = arith.constant 0 : i32
    %c0_i32_0 = arith.constant 0 : i32
    return %arg0, %c0_i32 : i32, i32
  }
}

module attributes {stable_mosaic.version = 11 : i64} {
  func.func @kernel(%arg0: i32, %arg1: i32, %arg2: i32, %arg3: memref<128x128xbf16, #tpu.memory_space<vmem>>, %arg4: memref<128x128xbf16, #tpu.memory_space<vmem>>, %arg5: memref<1x128xf32, #tpu.memory_space<vmem>>, %arg6: memref<128x128xbf16, #tpu.memory_space<vmem>>, %arg7: memref<128x128xf32, #tpu.memory_space<vmem>>) attributes {dimension_semantics = [#tpu.dimension_semantics<parallel>, #tpu.dimension_semantics<parallel>, #tpu.dimension_semantics<arbitrary>], iteration_bounds = array<i64: 1, 1, 1>, scalar_prefetch = 0 : i64, scratch_operands = 1 : i64, tpu.core_type = #tpu.core_type<tc>, window_params = [{transform_indices = @transform_0, window_bounds = array<i64: 128, 128>}, {transform_indices = @transform_1, window_bounds = array<i64: 128, 128>}, {transform_indices = @transform_2, window_bounds = array<i64: 1, 128>}, {transform_indices = @transform_3, window_bounds = array<i64: 128, 128>}]} {
    %c0_i32 = arith.constant 0 : i32
    %0 = arith.cmpi eq, %arg2, %c0_i32 : i32
    %1 = arith.extui %0 : i1 to i32
    %c0_i32_0 = arith.constant 0 : i32
    %2 = arith.cmpi ne, %1, %c0_i32_0 : i32
    scf.if %2 {
      %cst_10 = arith.constant 0.000000e+00 : f32
      %12 = vector.broadcast %cst_10 : f32 to vector<128x128xf32>
      %c0_11 = arith.constant 0 : index
      %c0_12 = arith.constant 0 : index
      %13 = vector.load %arg7[%c0_11, %c0_12] : memref<128x128xf32, #tpu.memory_space<vmem>>, vector<128x128xf32>
      tpu.vector_store %arg7[%c0_11, %c0_12], %12 {strides = array<i32>} : memref<128x128xf32, #tpu.memory_space<vmem>>, vector<128x128xf32>,
    } else {
    }
    %c0 = arith.constant 0 : index
    %c0_1 = arith.constant 0 : index
    %3 = vector.load %arg7[%c0, %c0_1] : memref<128x128xf32, #tpu.memory_space<vmem>>, vector<128x128xf32>
    %c0_2 = arith.constant 0 : index
    %c0_3 = arith.constant 0 : index
    %4 = vector.load %arg3[%c0_2, %c0_3] : memref<128x128xbf16, #tpu.memory_space<vmem>>, vector<128x128xbf16>
    %c0_4 = arith.constant 0 : index
    %c0_5 = arith.constant 0 : index
    %5 = vector.load %arg4[%c0_4, %c0_5] : memref<128x128xbf16, #tpu.memory_space<vmem>>, vector<128x128xbf16>
    %cst = arith.constant dense<0.000000e+00> : vector<128x128xf32>
    %6 = tpu.matmul %4, %5, %cst {dimension_numbers = #tpu.dot_dimension_numbers<[1], [0], [0], [1], [0, 0, 1, 1], [], []>} : vector<128x128xbf16>, vector<128x128xbf16>, vector<128x128xf32> -> vector<128x128xf32>
    %7 = arith.addf %3, %6 : vector<128x128xf32>
    %c0_6 = arith.constant 0 : index
    %c0_7 = arith.constant 0 : index
    %8 = vector.load %arg7[%c0_6, %c0_7] : memref<128x128xf32, #tpu.memory_space<vmem>>, vector<128x128xf32>
    tpu.vector_store %arg7[%c0_6, %c0_7], %7 {strides = array<i32>} : memref<128x128xf32, #tpu.memory_space<vmem>>, vector<128x128xf32>,
    %c0_i32_8 = arith.constant 0 : i32
    %9 = arith.cmpi eq, %arg2, %c0_i32_8 : i32
    %10 = arith.extui %9 : i1 to i32
    %c0_i32_9 = arith.constant 0 : i32
    %11 = arith.cmpi ne, %10, %c0_i32_9 : i32
    scf.if %11 {
      %c0_10 = arith.constant 0 : index
      %c0_11 = arith.constant 0 : index
      %12 = vector.load %arg7[%c0_10, %c0_11] : memref<128x128xf32, #tpu.memory_space<vmem>>, vector<128x128xf32>
      %c0_12 = arith.constant 0 : index
      %c0_13 = arith.constant 0 : index
      %13 = vector.load %arg5[%c0_12, %c0_13] : memref<1x128xf32, #tpu.memory_space<vmem>>, vector<1x128xf32>
      %14 = vector.broadcast %13 : vector<1x128xf32> to vector<128x128xf32>
      %15 = arith.addf %12, %14 : vector<128x128xf32>
      %cst_14 = arith.constant 0.000000e+00 : f32
      %16 = vector.broadcast %cst_14 : f32 to vector<128x128xf32>
      %17 = arith.maximumf %15, %16 : vector<128x128xf32>
      %18 = arith.truncf %17 : vector<128x128xf32> to vector<128x128xbf16>
      %c0_15 = arith.constant 0 : index
      %c0_16 = arith.constant 0 : index
      %19 = vector.load %arg6[%c0_15, %c0_16] : memref<128x128xbf16, #tpu.memory_space<vmem>>, vector<128x128xbf16>
      tpu.vector_store %arg6[%c0_15, %c0_16], %18 {strides = array<i32>} : memref<128x128xbf16, #tpu.memory_space<vmem>>, vector<128x128xbf16>,
    } else {
    }
    return
  }
  func.func @transform_0(%arg0: i32, %arg1: i32, %arg2: i32) -> (i32, i32) {
    %c0_i32 = arith.constant 0 : i32
    return %arg0, %arg2 : i32, i32
  }
  func.func @transform_1(%arg0: i32, %arg1: i32, %arg2: i32) -> (i32, i32) {
    %c0_i32 = arith.constant 0 : i32
    return %arg2, %arg1 : i32, i32
  }
  func.func @transform_2(%arg0: i32, %arg1: i32, %arg2: i32) -> (i32, i32) {
    %c0_i32 = arith.constant 0 : i32
    %c0_i32_0 = arith.constant 0 : i32
    return %c0_i32, %arg1 : i32, i32
  }
  func.func @transform_3(%arg0: i32, %arg1: i32, %arg2: i32) -> (i32, i32) {
    %c0_i32 = arith.constant 0 : i32
    return %arg0, %arg1 : i32, i32
  }
}

module attributes {stable_mosaic.version = 11 : i64} {
  func.func @kernel(%arg0: i32, %arg1: i32, %arg2: i32, %arg3: memref<128x128xbf16, #tpu.memory_space<vmem>>, %arg4: memref<128x128xbf16, #tpu.memory_space<vmem>>, %arg5: memref<1x128xf32, #tpu.memory_space<vmem>>, %arg6: memref<128x128xbf16, #tpu.memory_space<vmem>>, %arg7: memref<128x128xbf16, #tpu.memory_space<vmem>>, %arg8: memref<128x128xf32, #tpu.memory_space<vmem>>) attributes {dimension_semantics = [#tpu.dimension_semantics<parallel>, #tpu.dimension_semantics<parallel>, #tpu.dimension_semantics<arbitrary>], iteration_bounds = array<i64: 1, 1, 1>, scalar_prefetch = 0 : i64, scratch_operands = 1 : i64, tpu.core_type = #tpu.core_type<tc>, window_params = [{transform_indices = @transform_0, window_bounds = array<i64: 128, 128>}, {transform_indices = @transform_1, window_bounds = array<i64: 128, 128>}, {transform_indices = @transform_2, window_bounds = array<i64: 1, 128>}, {transform_indices = @transform_3, window_bounds = array<i64: 128, 128>}, {transform_indices = @transform_4, window_bounds = array<i64: 128, 128>}]} {
    %c0_i32 = arith.constant 0 : i32
    %0 = arith.cmpi eq, %arg2, %c0_i32 : i32
    %1 = arith.extui %0 : i1 to i32
    %c0_i32_0 = arith.constant 0 : i32
    %2 = arith.cmpi ne, %1, %c0_i32_0 : i32
    scf.if %2 {
      %cst_10 = arith.constant 0.000000e+00 : f32
      %12 = vector.broadcast %cst_10 : f32 to vector<128x128xf32>
      %c0_11 = arith.constant 0 : index
      %c0_12 = arith.constant 0 : index
      %13 = vector.load %arg8[%c0_11, %c0_12] : memref<128x128xf32, #tpu.memory_space<vmem>>, vector<128x128xf32>
      tpu.vector_store %arg8[%c0_11, %c0_12], %12 {strides = array<i32>} : memref<128x128xf32, #tpu.memory_space<vmem>>, vector<128x128xf32>,
    } else {
    }
    %c0 = arith.constant 0 : index
    %c0_1 = arith.constant 0 : index
    %3 = vector.load %arg8[%c0, %c0_1] : memref<128x128xf32, #tpu.memory_space<vmem>>, vector<128x128xf32>
    %c0_2 = arith.constant 0 : index
    %c0_3 = arith.constant 0 : index
    %4 = vector.load %arg3[%c0_2, %c0_3] : memref<128x128xbf16, #tpu.memory_space<vmem>>, vector<128x128xbf16>
    %c0_4 = arith.constant 0 : index
    %c0_5 = arith.constant 0 : index
    %5 = vector.load %arg4[%c0_4, %c0_5] : memref<128x128xbf16, #tpu.memory_space<vmem>>, vector<128x128xbf16>
    %cst = arith.constant dense<0.000000e+00> : vector<128x128xf32>
    %6 = tpu.matmul %4, %5, %cst {dimension_numbers = #tpu.dot_dimension_numbers<[1], [0], [0], [1], [0, 0, 1, 1], [], []>} : vector<128x128xbf16>, vector<128x128xbf16>, vector<128x128xf32> -> vector<128x128xf32>
    %7 = arith.addf %3, %6 : vector<128x128xf32>
    %c0_6 = arith.constant 0 : index
    %c0_7 = arith.constant 0 : index
    %8 = vector.load %arg8[%c0_6, %c0_7] : memref<128x128xf32, #tpu.memory_space<vmem>>, vector<128x128xf32>
    tpu.vector_store %arg8[%c0_6, %c0_7], %7 {strides = array<i32>} : memref<128x128xf32, #tpu.memory_space<vmem>>, vector<128x128xf32>,
    %c0_i32_8 = arith.constant 0 : i32
    %9 = arith.cmpi eq, %arg2, %c0_i32_8 : i32
    %10 = arith.extui %9 : i1 to i32
    %c0_i32_9 = arith.constant 0 : i32
    %11 = arith.cmpi ne, %10, %c0_i32_9 : i32
    scf.if %11 {
      %c0_10 = arith.constant 0 : index
      %c0_11 = arith.constant 0 : index
      %12 = vector.load %arg8[%c0_10, %c0_11] : memref<128x128xf32, #tpu.memory_space<vmem>>, vector<128x128xf32>
      %c0_12 = arith.constant 0 : index
      %c0_13 = arith.constant 0 : index
      %13 = vector.load %arg5[%c0_12, %c0_13] : memref<1x128xf32, #tpu.memory_space<vmem>>, vector<1x128xf32>
      %14 = vector.broadcast %13 : vector<1x128xf32> to vector<128x128xf32>
      %15 = arith.addf %12, %14 : vector<128x128xf32>
      %c0_14 = arith.constant 0 : index
      %c0_15 = arith.constant 0 : index
      %16 = vector.load %arg6[%c0_14, %c0_15] : memref<128x128xbf16, #tpu.memory_space<vmem>>, vector<128x128xbf16>
      %17 = arith.extf %16 : vector<128x128xbf16> to vector<128x128xf32>
      %18 = arith.addf %15, %17 : vector<128x128xf32>
      %cst_16 = arith.constant 0.000000e+00 : f32
      %19 = vector.broadcast %cst_16 : f32 to vector<128x128xf32>
      %20 = arith.maximumf %18, %19 : vector<128x128xf32>
      %21 = arith.truncf %20 : vector<128x128xf32> to vector<128x128xbf16>
      %c0_17 = arith.constant 0 : index
      %c0_18 = arith.constant 0 : index
      %22 = vector.load %arg7[%c0_17, %c0_18] : memref<128x128xbf16, #tpu.memory_space<vmem>>, vector<128x128xbf16>
      tpu.vector_store %arg7[%c0_17, %c0_18], %21 {strides = array<i32>} : memref<128x128xbf16, #tpu.memory_space<vmem>>, vector<128x128xbf16>,
    } else {
    }
    return
  }
  func.func @transform_0(%arg0: i32, %arg1: i32, %arg2: i32) -> (i32, i32) {
    %c0_i32 = arith.constant 0 : i32
    return %arg0, %arg2 : i32, i32
  }
  func.func @transform_1(%arg0: i32, %arg1: i32, %arg2: i32) -> (i32, i32) {
    %c0_i32 = arith.constant 0 : i32
    return %arg2, %arg1 : i32, i32
  }
  func.func @transform_2(%arg0: i32, %arg1: i32, %arg2: i32) -> (i32, i32) {
    %c0_i32 = arith.constant 0 : i32
    %c0_i32_0 = arith.constant 0 : i32
    return %c0_i32, %arg1 : i32, i32
  }
  func.func @transform_3(%arg0: i32, %arg1: i32, %arg2: i32) -> (i32, i32) {
    %c0_i32 = arith.constant 0 : i32
    return %arg0, %arg1 : i32, i32
  }
  func.func @transform_4(%arg0: i32, %arg1: i32, %arg2: i32) -> (i32, i32) {
    %c0_i32 = arith.constant 0 : i32
    return %arg0, %arg1 : i32, i32
  }
}

module attributes {stable_mosaic.version = 11 : i64} {
  func.func @kernel(%arg0: i32, %arg1: i32, %arg2: i32, %arg3: memref<32x128xbf16, #tpu.memory_space<vmem>>, %arg4: memref<128x128xbf16, #tpu.memory_space<vmem>>, %arg5: memref<1x128xf32, #tpu.memory_space<vmem>>, %arg6: memref<32x128xbf16, #tpu.memory_space<vmem>>, %arg7: memref<32x128xf32, #tpu.memory_space<vmem>>) attributes {dimension_semantics = [#tpu.dimension_semantics<parallel>, #tpu.dimension_semantics<parallel>, #tpu.dimension_semantics<arbitrary>], iteration_bounds = array<i64: 1, 1, 1>, scalar_prefetch = 0 : i64, scratch_operands = 1 : i64, tpu.core_type = #tpu.core_type<tc>, window_params = [{transform_indices = @transform_0, window_bounds = array<i64: 32, 128>}, {transform_indices = @transform_1, window_bounds = array<i64: 128, 128>}, {transform_indices = @transform_2, window_bounds = array<i64: 1, 128>}, {transform_indices = @transform_3, window_bounds = array<i64: 32, 128>}]} {
    %c0_i32 = arith.constant 0 : i32
    %0 = arith.cmpi eq, %arg2, %c0_i32 : i32
    %1 = arith.extui %0 : i1 to i32
    %c0_i32_0 = arith.constant 0 : i32
    %2 = arith.cmpi ne, %1, %c0_i32_0 : i32
    scf.if %2 {
      %cst_10 = arith.constant 0.000000e+00 : f32
      %12 = vector.broadcast %cst_10 : f32 to vector<32x128xf32>
      %c0_11 = arith.constant 0 : index
      %c0_12 = arith.constant 0 : index
      %13 = vector.load %arg7[%c0_11, %c0_12] : memref<32x128xf32, #tpu.memory_space<vmem>>, vector<32x128xf32>
      tpu.vector_store %arg7[%c0_11, %c0_12], %12 {strides = array<i32>} : memref<32x128xf32, #tpu.memory_space<vmem>>, vector<32x128xf32>,
    } else {
    }
    %c0 = arith.constant 0 : index
    %c0_1 = arith.constant 0 : index
    %3 = vector.load %arg7[%c0, %c0_1] : memref<32x128xf32, #tpu.memory_space<vmem>>, vector<32x128xf32>
    %c0_2 = arith.constant 0 : index
    %c0_3 = arith.constant 0 : index
    %4 = vector.load %arg3[%c0_2, %c0_3] : memref<32x128xbf16, #tpu.memory_space<vmem>>, vector<32x128xbf16>
    %c0_4 = arith.constant 0 : index
    %c0_5 = arith.constant 0 : index
    %5 = vector.load %arg4[%c0_4, %c0_5] : memref<128x128xbf16, #tpu.memory_space<vmem>>, vector<128x128xbf16>
    %cst = arith.constant dense<0.000000e+00> : vector<32x128xf32>
    %6 = tpu.matmul %4, %5, %cst {dimension_numbers = #tpu.dot_dimension_numbers<[1], [0], [0], [1], [0, 0, 1, 1], [], []>} : vector<32x128xbf16>, vector<128x128xbf16>, vector<32x128xf32> -> vector<32x128xf32>
    %7 = arith.addf %3, %6 : vector<32x128xf32>
    %c0_6 = arith.constant 0 : index
    %c0_7 = arith.constant 0 : index
    %8 = vector.load %arg7[%c0_6, %c0_7] : memref<32x128xf32, #tpu.memory_space<vmem>>, vector<32x128xf32>
    tpu.vector_store %arg7[%c0_6, %c0_7], %7 {strides = array<i32>} : memref<32x128xf32, #tpu.memory_space<vmem>>, vector<32x128xf32>,
    %c0_i32_8 = arith.constant 0 : i32
    %9 = arith.cmpi eq, %arg2, %c0_i32_8 : i32
    %10 = arith.extui %9 : i1 to i32
    %c0_i32_9 = arith.constant 0 : i32
    %11 = arith.cmpi ne, %10, %c0_i32_9 : i32
    scf.if %11 {
      %c0_10 = arith.constant 0 : index
      %c0_11 = arith.constant 0 : index
      %12 = vector.load %arg7[%c0_10, %c0_11] : memref<32x128xf32, #tpu.memory_space<vmem>>, vector<32x128xf32>
      %c0_12 = arith.constant 0 : index
      %c0_13 = arith.constant 0 : index
      %13 = vector.load %arg5[%c0_12, %c0_13] : memref<1x128xf32, #tpu.memory_space<vmem>>, vector<1x128xf32>
      %14 = vector.broadcast %13 : vector<1x128xf32> to vector<32x128xf32>
      %15 = arith.addf %12, %14 : vector<32x128xf32>
      %cst_14 = arith.constant 0.000000e+00 : f32
      %16 = vector.broadcast %cst_14 : f32 to vector<32x128xf32>
      %17 = arith.maximumf %15, %16 : vector<32x128xf32>
      %18 = arith.truncf %17 : vector<32x128xf32> to vector<32x128xbf16>
      %c0_15 = arith.constant 0 : index
      %c0_16 = arith.constant 0 : index
      %19 = vector.load %arg6[%c0_15, %c0_16] : memref<32x128xbf16, #tpu.memory_space<vmem>>, vector<32x128xbf16>
      tpu.vector_store %arg6[%c0_15, %c0_16], %18 {strides = array<i32>} : memref<32x128xbf16, #tpu.memory_space<vmem>>, vector<32x128xbf16>,
    } else {
    }
    return
  }
  func.func @transform_0(%arg0: i32, %arg1: i32, %arg2: i32) -> (i32, i32) {
    %c0_i32 = arith.constant 0 : i32
    return %arg0, %arg2 : i32, i32
  }
  func.func @transform_1(%arg0: i32, %arg1: i32, %arg2: i32) -> (i32, i32) {
    %c0_i32 = arith.constant 0 : i32
    return %arg2, %arg1 : i32, i32
  }
  func.func @transform_2(%arg0: i32, %arg1: i32, %arg2: i32) -> (i32, i32) {
    %c0_i32 = arith.constant 0 : i32
    %c0_i32_0 = arith.constant 0 : i32
    return %c0_i32, %arg1 : i32, i32
  }
  func.func @transform_3(%arg0: i32, %arg1: i32, %arg2: i32) -> (i32, i32) {
    %c0_i32 = arith.constant 0 : i32
    return %arg0, %arg1 : i32, i32
  }
}

module attributes {stable_mosaic.version = 11 : i64} {
  func.func @kernel(%arg0: i32, %arg1: i32, %arg2: i32, %arg3: memref<32x256xbf16, #tpu.memory_space<vmem>>, %arg4: memref<256x128xbf16, #tpu.memory_space<vmem>>, %arg5: memref<1x128xf32, #tpu.memory_space<vmem>>, %arg6: memref<32x128xbf16, #tpu.memory_space<vmem>>, %arg7: memref<32x128xbf16, #tpu.memory_space<vmem>>, %arg8: memref<32x128xf32, #tpu.memory_space<vmem>>) attributes {dimension_semantics = [#tpu.dimension_semantics<parallel>, #tpu.dimension_semantics<parallel>, #tpu.dimension_semantics<arbitrary>], iteration_bounds = array<i64: 1, 1, 1>, scalar_prefetch = 0 : i64, scratch_operands = 1 : i64, tpu.core_type = #tpu.core_type<tc>, window_params = [{transform_indices = @transform_0, window_bounds = array<i64: 32, 256>}, {transform_indices = @transform_1, window_bounds = array<i64: 256, 128>}, {transform_indices = @transform_2, window_bounds = array<i64: 1, 128>}, {transform_indices = @transform_3, window_bounds = array<i64: 32, 128>}, {transform_indices = @transform_4, window_bounds = array<i64: 32, 128>}]} {
    %c0_i32 = arith.constant 0 : i32
    %0 = arith.cmpi eq, %arg2, %c0_i32 : i32
    %1 = arith.extui %0 : i1 to i32
    %c0_i32_0 = arith.constant 0 : i32
    %2 = arith.cmpi ne, %1, %c0_i32_0 : i32
    scf.if %2 {
      %cst_10 = arith.constant 0.000000e+00 : f32
      %12 = vector.broadcast %cst_10 : f32 to vector<32x128xf32>
      %c0_11 = arith.constant 0 : index
      %c0_12 = arith.constant 0 : index
      %13 = vector.load %arg8[%c0_11, %c0_12] : memref<32x128xf32, #tpu.memory_space<vmem>>, vector<32x128xf32>
      tpu.vector_store %arg8[%c0_11, %c0_12], %12 {strides = array<i32>} : memref<32x128xf32, #tpu.memory_space<vmem>>, vector<32x128xf32>,
    } else {
    }
    %c0 = arith.constant 0 : index
    %c0_1 = arith.constant 0 : index
    %3 = vector.load %arg8[%c0, %c0_1] : memref<32x128xf32, #tpu.memory_space<vmem>>, vector<32x128xf32>
    %c0_2 = arith.constant 0 : index
    %c0_3 = arith.constant 0 : index
    %4 = vector.load %arg3[%c0_2, %c0_3] : memref<32x256xbf16, #tpu.memory_space<vmem>>, vector<32x256xbf16>
    %c0_4 = arith.constant 0 : index
    %c0_5 = arith.constant 0 : index
    %5 = vector.load %arg4[%c0_4, %c0_5] : memref<256x128xbf16, #tpu.memory_space<vmem>>, vector<256x128xbf16>
    %cst = arith.constant dense<0.000000e+00> : vector<32x128xf32>
    %6 = tpu.matmul %4, %5, %cst {dimension_numbers = #tpu.dot_dimension_numbers<[1], [0], [0], [1], [0, 0, 1, 1], [], []>} : vector<32x256xbf16>, vector<256x128xbf16>, vector<32x128xf32> -> vector<32x128xf32>
    %7 = arith.addf %3, %6 : vector<32x128xf32>
    %c0_6 = arith.constant 0 : index
    %c0_7 = arith.constant 0 : index
    %8 = vector.load %arg8[%c0_6, %c0_7] : memref<32x128xf32, #tpu.memory_space<vmem>>, vector<32x128xf32>
    tpu.vector_store %arg8[%c0_6, %c0_7], %7 {strides = array<i32>} : memref<32x128xf32, #tpu.memory_space<vmem>>, vector<32x128xf32>,
    %c0_i32_8 = arith.constant 0 : i32
    %9 = arith.cmpi eq, %arg2, %c0_i32_8 : i32
    %10 = arith.extui %9 : i1 to i32
    %c0_i32_9 = arith.constant 0 : i32
    %11 = arith.cmpi ne, %10, %c0_i32_9 : i32
    scf.if %11 {
      %c0_10 = arith.constant 0 : index
      %c0_11 = arith.constant 0 : index
      %12 = vector.load %arg8[%c0_10, %c0_11] : memref<32x128xf32, #tpu.memory_space<vmem>>, vector<32x128xf32>
      %c0_12 = arith.constant 0 : index
      %c0_13 = arith.constant 0 : index
      %13 = vector.load %arg5[%c0_12, %c0_13] : memref<1x128xf32, #tpu.memory_space<vmem>>, vector<1x128xf32>
      %14 = vector.broadcast %13 : vector<1x128xf32> to vector<32x128xf32>
      %15 = arith.addf %12, %14 : vector<32x128xf32>
      %c0_14 = arith.constant 0 : index
      %c0_15 = arith.constant 0 : index
      %16 = vector.load %arg6[%c0_14, %c0_15] : memref<32x128xbf16, #tpu.memory_space<vmem>>, vector<32x128xbf16>
      %17 = arith.extf %16 : vector<32x128xbf16> to vector<32x128xf32>
      %18 = arith.addf %15, %17 : vector<32x128xf32>
      %cst_16 = arith.constant 0.000000e+00 : f32
      %19 = vector.broadcast %cst_16 : f32 to vector<32x128xf32>
      %20 = arith.maximumf %18, %19 : vector<32x128xf32>
      %21 = arith.truncf %20 : vector<32x128xf32> to vector<32x128xbf16>
      %c0_17 = arith.constant 0 : index
      %c0_18 = arith.constant 0 : index
      %22 = vector.load %arg7[%c0_17, %c0_18] : memref<32x128xbf16, #tpu.memory_space<vmem>>, vector<32x128xbf16>
      tpu.vector_store %arg7[%c0_17, %c0_18], %21 {strides = array<i32>} : memref<32x128xbf16, #tpu.memory_space<vmem>>, vector<32x128xbf16>,
    } else {
    }
    return
  }
  func.func @transform_0(%arg0: i32, %arg1: i32, %arg2: i32) -> (i32, i32) {
    %c0_i32 = arith.constant 0 : i32
    return %arg0, %arg2 : i32, i32
  }
  func.func @transform_1(%arg0: i32, %arg1: i32, %arg2: i32) -> (i32, i32) {
    %c0_i32 = arith.constant 0 : i32
    return %arg2, %arg1 : i32, i32
  }
  func.func @transform_2(%arg0: i32, %arg1: i32, %arg2: i32) -> (i32, i32) {
    %c0_i32 = arith.constant 0 : i32
    %c0_i32_0 = arith.constant 0 : i32
    return %c0_i32, %arg1 : i32, i32
  }
  func.func @transform_3(%arg0: i32, %arg1: i32, %arg2: i32) -> (i32, i32) {
    %c0_i32 = arith.constant 0 : i32
    return %arg0, %arg1 : i32, i32
  }
  func.func @transform_4(%arg0: i32, %arg1: i32, %arg2: i32) -> (i32, i32) {
    %c0_i32 = arith.constant 0 : i32
    return %arg0, %arg1 : i32, i32
  }
}

module attributes {stable_mosaic.version = 11 : i64} {
  func.func @kernel(%arg0: i32, %arg1: i32, %arg2: i32, %arg3: memref<32x128xbf16, #tpu.memory_space<vmem>>, %arg4: memref<128x128xbf16, #tpu.memory_space<vmem>>, %arg5: memref<1x128xf32, #tpu.memory_space<vmem>>, %arg6: memref<32x128xbf16, #tpu.memory_space<vmem>>, %arg7: memref<32x128xf32, #tpu.memory_space<vmem>>) attributes {dimension_semantics = [#tpu.dimension_semantics<parallel>, #tpu.dimension_semantics<parallel>, #tpu.dimension_semantics<arbitrary>], iteration_bounds = array<i64: 1, 1, 1>, scalar_prefetch = 0 : i64, scratch_operands = 1 : i64, tpu.core_type = #tpu.core_type<tc>, window_params = [{transform_indices = @transform_0, window_bounds = array<i64: 32, 128>}, {transform_indices = @transform_1, window_bounds = array<i64: 128, 128>}, {transform_indices = @transform_2, window_bounds = array<i64: 1, 128>}, {transform_indices = @transform_3, window_bounds = array<i64: 32, 128>}]} {
    %c0_i32 = arith.constant 0 : i32
    %0 = arith.cmpi eq, %arg2, %c0_i32 : i32
    %1 = arith.extui %0 : i1 to i32
    %c0_i32_0 = arith.constant 0 : i32
    %2 = arith.cmpi ne, %1, %c0_i32_0 : i32
    scf.if %2 {
      %cst_10 = arith.constant 0.000000e+00 : f32
      %12 = vector.broadcast %cst_10 : f32 to vector<32x128xf32>
      %c0_11 = arith.constant 0 : index
      %c0_12 = arith.constant 0 : index
      %13 = vector.load %arg7[%c0_11, %c0_12] : memref<32x128xf32, #tpu.memory_space<vmem>>, vector<32x128xf32>
      tpu.vector_store %arg7[%c0_11, %c0_12], %12 {strides = array<i32>} : memref<32x128xf32, #tpu.memory_space<vmem>>, vector<32x128xf32>,
    } else {
    }
    %c0 = arith.constant 0 : index
    %c0_1 = arith.constant 0 : index
    %3 = vector.load %arg7[%c0, %c0_1] : memref<32x128xf32, #tpu.memory_space<vmem>>, vector<32x128xf32>
    %c0_2 = arith.constant 0 : index
    %c0_3 = arith.constant 0 : index
    %4 = vector.load %arg3[%c0_2, %c0_3] : memref<32x128xbf16, #tpu.memory_space<vmem>>, vector<32x128xbf16>
    %c0_4 = arith.constant 0 : index
    %c0_5 = arith.constant 0 : index
    %5 = vector.load %arg4[%c0_4, %c0_5] : memref<128x128xbf16, #tpu.memory_space<vmem>>, vector<128x128xbf16>
    %cst = arith.constant dense<0.000000e+00> : vector<32x128xf32>
    %6 = tpu.matmul %4, %5, %cst {dimension_numbers = #tpu.dot_dimension_numbers<[1], [0], [0], [1], [0, 0, 1, 1], [], []>} : vector<32x128xbf16>, vector<128x128xbf16>, vector<32x128xf32> -> vector<32x128xf32>
    %7 = arith.addf %3, %6 : vector<32x128xf32>
    %c0_6 = arith.constant 0 : index
    %c0_7 = arith.constant 0 : index
    %8 = vector.load %arg7[%c0_6, %c0_7] : memref<32x128xf32, #tpu.memory_space<vmem>>, vector<32x128xf32>
    tpu.vector_store %arg7[%c0_6, %c0_7], %7 {strides = array<i32>} : memref<32x128xf32, #tpu.memory_space<vmem>>, vector<32x128xf32>,
    %c0_i32_8 = arith.constant 0 : i32
    %9 = arith.cmpi eq, %arg2, %c0_i32_8 : i32
    %10 = arith.extui %9 : i1 to i32
    %c0_i32_9 = arith.constant 0 : i32
    %11 = arith.cmpi ne, %10, %c0_i32_9 : i32
    scf.if %11 {
      %c0_10 = arith.constant 0 : index
      %c0_11 = arith.constant 0 : index
      %12 = vector.load %arg7[%c0_10, %c0_11] : memref<32x128xf32, #tpu.memory_space<vmem>>, vector<32x128xf32>
      %c0_12 = arith.constant 0 : index
      %c0_13 = arith.constant 0 : index
      %13 = vector.load %arg5[%c0_12, %c0_13] : memref<1x128xf32, #tpu.memory_space<vmem>>, vector<1x128xf32>
      %14 = vector.broadcast %13 : vector<1x128xf32> to vector<32x128xf32>
      %15 = arith.addf %12, %14 : vector<32x128xf32>
      %16 = arith.truncf %15 : vector<32x128xf32> to vector<32x128xbf16>
      %c0_14 = arith.constant 0 : index
      %c0_15 = arith.constant 0 : index
      %17 = vector.load %arg6[%c0_14, %c0_15] : memref<32x128xbf16, #tpu.memory_space<vmem>>, vector<32x128xbf16>
      tpu.vector_store %arg6[%c0_14, %c0_15], %16 {strides = array<i32>} : memref<32x128xbf16, #tpu.memory_space<vmem>>, vector<32x128xbf16>,
    } else {
    }
    return
  }
  func.func @transform_0(%arg0: i32, %arg1: i32, %arg2: i32) -> (i32, i32) {
    %c0_i32 = arith.constant 0 : i32
    return %arg0, %arg2 : i32, i32
  }
  func.func @transform_1(%arg0: i32, %arg1: i32, %arg2: i32) -> (i32, i32) {
    %c0_i32 = arith.constant 0 : i32
    return %arg2, %arg1 : i32, i32
  }
  func.func @transform_2(%arg0: i32, %arg1: i32, %arg2: i32) -> (i32, i32) {
    %c0_i32 = arith.constant 0 : i32
    %c0_i32_0 = arith.constant 0 : i32
    return %c0_i32, %arg1 : i32, i32
  }
  func.func @transform_3(%arg0: i32, %arg1: i32, %arg2: i32) -> (i32, i32) {
    %c0_i32 = arith.constant 0 : i32
    return %arg0, %arg1 : i32, i32
  }
}

module attributes {stable_mosaic.version = 11 : i64} {
  func.func @kernel(%arg0: i32, %arg1: i32, %arg2: i32, %arg3: memref<32x256xbf16, #tpu.memory_space<vmem>>, %arg4: memref<256x128xbf16, #tpu.memory_space<vmem>>, %arg5: memref<1x128xf32, #tpu.memory_space<vmem>>, %arg6: memref<32x128xbf16, #tpu.memory_space<vmem>>, %arg7: memref<32x128xf32, #tpu.memory_space<vmem>>) attributes {dimension_semantics = [#tpu.dimension_semantics<parallel>, #tpu.dimension_semantics<parallel>, #tpu.dimension_semantics<arbitrary>], iteration_bounds = array<i64: 1, 1, 1>, scalar_prefetch = 0 : i64, scratch_operands = 1 : i64, tpu.core_type = #tpu.core_type<tc>, window_params = [{transform_indices = @transform_0, window_bounds = array<i64: 32, 256>}, {transform_indices = @transform_1, window_bounds = array<i64: 256, 128>}, {transform_indices = @transform_2, window_bounds = array<i64: 1, 128>}, {transform_indices = @transform_3, window_bounds = array<i64: 32, 128>}]} {
    %c0_i32 = arith.constant 0 : i32
    %0 = arith.cmpi eq, %arg2, %c0_i32 : i32
    %1 = arith.extui %0 : i1 to i32
    %c0_i32_0 = arith.constant 0 : i32
    %2 = arith.cmpi ne, %1, %c0_i32_0 : i32
    scf.if %2 {
      %cst_10 = arith.constant 0.000000e+00 : f32
      %12 = vector.broadcast %cst_10 : f32 to vector<32x128xf32>
      %c0_11 = arith.constant 0 : index
      %c0_12 = arith.constant 0 : index
      %13 = vector.load %arg7[%c0_11, %c0_12] : memref<32x128xf32, #tpu.memory_space<vmem>>, vector<32x128xf32>
      tpu.vector_store %arg7[%c0_11, %c0_12], %12 {strides = array<i32>} : memref<32x128xf32, #tpu.memory_space<vmem>>, vector<32x128xf32>,
    } else {
    }
    %c0 = arith.constant 0 : index
    %c0_1 = arith.constant 0 : index
    %3 = vector.load %arg7[%c0, %c0_1] : memref<32x128xf32, #tpu.memory_space<vmem>>, vector<32x128xf32>
    %c0_2 = arith.constant 0 : index
    %c0_3 = arith.constant 0 : index
    %4 = vector.load %arg3[%c0_2, %c0_3] : memref<32x256xbf16, #tpu.memory_space<vmem>>, vector<32x256xbf16>
    %c0_4 = arith.constant 0 : index
    %c0_5 = arith.constant 0 : index
    %5 = vector.load %arg4[%c0_4, %c0_5] : memref<256x128xbf16, #tpu.memory_space<vmem>>, vector<256x128xbf16>
    %cst = arith.constant dense<0.000000e+00> : vector<32x128xf32>
    %6 = tpu.matmul %4, %5, %cst {dimension_numbers = #tpu.dot_dimension_numbers<[1], [0], [0], [1], [0, 0, 1, 1], [], []>} : vector<32x256xbf16>, vector<256x128xbf16>, vector<32x128xf32> -> vector<32x128xf32>
    %7 = arith.addf %3, %6 : vector<32x128xf32>
    %c0_6 = arith.constant 0 : index
    %c0_7 = arith.constant 0 : index
    %8 = vector.load %arg7[%c0_6, %c0_7] : memref<32x128xf32, #tpu.memory_space<vmem>>, vector<32x128xf32>
    tpu.vector_store %arg7[%c0_6, %c0_7], %7 {strides = array<i32>} : memref<32x128xf32, #tpu.memory_space<vmem>>, vector<32x128xf32>,
    %c0_i32_8 = arith.constant 0 : i32
    %9 = arith.cmpi eq, %arg2, %c0_i32_8 : i32
    %10 = arith.extui %9 : i1 to i32
    %c0_i32_9 = arith.constant 0 : i32
    %11 = arith.cmpi ne, %10, %c0_i32_9 : i32
    scf.if %11 {
      %c0_10 = arith.constant 0 : index
      %c0_11 = arith.constant 0 : index
      %12 = vector.load %arg7[%c0_10, %c0_11] : memref<32x128xf32, #tpu.memory_space<vmem>>, vector<32x128xf32>
      %c0_12 = arith.constant 0 : index
      %c0_13 = arith.constant 0 : index
      %13 = vector.load %arg5[%c0_12, %c0_13] : memref<1x128xf32, #tpu.memory_space<vmem>>, vector<1x128xf32>
      %14 = vector.broadcast %13 : vector<1x128xf32> to vector<32x128xf32>
      %15 = arith.addf %12, %14 : vector<32x128xf32>
      %cst_14 = arith.constant 0.000000e+00 : f32
      %16 = vector.broadcast %cst_14 : f32 to vector<32x128xf32>
      %17 = arith.maximumf %15, %16 : vector<32x128xf32>
      %18 = arith.truncf %17 : vector<32x128xf32> to vector<32x128xbf16>
      %c0_15 = arith.constant 0 : index
      %c0_16 = arith.constant 0 : index
      %19 = vector.load %arg6[%c0_15, %c0_16] : memref<32x128xbf16, #tpu.memory_space<vmem>>, vector<32x128xbf16>
      tpu.vector_store %arg6[%c0_15, %c0_16], %18 {strides = array<i32>} : memref<32x128xbf16, #tpu.memory_space<vmem>>, vector<32x128xbf16>,
    } else {
    }
    return
  }
  func.func @transform_0(%arg0: i32, %arg1: i32, %arg2: i32) -> (i32, i32) {
    %c0_i32 = arith.constant 0 : i32
    return %arg0, %arg2 : i32, i32
  }
  func.func @transform_1(%arg0: i32, %arg1: i32, %arg2: i32) -> (i32, i32) {
    %c0_i32 = arith.constant 0 : i32
    return %arg2, %arg1 : i32, i32
  }
  func.func @transform_2(%arg0: i32, %arg1: i32, %arg2: i32) -> (i32, i32) {
    %c0_i32 = arith.constant 0 : i32
    %c0_i32_0 = arith.constant 0 : i32
    return %c0_i32, %arg1 : i32, i32
  }
  func.func @transform_3(%arg0: i32, %arg1: i32, %arg2: i32) -> (i32, i32) {
    %c0_i32 = arith.constant 0 : i32
    return %arg0, %arg1 : i32, i32
  }
}

module attributes {stable_mosaic.version = 11 : i64} {
  func.func @kernel(%arg0: i32, %arg1: i32, %arg2: i32, %arg3: memref<16x256xbf16, #tpu.memory_space<vmem>>, %arg4: memref<256x128xbf16, #tpu.memory_space<vmem>>, %arg5: memref<1x128xf32, #tpu.memory_space<vmem>>, %arg6: memref<16x128xbf16, #tpu.memory_space<vmem>>, %arg7: memref<16x128xf32, #tpu.memory_space<vmem>>) attributes {dimension_semantics = [#tpu.dimension_semantics<parallel>, #tpu.dimension_semantics<parallel>, #tpu.dimension_semantics<arbitrary>], iteration_bounds = array<i64: 1, 1, 1>, scalar_prefetch = 0 : i64, scratch_operands = 1 : i64, tpu.core_type = #tpu.core_type<tc>, window_params = [{transform_indices = @transform_0, window_bounds = array<i64: 16, 256>}, {transform_indices = @transform_1, window_bounds = array<i64: 256, 128>}, {transform_indices = @transform_2, window_bounds = array<i64: 1, 128>}, {transform_indices = @transform_3, window_bounds = array<i64: 16, 128>}]} {
    %c0_i32 = arith.constant 0 : i32
    %0 = arith.cmpi eq, %arg2, %c0_i32 : i32
    %1 = arith.extui %0 : i1 to i32
    %c0_i32_0 = arith.constant 0 : i32
    %2 = arith.cmpi ne, %1, %c0_i32_0 : i32
    scf.if %2 {
      %cst_10 = arith.constant 0.000000e+00 : f32
      %12 = vector.broadcast %cst_10 : f32 to vector<16x128xf32>
      %c0_11 = arith.constant 0 : index
      %c0_12 = arith.constant 0 : index
      %13 = vector.load %arg7[%c0_11, %c0_12] : memref<16x128xf32, #tpu.memory_space<vmem>>, vector<16x128xf32>
      tpu.vector_store %arg7[%c0_11, %c0_12], %12 {strides = array<i32>} : memref<16x128xf32, #tpu.memory_space<vmem>>, vector<16x128xf32>,
    } else {
    }
    %c0 = arith.constant 0 : index
    %c0_1 = arith.constant 0 : index
    %3 = vector.load %arg7[%c0, %c0_1] : memref<16x128xf32, #tpu.memory_space<vmem>>, vector<16x128xf32>
    %c0_2 = arith.constant 0 : index
    %c0_3 = arith.constant 0 : index
    %4 = vector.load %arg3[%c0_2, %c0_3] : memref<16x256xbf16, #tpu.memory_space<vmem>>, vector<16x256xbf16>
    %c0_4 = arith.constant 0 : index
    %c0_5 = arith.constant 0 : index
    %5 = vector.load %arg4[%c0_4, %c0_5] : memref<256x128xbf16, #tpu.memory_space<vmem>>, vector<256x128xbf16>
    %cst = arith.constant dense<0.000000e+00> : vector<16x128xf32>
    %6 = tpu.matmul %4, %5, %cst {dimension_numbers = #tpu.dot_dimension_numbers<[1], [0], [0], [1], [0, 0, 1, 1], [], []>} : vector<16x256xbf16>, vector<256x128xbf16>, vector<16x128xf32> -> vector<16x128xf32>
    %7 = arith.addf %3, %6 : vector<16x128xf32>
    %c0_6 = arith.constant 0 : index
    %c0_7 = arith.constant 0 : index
    %8 = vector.load %arg7[%c0_6, %c0_7] : memref<16x128xf32, #tpu.memory_space<vmem>>, vector<16x128xf32>
    tpu.vector_store %arg7[%c0_6, %c0_7], %7 {strides = array<i32>} : memref<16x128xf32, #tpu.memory_space<vmem>>, vector<16x128xf32>,
    %c0_i32_8 = arith.constant 0 : i32
    %9 = arith.cmpi eq, %arg2, %c0_i32_8 : i32
    %10 = arith.extui %9 : i1 to i32
    %c0_i32_9 = arith.constant 0 : i32
    %11 = arith.cmpi ne, %10, %c0_i32_9 : i32
    scf.if %11 {
      %c0_10 = arith.constant 0 : index
      %c0_11 = arith.constant 0 : index
      %12 = vector.load %arg7[%c0_10, %c0_11] : memref<16x128xf32, #tpu.memory_space<vmem>>, vector<16x128xf32>
      %c0_12 = arith.constant 0 : index
      %c0_13 = arith.constant 0 : index
      %13 = vector.load %arg5[%c0_12, %c0_13] : memref<1x128xf32, #tpu.memory_space<vmem>>, vector<1x128xf32>
      %14 = vector.broadcast %13 : vector<1x128xf32> to vector<16x128xf32>
      %15 = arith.addf %12, %14 : vector<16x128xf32>
      %cst_14 = arith.constant 0.000000e+00 : f32
      %16 = vector.broadcast %cst_14 : f32 to vector<16x128xf32>
      %17 = arith.maximumf %15, %16 : vector<16x128xf32>
      %18 = arith.truncf %17 : vector<16x128xf32> to vector<16x128xbf16>
      %c0_15 = arith.constant 0 : index
      %c0_16 = arith.constant 0 : index
      %19 = vector.load %arg6[%c0_15, %c0_16] : memref<16x128xbf16, #tpu.memory_space<vmem>>, vector<16x128xbf16>
      tpu.vector_store %arg6[%c0_15, %c0_16], %18 {strides = array<i32>} : memref<16x128xbf16, #tpu.memory_space<vmem>>, vector<16x128xbf16>,
    } else {
    }
    return
  }
  func.func @transform_0(%arg0: i32, %arg1: i32, %arg2: i32) -> (i32, i32) {
    %c0_i32 = arith.constant 0 : i32
    return %arg0, %arg2 : i32, i32
  }
  func.func @transform_1(%arg0: i32, %arg1: i32, %arg2: i32) -> (i32, i32) {
    %c0_i32 = arith.constant 0 : i32
    return %arg2, %arg1 : i32, i32
  }
  func.func @transform_2(%arg0: i32, %arg1: i32, %arg2: i32) -> (i32, i32) {
    %c0_i32 = arith.constant 0 : i32
    %c0_i32_0 = arith.constant 0 : i32
    return %c0_i32, %arg1 : i32, i32
  }
  func.func @transform_3(%arg0: i32, %arg1: i32, %arg2: i32) -> (i32, i32) {
    %c0_i32 = arith.constant 0 : i32
    return %arg0, %arg1 : i32, i32
  }
}

module attributes {stable_mosaic.version = 11 : i64} {
  func.func @kernel(%arg0: i32, %arg1: i32, %arg2: i32, %arg3: memref<16x128xbf16, #tpu.memory_space<vmem>>, %arg4: memref<128x128xbf16, #tpu.memory_space<vmem>>, %arg5: memref<1x128xf32, #tpu.memory_space<vmem>>, %arg6: memref<16x128xbf16, #tpu.memory_space<vmem>>, %arg7: memref<16x128xf32, #tpu.memory_space<vmem>>) attributes {dimension_semantics = [#tpu.dimension_semantics<parallel>, #tpu.dimension_semantics<parallel>, #tpu.dimension_semantics<arbitrary>], iteration_bounds = array<i64: 1, 1, 1>, scalar_prefetch = 0 : i64, scratch_operands = 1 : i64, tpu.core_type = #tpu.core_type<tc>, window_params = [{transform_indices = @transform_0, window_bounds = array<i64: 16, 128>}, {transform_indices = @transform_1, window_bounds = array<i64: 128, 128>}, {transform_indices = @transform_2, window_bounds = array<i64: 1, 128>}, {transform_indices = @transform_3, window_bounds = array<i64: 16, 128>}]} {
    %c0_i32 = arith.constant 0 : i32
    %0 = arith.cmpi eq, %arg2, %c0_i32 : i32
    %1 = arith.extui %0 : i1 to i32
    %c0_i32_0 = arith.constant 0 : i32
    %2 = arith.cmpi ne, %1, %c0_i32_0 : i32
    scf.if %2 {
      %cst_10 = arith.constant 0.000000e+00 : f32
      %12 = vector.broadcast %cst_10 : f32 to vector<16x128xf32>
      %c0_11 = arith.constant 0 : index
      %c0_12 = arith.constant 0 : index
      %13 = vector.load %arg7[%c0_11, %c0_12] : memref<16x128xf32, #tpu.memory_space<vmem>>, vector<16x128xf32>
      tpu.vector_store %arg7[%c0_11, %c0_12], %12 {strides = array<i32>} : memref<16x128xf32, #tpu.memory_space<vmem>>, vector<16x128xf32>,
    } else {
    }
    %c0 = arith.constant 0 : index
    %c0_1 = arith.constant 0 : index
    %3 = vector.load %arg7[%c0, %c0_1] : memref<16x128xf32, #tpu.memory_space<vmem>>, vector<16x128xf32>
    %c0_2 = arith.constant 0 : index
    %c0_3 = arith.constant 0 : index
    %4 = vector.load %arg3[%c0_2, %c0_3] : memref<16x128xbf16, #tpu.memory_space<vmem>>, vector<16x128xbf16>
    %c0_4 = arith.constant 0 : index
    %c0_5 = arith.constant 0 : index
    %5 = vector.load %arg4[%c0_4, %c0_5] : memref<128x128xbf16, #tpu.memory_space<vmem>>, vector<128x128xbf16>
    %cst = arith.constant dense<0.000000e+00> : vector<16x128xf32>
    %6 = tpu.matmul %4, %5, %cst {dimension_numbers = #tpu.dot_dimension_numbers<[1], [0], [0], [1], [0, 0, 1, 1], [], []>} : vector<16x128xbf16>, vector<128x128xbf16>, vector<16x128xf32> -> vector<16x128xf32>
    %7 = arith.addf %3, %6 : vector<16x128xf32>
    %c0_6 = arith.constant 0 : index
    %c0_7 = arith.constant 0 : index
    %8 = vector.load %arg7[%c0_6, %c0_7] : memref<16x128xf32, #tpu.memory_space<vmem>>, vector<16x128xf32>
    tpu.vector_store %arg7[%c0_6, %c0_7], %7 {strides = array<i32>} : memref<16x128xf32, #tpu.memory_space<vmem>>, vector<16x128xf32>,
    %c0_i32_8 = arith.constant 0 : i32
    %9 = arith.cmpi eq, %arg2, %c0_i32_8 : i32
    %10 = arith.extui %9 : i1 to i32
    %c0_i32_9 = arith.constant 0 : i32
    %11 = arith.cmpi ne, %10, %c0_i32_9 : i32
    scf.if %11 {
      %c0_10 = arith.constant 0 : index
      %c0_11 = arith.constant 0 : index
      %12 = vector.load %arg7[%c0_10, %c0_11] : memref<16x128xf32, #tpu.memory_space<vmem>>, vector<16x128xf32>
      %c0_12 = arith.constant 0 : index
      %c0_13 = arith.constant 0 : index
      %13 = vector.load %arg5[%c0_12, %c0_13] : memref<1x128xf32, #tpu.memory_space<vmem>>, vector<1x128xf32>
      %14 = vector.broadcast %13 : vector<1x128xf32> to vector<16x128xf32>
      %15 = arith.addf %12, %14 : vector<16x128xf32>
      %16 = arith.truncf %15 : vector<16x128xf32> to vector<16x128xbf16>
      %c0_14 = arith.constant 0 : index
      %c0_15 = arith.constant 0 : index
      %17 = vector.load %arg6[%c0_14, %c0_15] : memref<16x128xbf16, #tpu.memory_space<vmem>>, vector<16x128xbf16>
      tpu.vector_store %arg6[%c0_14, %c0_15], %16 {strides = array<i32>} : memref<16x128xbf16, #tpu.memory_space<vmem>>, vector<16x128xbf16>,
    } else {
    }
    return
  }
  func.func @transform_0(%arg0: i32, %arg1: i32, %arg2: i32) -> (i32, i32) {
    %c0_i32 = arith.constant 0 : i32
    return %arg0, %arg2 : i32, i32
  }
  func.func @transform_1(%arg0: i32, %arg1: i32, %arg2: i32) -> (i32, i32) {
    %c0_i32 = arith.constant 0 : i32
    return %arg2, %arg1 : i32, i32
  }
  func.func @transform_2(%arg0: i32, %arg1: i32, %arg2: i32) -> (i32, i32) {
    %c0_i32 = arith.constant 0 : i32
    %c0_i32_0 = arith.constant 0 : i32
    return %c0_i32, %arg1 : i32, i32
  }
  func.func @transform_3(%arg0: i32, %arg1: i32, %arg2: i32) -> (i32, i32) {
    %c0_i32 = arith.constant 0 : i32
    return %arg0, %arg1 : i32, i32
  }
}

module attributes {stable_mosaic.version = 11 : i64} {
  func.func @kernel(%arg0: i32, %arg1: i32, %arg2: i32, %arg3: memref<16x384xbf16, #tpu.memory_space<vmem>>, %arg4: memref<384x128xbf16, #tpu.memory_space<vmem>>, %arg5: memref<1x128xf32, #tpu.memory_space<vmem>>, %arg6: memref<16x128xbf16, #tpu.memory_space<vmem>>, %arg7: memref<16x128xbf16, #tpu.memory_space<vmem>>, %arg8: memref<16x128xf32, #tpu.memory_space<vmem>>) attributes {dimension_semantics = [#tpu.dimension_semantics<parallel>, #tpu.dimension_semantics<parallel>, #tpu.dimension_semantics<arbitrary>], iteration_bounds = array<i64: 1, 1, 1>, scalar_prefetch = 0 : i64, scratch_operands = 1 : i64, tpu.core_type = #tpu.core_type<tc>, window_params = [{transform_indices = @transform_0, window_bounds = array<i64: 16, 384>}, {transform_indices = @transform_1, window_bounds = array<i64: 384, 128>}, {transform_indices = @transform_2, window_bounds = array<i64: 1, 128>}, {transform_indices = @transform_3, window_bounds = array<i64: 16, 128>}, {transform_indices = @transform_4, window_bounds = array<i64: 16, 128>}]} {
    %c0_i32 = arith.constant 0 : i32
    %0 = arith.cmpi eq, %arg2, %c0_i32 : i32
    %1 = arith.extui %0 : i1 to i32
    %c0_i32_0 = arith.constant 0 : i32
    %2 = arith.cmpi ne, %1, %c0_i32_0 : i32
    scf.if %2 {
      %cst_10 = arith.constant 0.000000e+00 : f32
      %12 = vector.broadcast %cst_10 : f32 to vector<16x128xf32>
      %c0_11 = arith.constant 0 : index
      %c0_12 = arith.constant 0 : index
      %13 = vector.load %arg8[%c0_11, %c0_12] : memref<16x128xf32, #tpu.memory_space<vmem>>, vector<16x128xf32>
      tpu.vector_store %arg8[%c0_11, %c0_12], %12 {strides = array<i32>} : memref<16x128xf32, #tpu.memory_space<vmem>>, vector<16x128xf32>,
    } else {
    }
    %c0 = arith.constant 0 : index
    %c0_1 = arith.constant 0 : index
    %3 = vector.load %arg8[%c0, %c0_1] : memref<16x128xf32, #tpu.memory_space<vmem>>, vector<16x128xf32>
    %c0_2 = arith.constant 0 : index
    %c0_3 = arith.constant 0 : index
    %4 = vector.load %arg3[%c0_2, %c0_3] : memref<16x384xbf16, #tpu.memory_space<vmem>>, vector<16x384xbf16>
    %c0_4 = arith.constant 0 : index
    %c0_5 = arith.constant 0 : index
    %5 = vector.load %arg4[%c0_4, %c0_5] : memref<384x128xbf16, #tpu.memory_space<vmem>>, vector<384x128xbf16>
    %cst = arith.constant dense<0.000000e+00> : vector<16x128xf32>
    %6 = tpu.matmul %4, %5, %cst {dimension_numbers = #tpu.dot_dimension_numbers<[1], [0], [0], [1], [0, 0, 1, 1], [], []>} : vector<16x384xbf16>, vector<384x128xbf16>, vector<16x128xf32> -> vector<16x128xf32>
    %7 = arith.addf %3, %6 : vector<16x128xf32>
    %c0_6 = arith.constant 0 : index
    %c0_7 = arith.constant 0 : index
    %8 = vector.load %arg8[%c0_6, %c0_7] : memref<16x128xf32, #tpu.memory_space<vmem>>, vector<16x128xf32>
    tpu.vector_store %arg8[%c0_6, %c0_7], %7 {strides = array<i32>} : memref<16x128xf32, #tpu.memory_space<vmem>>, vector<16x128xf32>,
    %c0_i32_8 = arith.constant 0 : i32
    %9 = arith.cmpi eq, %arg2, %c0_i32_8 : i32
    %10 = arith.extui %9 : i1 to i32
    %c0_i32_9 = arith.constant 0 : i32
    %11 = arith.cmpi ne, %10, %c0_i32_9 : i32
    scf.if %11 {
      %c0_10 = arith.constant 0 : index
      %c0_11 = arith.constant 0 : index
      %12 = vector.load %arg8[%c0_10, %c0_11] : memref<16x128xf32, #tpu.memory_space<vmem>>, vector<16x128xf32>
      %c0_12 = arith.constant 0 : index
      %c0_13 = arith.constant 0 : index
      %13 = vector.load %arg5[%c0_12, %c0_13] : memref<1x128xf32, #tpu.memory_space<vmem>>, vector<1x128xf32>
      %14 = vector.broadcast %13 : vector<1x128xf32> to vector<16x128xf32>
      %15 = arith.addf %12, %14 : vector<16x128xf32>
      %c0_14 = arith.constant 0 : index
      %c0_15 = arith.constant 0 : index
      %16 = vector.load %arg6[%c0_14, %c0_15] : memref<16x128xbf16, #tpu.memory_space<vmem>>, vector<16x128xbf16>
      %17 = arith.extf %16 : vector<16x128xbf16> to vector<16x128xf32>
      %18 = arith.addf %15, %17 : vector<16x128xf32>
      %cst_16 = arith.constant 0.000000e+00 : f32
      %19 = vector.broadcast %cst_16 : f32 to vector<16x128xf32>
      %20 = arith.maximumf %18, %19 : vector<16x128xf32>
      %21 = arith.truncf %20 : vector<16x128xf32> to vector<16x128xbf16>
      %c0_17 = arith.constant 0 : index
      %c0_18 = arith.constant 0 : index
      %22 = vector.load %arg7[%c0_17, %c0_18] : memref<16x128xbf16, #tpu.memory_space<vmem>>, vector<16x128xbf16>
      tpu.vector_store %arg7[%c0_17, %c0_18], %21 {strides = array<i32>} : memref<16x128xbf16, #tpu.memory_space<vmem>>, vector<16x128xbf16>,
    } else {
    }
    return
  }
  func.func @transform_0(%arg0: i32, %arg1: i32, %arg2: i32) -> (i32, i32) {
    %c0_i32 = arith.constant 0 : i32
    return %arg0, %arg2 : i32, i32
  }
  func.func @transform_1(%arg0: i32, %arg1: i32, %arg2: i32) -> (i32, i32) {
    %c0_i32 = arith.constant 0 : i32
    return %arg2, %arg1 : i32, i32
  }
  func.func @transform_2(%arg0: i32, %arg1: i32, %arg2: i32) -> (i32, i32) {
    %c0_i32 = arith.constant 0 : i32
    %c0_i32_0 = arith.constant 0 : i32
    return %c0_i32, %arg1 : i32, i32
  }
  func.func @transform_3(%arg0: i32, %arg1: i32, %arg2: i32) -> (i32, i32) {
    %c0_i32 = arith.constant 0 : i32
    return %arg0, %arg1 : i32, i32
  }
  func.func @transform_4(%arg0: i32, %arg1: i32, %arg2: i32) -> (i32, i32) {
    %c0_i32 = arith.constant 0 : i32
    return %arg0, %arg1 : i32, i32
  }
}

module attributes {stable_mosaic.version = 11 : i64} {
  func.func @kernel(%arg0: i32, %arg1: i32, %arg2: i32, %arg3: memref<16x384xbf16, #tpu.memory_space<vmem>>, %arg4: memref<384x128xbf16, #tpu.memory_space<vmem>>, %arg5: memref<1x128xf32, #tpu.memory_space<vmem>>, %arg6: memref<16x128xbf16, #tpu.memory_space<vmem>>, %arg7: memref<16x128xf32, #tpu.memory_space<vmem>>) attributes {dimension_semantics = [#tpu.dimension_semantics<parallel>, #tpu.dimension_semantics<parallel>, #tpu.dimension_semantics<arbitrary>], iteration_bounds = array<i64: 1, 1, 1>, scalar_prefetch = 0 : i64, scratch_operands = 1 : i64, tpu.core_type = #tpu.core_type<tc>, window_params = [{transform_indices = @transform_0, window_bounds = array<i64: 16, 384>}, {transform_indices = @transform_1, window_bounds = array<i64: 384, 128>}, {transform_indices = @transform_2, window_bounds = array<i64: 1, 128>}, {transform_indices = @transform_3, window_bounds = array<i64: 16, 128>}]} {
    %c0_i32 = arith.constant 0 : i32
    %0 = arith.cmpi eq, %arg2, %c0_i32 : i32
    %1 = arith.extui %0 : i1 to i32
    %c0_i32_0 = arith.constant 0 : i32
    %2 = arith.cmpi ne, %1, %c0_i32_0 : i32
    scf.if %2 {
      %cst_10 = arith.constant 0.000000e+00 : f32
      %12 = vector.broadcast %cst_10 : f32 to vector<16x128xf32>
      %c0_11 = arith.constant 0 : index
      %c0_12 = arith.constant 0 : index
      %13 = vector.load %arg7[%c0_11, %c0_12] : memref<16x128xf32, #tpu.memory_space<vmem>>, vector<16x128xf32>
      tpu.vector_store %arg7[%c0_11, %c0_12], %12 {strides = array<i32>} : memref<16x128xf32, #tpu.memory_space<vmem>>, vector<16x128xf32>,
    } else {
    }
    %c0 = arith.constant 0 : index
    %c0_1 = arith.constant 0 : index
    %3 = vector.load %arg7[%c0, %c0_1] : memref<16x128xf32, #tpu.memory_space<vmem>>, vector<16x128xf32>
    %c0_2 = arith.constant 0 : index
    %c0_3 = arith.constant 0 : index
    %4 = vector.load %arg3[%c0_2, %c0_3] : memref<16x384xbf16, #tpu.memory_space<vmem>>, vector<16x384xbf16>
    %c0_4 = arith.constant 0 : index
    %c0_5 = arith.constant 0 : index
    %5 = vector.load %arg4[%c0_4, %c0_5] : memref<384x128xbf16, #tpu.memory_space<vmem>>, vector<384x128xbf16>
    %cst = arith.constant dense<0.000000e+00> : vector<16x128xf32>
    %6 = tpu.matmul %4, %5, %cst {dimension_numbers = #tpu.dot_dimension_numbers<[1], [0], [0], [1], [0, 0, 1, 1], [], []>} : vector<16x384xbf16>, vector<384x128xbf16>, vector<16x128xf32> -> vector<16x128xf32>
    %7 = arith.addf %3, %6 : vector<16x128xf32>
    %c0_6 = arith.constant 0 : index
    %c0_7 = arith.constant 0 : index
    %8 = vector.load %arg7[%c0_6, %c0_7] : memref<16x128xf32, #tpu.memory_space<vmem>>, vector<16x128xf32>
    tpu.vector_store %arg7[%c0_6, %c0_7], %7 {strides = array<i32>} : memref<16x128xf32, #tpu.memory_space<vmem>>, vector<16x128xf32>,
    %c0_i32_8 = arith.constant 0 : i32
    %9 = arith.cmpi eq, %arg2, %c0_i32_8 : i32
    %10 = arith.extui %9 : i1 to i32
    %c0_i32_9 = arith.constant 0 : i32
    %11 = arith.cmpi ne, %10, %c0_i32_9 : i32
    scf.if %11 {
      %c0_10 = arith.constant 0 : index
      %c0_11 = arith.constant 0 : index
      %12 = vector.load %arg7[%c0_10, %c0_11] : memref<16x128xf32, #tpu.memory_space<vmem>>, vector<16x128xf32>
      %c0_12 = arith.constant 0 : index
      %c0_13 = arith.constant 0 : index
      %13 = vector.load %arg5[%c0_12, %c0_13] : memref<1x128xf32, #tpu.memory_space<vmem>>, vector<1x128xf32>
      %14 = vector.broadcast %13 : vector<1x128xf32> to vector<16x128xf32>
      %15 = arith.addf %12, %14 : vector<16x128xf32>
      %cst_14 = arith.constant 0.000000e+00 : f32
      %16 = vector.broadcast %cst_14 : f32 to vector<16x128xf32>
      %17 = arith.maximumf %15, %16 : vector<16x128xf32>
      %18 = arith.truncf %17 : vector<16x128xf32> to vector<16x128xbf16>
      %c0_15 = arith.constant 0 : index
      %c0_16 = arith.constant 0 : index
      %19 = vector.load %arg6[%c0_15, %c0_16] : memref<16x128xbf16, #tpu.memory_space<vmem>>, vector<16x128xbf16>
      tpu.vector_store %arg6[%c0_15, %c0_16], %18 {strides = array<i32>} : memref<16x128xbf16, #tpu.memory_space<vmem>>, vector<16x128xbf16>,
    } else {
    }
    return
  }
  func.func @transform_0(%arg0: i32, %arg1: i32, %arg2: i32) -> (i32, i32) {
    %c0_i32 = arith.constant 0 : i32
    return %arg0, %arg2 : i32, i32
  }
  func.func @transform_1(%arg0: i32, %arg1: i32, %arg2: i32) -> (i32, i32) {
    %c0_i32 = arith.constant 0 : i32
    return %arg2, %arg1 : i32, i32
  }
  func.func @transform_2(%arg0: i32, %arg1: i32, %arg2: i32) -> (i32, i32) {
    %c0_i32 = arith.constant 0 : i32
    %c0_i32_0 = arith.constant 0 : i32
    return %c0_i32, %arg1 : i32, i32
  }
  func.func @transform_3(%arg0: i32, %arg1: i32, %arg2: i32) -> (i32, i32) {
    %c0_i32 = arith.constant 0 : i32
    return %arg0, %arg1 : i32, i32
  }
}

module attributes {stable_mosaic.version = 11 : i64} {
  func.func @kernel(%arg0: i32, %arg1: i32, %arg2: i32, %arg3: memref<16x640xbf16, #tpu.memory_space<vmem>>, %arg4: memref<640x128xbf16, #tpu.memory_space<vmem>>, %arg5: memref<1x128xf32, #tpu.memory_space<vmem>>, %arg6: memref<16x128xbf16, #tpu.memory_space<vmem>>, %arg7: memref<16x128xf32, #tpu.memory_space<vmem>>) attributes {dimension_semantics = [#tpu.dimension_semantics<parallel>, #tpu.dimension_semantics<parallel>, #tpu.dimension_semantics<arbitrary>], iteration_bounds = array<i64: 1, 1, 1>, scalar_prefetch = 0 : i64, scratch_operands = 1 : i64, tpu.core_type = #tpu.core_type<tc>, window_params = [{transform_indices = @transform_0, window_bounds = array<i64: 16, 640>}, {transform_indices = @transform_1, window_bounds = array<i64: 640, 128>}, {transform_indices = @transform_2, window_bounds = array<i64: 1, 128>}, {transform_indices = @transform_3, window_bounds = array<i64: 16, 128>}]} {
    %c0_i32 = arith.constant 0 : i32
    %0 = arith.cmpi eq, %arg2, %c0_i32 : i32
    %1 = arith.extui %0 : i1 to i32
    %c0_i32_0 = arith.constant 0 : i32
    %2 = arith.cmpi ne, %1, %c0_i32_0 : i32
    scf.if %2 {
      %cst_10 = arith.constant 0.000000e+00 : f32
      %12 = vector.broadcast %cst_10 : f32 to vector<16x128xf32>
      %c0_11 = arith.constant 0 : index
      %c0_12 = arith.constant 0 : index
      %13 = vector.load %arg7[%c0_11, %c0_12] : memref<16x128xf32, #tpu.memory_space<vmem>>, vector<16x128xf32>
      tpu.vector_store %arg7[%c0_11, %c0_12], %12 {strides = array<i32>} : memref<16x128xf32, #tpu.memory_space<vmem>>, vector<16x128xf32>,
    } else {
    }
    %c0 = arith.constant 0 : index
    %c0_1 = arith.constant 0 : index
    %3 = vector.load %arg7[%c0, %c0_1] : memref<16x128xf32, #tpu.memory_space<vmem>>, vector<16x128xf32>
    %c0_2 = arith.constant 0 : index
    %c0_3 = arith.constant 0 : index
    %4 = vector.load %arg3[%c0_2, %c0_3] : memref<16x640xbf16, #tpu.memory_space<vmem>>, vector<16x640xbf16>
    %c0_4 = arith.constant 0 : index
    %c0_5 = arith.constant 0 : index
    %5 = vector.load %arg4[%c0_4, %c0_5] : memref<640x128xbf16, #tpu.memory_space<vmem>>, vector<640x128xbf16>
    %cst = arith.constant dense<0.000000e+00> : vector<16x128xf32>
    %6 = tpu.matmul %4, %5, %cst {dimension_numbers = #tpu.dot_dimension_numbers<[1], [0], [0], [1], [0, 0, 1, 1], [], []>} : vector<16x640xbf16>, vector<640x128xbf16>, vector<16x128xf32> -> vector<16x128xf32>
    %7 = arith.addf %3, %6 : vector<16x128xf32>
    %c0_6 = arith.constant 0 : index
    %c0_7 = arith.constant 0 : index
    %8 = vector.load %arg7[%c0_6, %c0_7] : memref<16x128xf32, #tpu.memory_space<vmem>>, vector<16x128xf32>
    tpu.vector_store %arg7[%c0_6, %c0_7], %7 {strides = array<i32>} : memref<16x128xf32, #tpu.memory_space<vmem>>, vector<16x128xf32>,
    %c0_i32_8 = arith.constant 0 : i32
    %9 = arith.cmpi eq, %arg2, %c0_i32_8 : i32
    %10 = arith.extui %9 : i1 to i32
    %c0_i32_9 = arith.constant 0 : i32
    %11 = arith.cmpi ne, %10, %c0_i32_9 : i32
    scf.if %11 {
      %c0_10 = arith.constant 0 : index
      %c0_11 = arith.constant 0 : index
      %12 = vector.load %arg7[%c0_10, %c0_11] : memref<16x128xf32, #tpu.memory_space<vmem>>, vector<16x128xf32>
      %c0_12 = arith.constant 0 : index
      %c0_13 = arith.constant 0 : index
      %13 = vector.load %arg5[%c0_12, %c0_13] : memref<1x128xf32, #tpu.memory_space<vmem>>, vector<1x128xf32>
      %14 = vector.broadcast %13 : vector<1x128xf32> to vector<16x128xf32>
      %15 = arith.addf %12, %14 : vector<16x128xf32>
      %cst_14 = arith.constant 0.000000e+00 : f32
      %16 = vector.broadcast %cst_14 : f32 to vector<16x128xf32>
      %17 = arith.maximumf %15, %16 : vector<16x128xf32>
      %18 = arith.truncf %17 : vector<16x128xf32> to vector<16x128xbf16>
      %c0_15 = arith.constant 0 : index
      %c0_16 = arith.constant 0 : index
      %19 = vector.load %arg6[%c0_15, %c0_16] : memref<16x128xbf16, #tpu.memory_space<vmem>>, vector<16x128xbf16>
      tpu.vector_store %arg6[%c0_15, %c0_16], %18 {strides = array<i32>} : memref<16x128xbf16, #tpu.memory_space<vmem>>, vector<16x128xbf16>,
    } else {
    }
    return
  }
  func.func @transform_0(%arg0: i32, %arg1: i32, %arg2: i32) -> (i32, i32) {
    %c0_i32 = arith.constant 0 : i32
    return %arg0, %arg2 : i32, i32
  }
  func.func @transform_1(%arg0: i32, %arg1: i32, %arg2: i32) -> (i32, i32) {
    %c0_i32 = arith.constant 0 : i32
    return %arg2, %arg1 : i32, i32
  }
  func.func @transform_2(%arg0: i32, %arg1: i32, %arg2: i32) -> (i32, i32) {
    %c0_i32 = arith.constant 0 : i32
    %c0_i32_0 = arith.constant 0 : i32
    return %c0_i32, %arg1 : i32, i32
  }
  func.func @transform_3(%arg0: i32, %arg1: i32, %arg2: i32) -> (i32, i32) {
    %c0_i32 = arith.constant 0 : i32
    return %arg0, %arg1 : i32, i32
  }
}

module attributes {stable_mosaic.version = 11 : i64} {
  func.func @kernel(%arg0: i32, %arg1: i32, %arg2: i32, %arg3: memref<16x640xbf16, #tpu.memory_space<vmem>>, %arg4: memref<640x128xbf16, #tpu.memory_space<vmem>>, %arg5: memref<1x128xf32, #tpu.memory_space<vmem>>, %arg6: memref<16x128xbf16, #tpu.memory_space<vmem>>, %arg7: memref<16x128xbf16, #tpu.memory_space<vmem>>, %arg8: memref<16x128xf32, #tpu.memory_space<vmem>>) attributes {dimension_semantics = [#tpu.dimension_semantics<parallel>, #tpu.dimension_semantics<parallel>, #tpu.dimension_semantics<arbitrary>], iteration_bounds = array<i64: 1, 1, 1>, scalar_prefetch = 0 : i64, scratch_operands = 1 : i64, tpu.core_type = #tpu.core_type<tc>, window_params = [{transform_indices = @transform_0, window_bounds = array<i64: 16, 640>}, {transform_indices = @transform_1, window_bounds = array<i64: 640, 128>}, {transform_indices = @transform_2, window_bounds = array<i64: 1, 128>}, {transform_indices = @transform_3, window_bounds = array<i64: 16, 128>}, {transform_indices = @transform_4, window_bounds = array<i64: 16, 128>}]} {
    %c0_i32 = arith.constant 0 : i32
    %0 = arith.cmpi eq, %arg2, %c0_i32 : i32
    %1 = arith.extui %0 : i1 to i32
    %c0_i32_0 = arith.constant 0 : i32
    %2 = arith.cmpi ne, %1, %c0_i32_0 : i32
    scf.if %2 {
      %cst_10 = arith.constant 0.000000e+00 : f32
      %12 = vector.broadcast %cst_10 : f32 to vector<16x128xf32>
      %c0_11 = arith.constant 0 : index
      %c0_12 = arith.constant 0 : index
      %13 = vector.load %arg8[%c0_11, %c0_12] : memref<16x128xf32, #tpu.memory_space<vmem>>, vector<16x128xf32>
      tpu.vector_store %arg8[%c0_11, %c0_12], %12 {strides = array<i32>} : memref<16x128xf32, #tpu.memory_space<vmem>>, vector<16x128xf32>,
    } else {
    }
    %c0 = arith.constant 0 : index
    %c0_1 = arith.constant 0 : index
    %3 = vector.load %arg8[%c0, %c0_1] : memref<16x128xf32, #tpu.memory_space<vmem>>, vector<16x128xf32>
    %c0_2 = arith.constant 0 : index
    %c0_3 = arith.constant 0 : index
    %4 = vector.load %arg3[%c0_2, %c0_3] : memref<16x640xbf16, #tpu.memory_space<vmem>>, vector<16x640xbf16>
    %c0_4 = arith.constant 0 : index
    %c0_5 = arith.constant 0 : index
    %5 = vector.load %arg4[%c0_4, %c0_5] : memref<640x128xbf16, #tpu.memory_space<vmem>>, vector<640x128xbf16>
    %cst = arith.constant dense<0.000000e+00> : vector<16x128xf32>
    %6 = tpu.matmul %4, %5, %cst {dimension_numbers = #tpu.dot_dimension_numbers<[1], [0], [0], [1], [0, 0, 1, 1], [], []>} : vector<16x640xbf16>, vector<640x128xbf16>, vector<16x128xf32> -> vector<16x128xf32>
    %7 = arith.addf %3, %6 : vector<16x128xf32>
    %c0_6 = arith.constant 0 : index
    %c0_7 = arith.constant 0 : index
    %8 = vector.load %arg8[%c0_6, %c0_7] : memref<16x128xf32, #tpu.memory_space<vmem>>, vector<16x128xf32>
    tpu.vector_store %arg8[%c0_6, %c0_7], %7 {strides = array<i32>} : memref<16x128xf32, #tpu.memory_space<vmem>>, vector<16x128xf32>,
    %c0_i32_8 = arith.constant 0 : i32
    %9 = arith.cmpi eq, %arg2, %c0_i32_8 : i32
    %10 = arith.extui %9 : i1 to i32
    %c0_i32_9 = arith.constant 0 : i32
    %11 = arith.cmpi ne, %10, %c0_i32_9 : i32
    scf.if %11 {
      %c0_10 = arith.constant 0 : index
      %c0_11 = arith.constant 0 : index
      %12 = vector.load %arg8[%c0_10, %c0_11] : memref<16x128xf32, #tpu.memory_space<vmem>>, vector<16x128xf32>
      %c0_12 = arith.constant 0 : index
      %c0_13 = arith.constant 0 : index
      %13 = vector.load %arg5[%c0_12, %c0_13] : memref<1x128xf32, #tpu.memory_space<vmem>>, vector<1x128xf32>
      %14 = vector.broadcast %13 : vector<1x128xf32> to vector<16x128xf32>
      %15 = arith.addf %12, %14 : vector<16x128xf32>
      %c0_14 = arith.constant 0 : index
      %c0_15 = arith.constant 0 : index
      %16 = vector.load %arg6[%c0_14, %c0_15] : memref<16x128xbf16, #tpu.memory_space<vmem>>, vector<16x128xbf16>
      %17 = arith.extf %16 : vector<16x128xbf16> to vector<16x128xf32>
      %18 = arith.addf %15, %17 : vector<16x128xf32>
      %cst_16 = arith.constant 0.000000e+00 : f32
      %19 = vector.broadcast %cst_16 : f32 to vector<16x128xf32>
      %20 = arith.maximumf %18, %19 : vector<16x128xf32>
      %21 = arith.truncf %20 : vector<16x128xf32> to vector<16x128xbf16>
      %c0_17 = arith.constant 0 : index
      %c0_18 = arith.constant 0 : index
      %22 = vector.load %arg7[%c0_17, %c0_18] : memref<16x128xbf16, #tpu.memory_space<vmem>>, vector<16x128xbf16>
      tpu.vector_store %arg7[%c0_17, %c0_18], %21 {strides = array<i32>} : memref<16x128xbf16, #tpu.memory_space<vmem>>, vector<16x128xbf16>,
    } else {
    }
    return
  }
  func.func @transform_0(%arg0: i32, %arg1: i32, %arg2: i32) -> (i32, i32) {
    %c0_i32 = arith.constant 0 : i32
    return %arg0, %arg2 : i32, i32
  }
  func.func @transform_1(%arg0: i32, %arg1: i32, %arg2: i32) -> (i32, i32) {
    %c0_i32 = arith.constant 0 : i32
    return %arg2, %arg1 : i32, i32
  }
  func.func @transform_2(%arg0: i32, %arg1: i32, %arg2: i32) -> (i32, i32) {
    %c0_i32 = arith.constant 0 : i32
    %c0_i32_0 = arith.constant 0 : i32
    return %c0_i32, %arg1 : i32, i32
  }
  func.func @transform_3(%arg0: i32, %arg1: i32, %arg2: i32) -> (i32, i32) {
    %c0_i32 = arith.constant 0 : i32
    return %arg0, %arg1 : i32, i32
  }
  func.func @transform_4(%arg0: i32, %arg1: i32, %arg2: i32) -> (i32, i32) {
    %c0_i32 = arith.constant 0 : i32
    return %arg0, %arg1 : i32, i32
  }
}

</mosaic_0001>

<bundles_post_ra>
// kernel: _lambda_.21
= control target key start
LH: loop header
LB: loop body
LE: loop exit
PB: predicated region body
PF: predicated region fallthrough
CT: control target
= control target key end

     0   :  { %v2147_v0 = vmov 0   ;;  %s2605_s1 = inlined_call_operand.vmem [shape: bf16[256,128], index: 1, kind: input, shape index: {}]   ;;  %s2606_s0 = inlined_call_operand.vmem [shape: bf16[512,256], index: 0, kind: input, shape index: {}]   ;;  %s2607_s2 = inlined_call_operand.vmem [shape: f32[1,128], index: 2, kind: input, shape index: {}]   ;;  %s2608_s3 = inlined_call_operand.vmem [shape: bf16[512,128], index: 3, kind: output, shape index: {}]  }
   0x1   :  { %659 = vmatprep.subr.bf16.mxu0 %v2147_v0  ;;  %2002 = vmatprep.subr.bf16.mxu1 %v2147_v0  ;;  %v2035_v1 = vld [vmem:[%s2605_s1 + $0x38] sm:$0xff]   ;;  %v2036_v2 = vld [vmem:[%s2605_s1 + $0x30] sm:$0xff]   ;;  %v2037_v3 = vld [vmem:[%s2605_s1 + $0x28] sm:$0xff]  }
   0x2   :  { %660 = vmatpush1.bf16.msra.mxu0 %v2035_v1  ;;  %2018 = vmatpush1.bf16.msra.mxu1 %v2035_v1  ;;  %v2038_v4 = vld [vmem:[%s2605_s1 + $0x20] sm:$0xff]   ;;  %v2039_v5 = vld [vmem:[%s2605_s1 + $0x18] sm:$0xff]   ;;  %v2040_v7 = vld [vmem:[%s2605_s1 + $0x10] sm:$0xff]  }
   0x3   :  { %661 = vmatprep.subr.bf16.mxu0 %v2147_v0  ;;  %2003 = vmatprep.subr.bf16.mxu1 %v2147_v0  ;;  %v2053_v6 = vld [vmem:[%s2606_s0 + $0x4] ss:$8 sps:$4 sm:$0xff]   ;;  %v2043_v11 = vld [vmem:[%s2605_s1 + $0x78] sm:$0xff]   ;;  %v2044_v12 = vld [vmem:[%s2605_s1 + $0x70] sm:$0xff]  }
   0x4   :  { %v2056_v8 = vld [vmem:[%s2606_s0 + $0x104] ss:$8 sps:$4 sm:$0xff]   ;;  %691 = vmatprep.mubr.bf16.mxu0 %v2053_v6  ;;  %v2047_v15 = vld [vmem:[%s2605_s1 + $0x58] sm:$0xff]   ;;  %v2048_v16 = vld [vmem:[%s2605_s1 + $0x50] sm:$0xff]  }
   0x5   :  { %819 = vmatprep.mubr.bf16.mxu1 %v2056_v8  ;;  %v2041_v9 = vld [vmem:[%s2605_s1 + $0x8] sm:$0xff]   ;;  %v2042_v10 = vld [vmem:[%s2605_s1] sm:$0xff]   ;;  %v2057_v21 = vld [vmem:[%s2606_s0 + $0x14] ss:$8 sps:$4 sm:$0xff]  }
   0x6   :  { %662 = vmatpush1.bf16.msra.mxu0 %v2036_v2  ;;  %2019 = vmatpush1.bf16.msra.mxu1 %v2036_v2  ;;  %v2045_v13 = vld [vmem:[%s2605_s1 + $0x68] sm:$0xff]   ;;  %v2046_v14 = vld [vmem:[%s2605_s1 + $0x60] sm:$0xff]   ;;  %v2059_v22 = vld [vmem:[%s2606_s0 + $0x114] ss:$8 sps:$4 sm:$0xff]  }
   0x7   :  { %663 = vmatprep.subr.bf16.mxu0 %v2147_v0  ;;  %2004 = vmatprep.subr.bf16.mxu1 %v2147_v0  ;;  %v2049_v17 = vld [vmem:[%s2605_s1 + $0x48] sm:$0xff]   ;;  %v2050_v18 = vld [vmem:[%s2605_s1 + $0x40] sm:$0xff]   ;;  %v2061_v23 = vld [vmem:[%s2606_s0 + $0x10] ss:$8 sps:$4 sm:$0xff]  }
   0x8   :  { %v2051_v19 = vld [vmem:[%s2606_s0] ss:$8 sps:$4 sm:$0xff]   ;;  %v2062_v24 = vld [vmem:[%s2606_s0 + $0x110] ss:$8 sps:$4 sm:$0xff]   ;;  %v2063_v25 = vld [vmem:[%s2606_s0 + $0x24] ss:$8 sps:$4 sm:$0xff]  }
   0x9   :  { %v2054_v20 = vld [vmem:[%s2606_s0 + $0x100] ss:$8 sps:$4 sm:$0xff]   ;;  %v2065_v26 = vld [vmem:[%s2606_s0 + $0x124] ss:$8 sps:$4 sm:$0xff]   ;;  %v2069_v29 = vld [vmem:[%s2606_s0 + $0x34] ss:$8 sps:$4 sm:$0xff]  }
   0xa   :  { %664 = vmatpush1.bf16.msra.mxu0 %v2037_v3  ;;  %2020 = vmatpush1.bf16.msra.mxu1 %v2037_v3  ;;  %v2067_v27 = vld [vmem:[%s2606_s0 + $0x20] ss:$8 sps:$4 sm:$0xff]   ;;  %v2071_v30 = vld [vmem:[%s2606_s0 + $0x134] ss:$8 sps:$4 sm:$0xff]   ;;  %v2073_v31 = vld [vmem:[%s2606_s0 + $0x30] ss:$8 sps:$4 sm:$0xff]  }
   0xb   :  { %665 = vmatprep.subr.bf16.mxu0 %v2147_v0  ;;  %2005 = vmatprep.subr.bf16.mxu1 %v2147_v0  ;;  %v2068_v28 = vld [vmem:[%s2606_s0 + $0x120] ss:$8 sps:$4 sm:$0xff]   ;;  %v2074_v32 = vld [vmem:[%s2606_s0 + $0x130] ss:$8 sps:$4 sm:$0xff]   ;;  %v2075_v33 = vld [vmem:[%s2606_s0 + $0x44] ss:$8 sps:$4 sm:$0xff]  }
   0xc   :  { %v2077_v34 = vld [vmem:[%s2606_s0 + $0x144] ss:$8 sps:$4 sm:$0xff]   ;;  %v2079_v35 = vld [vmem:[%s2606_s0 + $0x40] ss:$8 sps:$4 sm:$0xff]   ;;  %v2081_v37 = vld [vmem:[%s2606_s0 + $0x54] ss:$8 sps:$4 sm:$0xff]  }
   0xd   :  { %v2080_v36 = vld [vmem:[%s2606_s0 + $0x140] ss:$8 sps:$4 sm:$0xff]   ;;  %v2083_v38 = vld [vmem:[%s2606_s0 + $0x154] ss:$8 sps:$4 sm:$0xff]   ;;  %v2085_v39 = vld [vmem:[%s2606_s0 + $0x50] ss:$8 sps:$4 sm:$0xff]  }
   0xe   :  { %666 = vmatpush1.bf16.msra.mxu0 %v2038_v4  ;;  %2021 = vmatpush1.bf16.msra.mxu1 %v2038_v4  ;;  %v2086_v40 = vld [vmem:[%s2606_s0 + $0x150] ss:$8 sps:$4 sm:$0xff]   ;;  %v2087_v41 = vld [vmem:[%s2606_s0 + $0x64] ss:$8 sps:$4 sm:$0xff]   ;;  %v2091_v43 = vld [vmem:[%s2606_s0 + $0x60] ss:$8 sps:$4 sm:$0xff]  }
   0xf   :  { %667 = vmatprep.subr.bf16.mxu0 %v2147_v0  ;;  %2006 = vmatprep.subr.bf16.mxu1 %v2147_v0  ;;  %v2089_v42 = vld [vmem:[%s2606_s0 + $0x164] ss:$8 sps:$4 sm:$0xff]   ;;  %v2092_v44 = vld [vmem:[%s2606_s0 + $0x160] ss:$8 sps:$4 sm:$0xff]   ;;  %v2093_v45 = vld [vmem:[%s2606_s0 + $0x74] ss:$8 sps:$4 sm:$0xff]  }
  0x10   :  { %v2095_v46 = vld [vmem:[%s2606_s0 + $0x174] ss:$8 sps:$4 sm:$0xff]   ;;  %v2097_v47 = vld [vmem:[%s2606_s0 + $0x70] ss:$8 sps:$4 sm:$0xff]   ;;  %v2099_v49 = vld [vmem:[%s2606_s0 + $0x84] ss:$8 sps:$4 sm:$0xff]  }
  0x11   :  { %v2098_v48 = vld [vmem:[%s2606_s0 + $0x170] ss:$8 sps:$4 sm:$0xff]   ;;  %v2101_v50 = vld [vmem:[%s2606_s0 + $0x184] ss:$8 sps:$4 sm:$0xff]   ;;  %v2103_v51 = vld [vmem:[%s2606_s0 + $0x80] ss:$8 sps:$4 sm:$0xff]  }
  0x12   :  { %668 = vmatpush1.bf16.msra.mxu0 %v2039_v5  ;;  %2022 = vmatpush1.bf16.msra.mxu1 %v2039_v5  ;;  %v2104_v52 = vld [vmem:[%s2606_s0 + $0x180] ss:$8 sps:$4 sm:$0xff]   ;;  %v2105_v53 = vld [vmem:[%s2606_s0 + $0x94] ss:$8 sps:$4 sm:$0xff]   ;;  %v2109_v55 = vld [vmem:[%s2606_s0 + $0x90] ss:$8 sps:$4 sm:$0xff]  }
  0x13   :  { %669 = vmatprep.subr.bf16.mxu0 %v2147_v0  ;;  %2007 = vmatprep.subr.bf16.mxu1 %v2147_v0  ;;  %v2107_v54 = vld [vmem:[%s2606_s0 + $0x194] ss:$8 sps:$4 sm:$0xff]   ;;  %v2110_v56 = vld [vmem:[%s2606_s0 + $0x190] ss:$8 sps:$4 sm:$0xff]   ;;  %v2111_v57 = vld [vmem:[%s2606_s0 + $0xa4] ss:$8 sps:$4 sm:$0xff]  }
  0x14   :  { %v2113_v58 = vld [vmem:[%s2606_s0 + $0x1a4] ss:$8 sps:$4 sm:$0xff]   ;;  %v2115_v59 = vld [vmem:[%s2606_s0 + $0xa0] ss:$8 sps:$4 sm:$0xff]   ;;  %v2117_v61 = vld [vmem:[%s2606_s0 + $0xb4] ss:$8 sps:$4 sm:$0xff]  }
  0x15   :  { %v2116_v60 = vld [vmem:[%s2606_s0 + $0x1a0] ss:$8 sps:$4 sm:$0xff]   ;;  %v2119_v62 = vld [vmem:[%s2606_s0 + $0x1b4] ss:$8 sps:$4 sm:$0xff]   ;;  %v2121_v63 = vld [vmem:[%s2606_s0 + $0xb0] ss:$8 sps:$4 sm:$0xff]  }
  0x16   :  { %670 = vmatpush1.bf16.msra.mxu0 %v2040_v7  ;;  %2023 = vmatpush1.bf16.msra.mxu1 %v2040_v7  ;;  %v2123_v1 = vld [vmem:[%s2606_s0 + $0xc4] ss:$8 sps:$4 sm:$0xff]   ;;  %v2127_v3 = vld [vmem:[%s2606_s0 + $0xc0] ss:$8 sps:$4 sm:$0xff]   ;;  %v2129_v5 = vld [vmem:[%s2606_s0 + $0xd4] ss:$8 sps:$4 sm:$0xff]  }
  0x17   :  { %671 = vmatprep.subr.bf16.mxu0 %v2147_v0  ;;  %2008 = vmatprep.subr.bf16.mxu1 %v2147_v0  ;;  %v2125_v2 = vld [vmem:[%s2606_s0 + $0x1c4] ss:$8 sps:$4 sm:$0xff]   ;;  %v2128_v4 = vld [vmem:[%s2606_s0 + $0x1c0] ss:$8 sps:$4 sm:$0xff]   ;;  %v2131_v6 = vld [vmem:[%s2606_s0 + $0x1d4] ss:$8 sps:$4 sm:$0xff]  }
  0x18   :  { %v2133_v7 = vld [vmem:[%s2606_s0 + $0xd0] ss:$8 sps:$4 sm:$0xff]  }
  0x19   :  { %v2134_v8 = vld [vmem:[%s2606_s0 + $0x1d0] ss:$8 sps:$4 sm:$0xff]  }
  0x1a   :  { %672 = vmatpush1.bf16.msra.mxu0 %v2041_v9  ;;  %2024 = vmatpush1.bf16.msra.mxu1 %v2041_v9  ;;  %v2135_v9 = vld [vmem:[%s2606_s0 + $0xe4] ss:$8 sps:$4 sm:$0xff]  }
  0x1b   :  { %673 = vmatprep.subr.bf16.mxu0 %v2147_v0  ;;  %2009 = vmatprep.subr.bf16.mxu1 %v2147_v0 }
  0x1e   :  { %674 = vmatpush1.bf16.msra.mxu0 %v2042_v10  ;;  %2025 = vmatpush1.bf16.msra.mxu1 %v2042_v10  ;;  %v2137_v10 = vld [vmem:[%s2606_s0 + $0x1e4] ss:$8 sps:$4 sm:$0xff]  }
  0x1f   :  { %675 = vmatprep.subr.bf16.mxu0 %v2147_v0  ;;  %2010 = vmatprep.subr.bf16.mxu1 %v2147_v0 }
  0x22   :  { %676 = vmatpush2.bf16.msra.mxu0 %v2043_v11  ;;  %2026 = vmatpush2.bf16.msra.mxu1 %v2043_v11  ;;  %v2139_v11 = vld [vmem:[%s2606_s0 + $0xe0] ss:$8 sps:$4 sm:$0xff]  }
  0x23   :  { %677 = vmatprep.subr.bf16.mxu0 %v2147_v0  ;;  %2011 = vmatprep.subr.bf16.mxu1 %v2147_v0 }
  0x26   :  { %678 = vmatpush2.bf16.msra.mxu0 %v2044_v12  ;;  %2027 = vmatpush2.bf16.msra.mxu1 %v2044_v12  ;;  %v2140_v12 = vld [vmem:[%s2606_s0 + $0x1e0] ss:$8 sps:$4 sm:$0xff]  }
  0x27   :  { %679 = vmatprep.subr.bf16.mxu0 %v2147_v0  ;;  %2012 = vmatprep.subr.bf16.mxu1 %v2147_v0 }
  0x2a   :  { %680 = vmatpush2.bf16.msra.mxu0 %v2045_v13  ;;  %2028 = vmatpush2.bf16.msra.mxu1 %v2045_v13  ;;  %v2141_v13 = vld [vmem:[%s2606_s0 + $0xf4] ss:$8 sps:$4 sm:$0xff]  }
  0x2b   :  { %681 = vmatprep.subr.bf16.mxu0 %v2147_v0  ;;  %2013 = vmatprep.subr.bf16.mxu1 %v2147_v0 }
  0x2e   :  { %682 = vmatpush2.bf16.msra.mxu0 %v2046_v14  ;;  %2029 = vmatpush2.bf16.msra.mxu1 %v2046_v14  ;;  %v2143_v14 = vld [vmem:[%s2606_s0 + $0x1f4] ss:$8 sps:$4 sm:$0xff]  }
  0x2f   :  { %683 = vmatprep.subr.bf16.mxu0 %v2147_v0  ;;  %2014 = vmatprep.subr.bf16.mxu1 %v2147_v0 }
  0x32   :  { %684 = vmatpush2.bf16.msra.mxu0 %v2047_v15  ;;  %2030 = vmatpush2.bf16.msra.mxu1 %v2047_v15  ;;  %v2145_v15 = vld [vmem:[%s2606_s0 + $0xf0] ss:$8 sps:$4 sm:$0xff]  }
  0x33   :  { %685 = vmatprep.subr.bf16.mxu0 %v2147_v0  ;;  %2015 = vmatprep.subr.bf16.mxu1 %v2147_v0 }
  0x36   :  { %686 = vmatpush2.bf16.msra.mxu0 %v2048_v16  ;;  %2031 = vmatpush2.bf16.msra.mxu1 %v2048_v16  ;;  %v2146_v16 = vld [vmem:[%s2606_s0 + $0x1f0] ss:$8 sps:$4 sm:$0xff]  }
  0x37   :  { %687 = vmatprep.subr.bf16.mxu0 %v2147_v0  ;;  %2016 = vmatprep.subr.bf16.mxu1 %v2147_v0 }
  0x3a   :  { %688 = vmatpush2.bf16.msra.mxu0 %v2049_v17  ;;  %2032 = vmatpush2.bf16.msra.mxu1 %v2049_v17 }
  0x3b   :  { %689 = vmatprep.subr.bf16.mxu0 %v2147_v0  ;;  %2017 = vmatprep.subr.bf16.mxu1 %v2147_v0  ;;  %v2122_v0 = vld [vmem:[%s2606_s0 + $0x1b0] ss:$8 sps:$4 sm:$0xff]  }
  0x3e   :  { %690 = vmatpush2.bf16.msra.mxu0 %v2050_v18  ;;  %2033 = vmatpush2.bf16.msra.mxu1 %v2050_v18  ;;  %v2443_v18 = vld [vmem:[%s2607_s2] ss:$0 sm:$0xff] }
  0x41   :  { %692 = vmatmul.mubr.bf16.vlgmr.msra.gmra.mxu0 %v2051_v19  ;;  %820 = vmatmul.mubr.bf16.vlgmr.msra.gmra.mxu1 %v2054_v20 }
  0x42   :  { %699 = vmatprep.mubr.bf16.mxu0 %v2057_v21  ;;  %827 = vmatprep.mubr.bf16.mxu1 %v2059_v22 }
  0x49   :  { %700 = vmatmul.mubr.bf16.gmra.mxu0 %v2061_v23  ;;  %828 = vmatmul.mubr.bf16.gmra.mxu1 %v2062_v24 }
  0x4a   :  { %707 = vmatprep.mubr.bf16.mxu0 %v2063_v25  ;;  %835 = vmatprep.mubr.bf16.mxu1 %v2065_v26 }
  0x51   :  { %708 = vmatmul.mubr.bf16.gmra.mxu0 %v2067_v27  ;;  %836 = vmatmul.mubr.bf16.gmra.mxu1 %v2068_v28 }
  0x52   :  { %715 = vmatprep.mubr.bf16.mxu0 %v2069_v29  ;;  %843 = vmatprep.mubr.bf16.mxu1 %v2071_v30 }
  0x59   :  { %716 = vmatmul.mubr.bf16.gmra.mxu0 %v2073_v31  ;;  %844 = vmatmul.mubr.bf16.gmra.mxu1 %v2074_v32 }
  0x5a   :  { %723 = vmatprep.mubr.bf16.mxu0 %v2075_v33  ;;  %851 = vmatprep.mubr.bf16.mxu1 %v2077_v34 }
  0x61   :  { %724 = vmatmul.mubr.bf16.gmra.mxu0 %v2079_v35  ;;  %852 = vmatmul.mubr.bf16.gmra.mxu1 %v2080_v36 }
  0x62   :  { %731 = vmatprep.mubr.bf16.mxu0 %v2081_v37  ;;  %859 = vmatprep.mubr.bf16.mxu1 %v2083_v38 }
  0x69   :  { %732 = vmatmul.mubr.bf16.gmra.mxu0 %v2085_v39  ;;  %860 = vmatmul.mubr.bf16.gmra.mxu1 %v2086_v40 }
  0x6a   :  { %739 = vmatprep.mubr.bf16.mxu0 %v2087_v41  ;;  %867 = vmatprep.mubr.bf16.mxu1 %v2089_v42 }
  0x71   :  { %740 = vmatmul.mubr.bf16.gmra.mxu0 %v2091_v43  ;;  %868 = vmatmul.mubr.bf16.gmra.mxu1 %v2092_v44 }
  0x72   :  { %747 = vmatprep.mubr.bf16.mxu0 %v2093_v45  ;;  %875 = vmatprep.mubr.bf16.mxu1 %v2095_v46 }
  0x79   :  { %748 = vmatmul.mubr.bf16.gmra.mxu0 %v2097_v47  ;;  %876 = vmatmul.mubr.bf16.gmra.mxu1 %v2098_v48 }
  0x7a   :  { %755 = vmatprep.mubr.bf16.mxu0 %v2099_v49  ;;  %883 = vmatprep.mubr.bf16.mxu1 %v2101_v50 }
  0x81   :  { %756 = vmatmul.mubr.bf16.gmra.mxu0 %v2103_v51  ;;  %884 = vmatmul.mubr.bf16.gmra.mxu1 %v2104_v52 }
  0x82   :  { %763 = vmatprep.mubr.bf16.mxu0 %v2105_v53  ;;  %891 = vmatprep.mubr.bf16.mxu1 %v2107_v54 }
  0x89   :  { %764 = vmatmul.mubr.bf16.gmra.mxu0 %v2109_v55  ;;  %892 = vmatmul.mubr.bf16.gmra.mxu1 %v2110_v56 }
  0x8a   :  { %771 = vmatprep.mubr.bf16.mxu0 %v2111_v57  ;;  %899 = vmatprep.mubr.bf16.mxu1 %v2113_v58 }
  0x91   :  { %772 = vmatmul.mubr.bf16.gmra.mxu0 %v2115_v59  ;;  %900 = vmatmul.mubr.bf16.gmra.mxu1 %v2116_v60 }
  0x92   :  { %779 = vmatprep.mubr.bf16.mxu0 %v2117_v61  ;;  %907 = vmatprep.mubr.bf16.mxu1 %v2119_v62 }
  0x99   :  { %780 = vmatmul.mubr.bf16.gmra.mxu0 %v2121_v63  ;;  %908 = vmatmul.mubr.bf16.gmra.mxu1 %v2122_v0 }
  0x9a   :  { %787 = vmatprep.mubr.bf16.mxu0 %v2123_v1  ;;  %915 = vmatprep.mubr.bf16.mxu1 %v2125_v2 }
  0xa1   :  { %788 = vmatmul.mubr.bf16.gmra.mxu0 %v2127_v3  ;;  %916 = vmatmul.mubr.bf16.gmra.mxu1 %v2128_v4 }
  0xa2   :  { %795 = vmatprep.mubr.bf16.mxu0 %v2129_v5  ;;  %923 = vmatprep.mubr.bf16.mxu1 %v2131_v6 }
  0xa9   :  { %796 = vmatmul.mubr.bf16.gmra.mxu0 %v2133_v7  ;;  %924 = vmatmul.mubr.bf16.gmra.mxu1 %v2134_v8 }
  0xaa   :  { %803 = vmatprep.mubr.bf16.mxu0 %v2135_v9  ;;  %931 = vmatprep.mubr.bf16.mxu1 %v2137_v10 }
  0xb1   :  { %804 = vmatmul.mubr.bf16.gmra.mxu0 %v2139_v11  ;;  %932 = vmatmul.mubr.bf16.gmra.mxu1 %v2140_v12 }
  0xb2   :  { %811 = vmatprep.mubr.bf16.mxu0 %v2141_v13  ;;  %939 = vmatprep.mubr.bf16.mxu1 %v2143_v14 }
  0xb9   :  { %812 = vmatmul.mubr.bf16.gmra.mxu0 %v2145_v15  ;;  %940 = vmatmul.mubr.bf16.gmra.mxu1 %v2146_v16 }
 0x101   :  { %v693_v17 = vpop.f32.mrf.mxu0  ;;  %v821_v19 = vpop.f32.mrf.mxu1 }
 0x102   :  { %v1150_v22 = vadd.f32 %v2443_v18, %v693_v17  ;;  %v1182_v23 = vadd.f32 %v2443_v18, %v821_v19 }
 0x103   :  { %v695_v20 = vpop.f32.mrf.mxu0  ;;  %v823_v21 = vpop.f32.mrf.mxu1 }
 0x104   :  { %v1214_v30 = vmax.f32 %v1150_v22, 0.0  ;;  %v1246_v31 = vmax.f32 %v1182_v23, 0.0 }
 0x105   :  { %v696_v24 = vpop.f32.mrf.mxu0  ;;  %v824_v25 = vpop.f32.mrf.mxu1 }
 0x106   :  { %v1151_v26 = vadd.f32 %v2443_v18, %v696_v24  ;;  %v1183_v27 = vadd.f32 %v2443_v18, %v824_v25 }
 0x107   :  { %v698_v28 = vpop.f32.mrf.mxu0  ;;  %v826_v29 = vpop.f32.mrf.mxu1 }
 0x108   :  { %v1215_v32 = vmax.f32 %v1151_v26, 0.0  ;;  %v1247_v33 = vmax.f32 %v1183_v27, 0.0 }
 0x109   :  { %v701_v34 = vpop.f32.mrf.mxu0  ;;  %v829_v35 = vpop.f32.mrf.mxu1 }
 0x10a   :  { %v1814_v36 = vpack.c.bf16 %v1215_v32, %v1214_v30  ;;  %v1894_v37 = vpack.c.bf16 %v1247_v33, %v1246_v31  ;;  %v1152_v40 = vadd.f32 %v2443_v18, %v701_v34  ;;  %v1184_v41 = vadd.f32 %v2443_v18, %v829_v35 }
 0x10b   :  { %v703_v38 = vpop.f32.mrf.mxu0  ;;  %v831_v39 = vpop.f32.mrf.mxu1 }
 0x10c   :  { %1815 = vst [vmem:[%s2608_s3] sm:$0xff] %v1814_v36   ;;  %1986 = vst [vmem:[%s2608_s3 + $0x80] sm:$0xff] %v1894_v37   ;;  %v1216_v48 = vmax.f32 %v1152_v40, 0.0  ;;  %v1248_v49 = vmax.f32 %v1184_v41, 0.0 }
 0x10d   :  { %v704_v42 = vpop.f32.mrf.mxu0  ;;  %v832_v43 = vpop.f32.mrf.mxu1 }
 0x10e   :  { %v1153_v44 = vadd.f32 %v2443_v18, %v704_v42  ;;  %v1185_v45 = vadd.f32 %v2443_v18, %v832_v43 }
 0x10f   :  { %v706_v46 = vpop.f32.mrf.mxu0  ;;  %v834_v47 = vpop.f32.mrf.mxu1 }
 0x110   :  { %v1217_v50 = vmax.f32 %v1153_v44, 0.0  ;;  %v1249_v51 = vmax.f32 %v1185_v45, 0.0 }
 0x111   :  { %v709_v52 = vpop.f32.mrf.mxu0  ;;  %v837_v53 = vpop.f32.mrf.mxu1 }
 0x112   :  { %v1819_v54 = vpack.c.bf16 %v1217_v50, %v1216_v48  ;;  %v1899_v55 = vpack.c.bf16 %v1249_v51, %v1248_v49  ;;  %v1154_v58 = vadd.f32 %v2443_v18, %v709_v52  ;;  %v1186_v59 = vadd.f32 %v2443_v18, %v837_v53 }
 0x113   :  { %v711_v56 = vpop.f32.mrf.mxu0  ;;  %v839_v57 = vpop.f32.mrf.mxu1 }
 0x114   :  { %1971 = vst [vmem:[%s2608_s3 + $0x8] sm:$0xff] %v1819_v54   ;;  %1987 = vst [vmem:[%s2608_s3 + $0x88] sm:$0xff] %v1899_v55   ;;  %v1218_v2 = vmax.f32 %v1154_v58, 0.0  ;;  %v1250_v3 = vmax.f32 %v1186_v59, 0.0 }
 0x115   :  { %v712_v60 = vpop.f32.mrf.mxu0  ;;  %v840_v61 = vpop.f32.mrf.mxu1 }
 0x116   :  { %v1155_v62 = vadd.f32 %v2443_v18, %v712_v60  ;;  %v1187_v63 = vadd.f32 %v2443_v18, %v840_v61 }
 0x117   :  { %v714_v0 = vpop.f32.mrf.mxu0  ;;  %v842_v1 = vpop.f32.mrf.mxu1 }
 0x118   :  { %v1219_v4 = vmax.f32 %v1155_v62, 0.0  ;;  %v1251_v5 = vmax.f32 %v1187_v63, 0.0 }
 0x119   :  { %v717_v6 = vpop.f32.mrf.mxu0  ;;  %v845_v7 = vpop.f32.mrf.mxu1 }
 0x11a   :  { %v1824_v8 = vpack.c.bf16 %v1219_v4, %v1218_v2  ;;  %v1904_v9 = vpack.c.bf16 %v1251_v5, %v1250_v3  ;;  %v1156_v12 = vadd.f32 %v2443_v18, %v717_v6  ;;  %v1188_v13 = vadd.f32 %v2443_v18, %v845_v7 }
 0x11b   :  { %v719_v10 = vpop.f32.mrf.mxu0  ;;  %v847_v11 = vpop.f32.mrf.mxu1 }
 0x11c   :  { %1972 = vst [vmem:[%s2608_s3 + $0x10] sm:$0xff] %v1824_v8   ;;  %1988 = vst [vmem:[%s2608_s3 + $0x90] sm:$0xff] %v1904_v9   ;;  %v1220_v21 = vmax.f32 %v1156_v12, 0.0  ;;  %v1252_v22 = vmax.f32 %v1188_v13, 0.0 }
 0x11d   :  { %v720_v14 = vpop.f32.mrf.mxu0  ;;  %v848_v15 = vpop.f32.mrf.mxu1 }
 0x11e   :  { %v1157_v16 = vadd.f32 %v2443_v18, %v720_v14  ;;  %v1189_v17 = vadd.f32 %v2443_v18, %v848_v15 }
 0x11f   :  { %v722_v19 = vpop.f32.mrf.mxu0  ;;  %v850_v20 = vpop.f32.mrf.mxu1 }
 0x120   :  { %v1221_v23 = vmax.f32 %v1157_v16, 0.0  ;;  %v1253_v24 = vmax.f32 %v1189_v17, 0.0 }
 0x121   :  { %v725_v25 = vpop.f32.mrf.mxu0  ;;  %v853_v26 = vpop.f32.mrf.mxu1 }
 0x122   :  { %v1829_v27 = vpack.c.bf16 %v1221_v23, %v1220_v21  ;;  %v1909_v28 = vpack.c.bf16 %v1253_v24, %v1252_v22  ;;  %v1158_v31 = vadd.f32 %v2443_v18, %v725_v25  ;;  %v1190_v32 = vadd.f32 %v2443_v18, %v853_v26 }
 0x123   :  { %v727_v29 = vpop.f32.mrf.mxu0  ;;  %v855_v30 = vpop.f32.mrf.mxu1 }
 0x124   :  { %1973 = vst [vmem:[%s2608_s3 + $0x18] sm:$0xff] %v1829_v27   ;;  %1989 = vst [vmem:[%s2608_s3 + $0x98] sm:$0xff] %v1909_v28   ;;  %v1222_v39 = vmax.f32 %v1158_v31, 0.0  ;;  %v1254_v40 = vmax.f32 %v1190_v32, 0.0 }
 0x125   :  { %v728_v33 = vpop.f32.mrf.mxu0  ;;  %v856_v34 = vpop.f32.mrf.mxu1 }
 0x126   :  { %v1159_v35 = vadd.f32 %v2443_v18, %v728_v33  ;;  %v1191_v36 = vadd.f32 %v2443_v18, %v856_v34 }
 0x127   :  { %v730_v37 = vpop.f32.mrf.mxu0  ;;  %v858_v38 = vpop.f32.mrf.mxu1 }
 0x128   :  { %v1223_v41 = vmax.f32 %v1159_v35, 0.0  ;;  %v1255_v42 = vmax.f32 %v1191_v36, 0.0 }
 0x129   :  { %v733_v43 = vpop.f32.mrf.mxu0  ;;  %v861_v44 = vpop.f32.mrf.mxu1 }
 0x12a   :  { %v1834_v45 = vpack.c.bf16 %v1223_v41, %v1222_v39  ;;  %v1914_v46 = vpack.c.bf16 %v1255_v42, %v1254_v40  ;;  %v1160_v49 = vadd.f32 %v2443_v18, %v733_v43  ;;  %v1192_v50 = vadd.f32 %v2443_v18, %v861_v44 }
 0x12b   :  { %v735_v47 = vpop.f32.mrf.mxu0  ;;  %v863_v48 = vpop.f32.mrf.mxu1 }
 0x12c   :  { %1974 = vst [vmem:[%s2608_s3 + $0x20] sm:$0xff] %v1834_v45   ;;  %1990 = vst [vmem:[%s2608_s3 + $0xa0] sm:$0xff] %v1914_v46   ;;  %v1224_v57 = vmax.f32 %v1160_v49, 0.0  ;;  %v1256_v58 = vmax.f32 %v1192_v50, 0.0 }
 0x12d   :  { %v736_v51 = vpop.f32.mrf.mxu0  ;;  %v864_v52 = vpop.f32.mrf.mxu1 }
 0x12e   :  { %v1161_v53 = vadd.f32 %v2443_v18, %v736_v51  ;;  %v1193_v54 = vadd.f32 %v2443_v18, %v864_v52 }
 0x12f   :  { %v738_v55 = vpop.f32.mrf.mxu0  ;;  %v866_v56 = vpop.f32.mrf.mxu1 }
 0x130   :  { %v1225_v59 = vmax.f32 %v1161_v53, 0.0  ;;  %v1257_v60 = vmax.f32 %v1193_v54, 0.0 }
 0x131   :  { %v741_v61 = vpop.f32.mrf.mxu0  ;;  %v869_v62 = vpop.f32.mrf.mxu1 }
 0x132   :  { %v1839_v63 = vpack.c.bf16 %v1225_v59, %v1224_v57  ;;  %v1919_v0 = vpack.c.bf16 %v1257_v60, %v1256_v58  ;;  %v1162_v3 = vadd.f32 %v2443_v18, %v741_v61  ;;  %v1194_v4 = vadd.f32 %v2443_v18, %v869_v62 }
 0x133   :  { %v743_v1 = vpop.f32.mrf.mxu0  ;;  %v871_v2 = vpop.f32.mrf.mxu1 }
 0x134   :  { %1975 = vst [vmem:[%s2608_s3 + $0x28] sm:$0xff] %v1839_v63   ;;  %1991 = vst [vmem:[%s2608_s3 + $0xa8] sm:$0xff] %v1919_v0   ;;  %v1226_v11 = vmax.f32 %v1162_v3, 0.0  ;;  %v1258_v12 = vmax.f32 %v1194_v4, 0.0 }
 0x135   :  { %v744_v5 = vpop.f32.mrf.mxu0  ;;  %v872_v6 = vpop.f32.mrf.mxu1 }
 0x136   :  { %v1163_v7 = vadd.f32 %v2443_v18, %v744_v5  ;;  %v1195_v8 = vadd.f32 %v2443_v18, %v872_v6 }
 0x137   :  { %v746_v9 = vpop.f32.mrf.mxu0  ;;  %v874_v10 = vpop.f32.mrf.mxu1 }
 0x138   :  { %v1227_v13 = vmax.f32 %v1163_v7, 0.0  ;;  %v1259_v14 = vmax.f32 %v1195_v8, 0.0 }
 0x139   :  { %v749_v15 = vpop.f32.mrf.mxu0  ;;  %v877_v16 = vpop.f32.mrf.mxu1 }
 0x13a   :  { %v1844_v17 = vpack.c.bf16 %v1227_v13, %v1226_v11  ;;  %v1924_v19 = vpack.c.bf16 %v1259_v14, %v1258_v12  ;;  %v1164_v22 = vadd.f32 %v2443_v18, %v749_v15  ;;  %v1196_v23 = vadd.f32 %v2443_v18, %v877_v16 }
 0x13b   :  { %v751_v20 = vpop.f32.mrf.mxu0  ;;  %v879_v21 = vpop.f32.mrf.mxu1 }
 0x13c   :  { %1976 = vst [vmem:[%s2608_s3 + $0x30] sm:$0xff] %v1844_v17   ;;  %1992 = vst [vmem:[%s2608_s3 + $0xb0] sm:$0xff] %v1924_v19   ;;  %v1228_v30 = vmax.f32 %v1164_v22, 0.0  ;;  %v1260_v31 = vmax.f32 %v1196_v23, 0.0 }
 0x13d   :  { %v752_v24 = vpop.f32.mrf.mxu0  ;;  %v880_v25 = vpop.f32.mrf.mxu1 }
 0x13e   :  { %v1165_v26 = vadd.f32 %v2443_v18, %v752_v24  ;;  %v1197_v27 = vadd.f32 %v2443_v18, %v880_v25 }
 0x13f   :  { %v754_v28 = vpop.f32.mrf.mxu0  ;;  %v882_v29 = vpop.f32.mrf.mxu1 }
 0x140   :  { %v1229_v32 = vmax.f32 %v1165_v26, 0.0  ;;  %v1261_v33 = vmax.f32 %v1197_v27, 0.0 }
 0x141   :  { %v757_v34 = vpop.f32.mrf.mxu0  ;;  %v885_v35 = vpop.f32.mrf.mxu1 }
 0x142   :  { %v1849_v36 = vpack.c.bf16 %v1229_v32, %v1228_v30  ;;  %v1929_v37 = vpack.c.bf16 %v1261_v33, %v1260_v31  ;;  %v1166_v40 = vadd.f32 %v2443_v18, %v757_v34  ;;  %v1198_v41 = vadd.f32 %v2443_v18, %v885_v35 }
 0x143   :  { %v759_v38 = vpop.f32.mrf.mxu0  ;;  %v887_v39 = vpop.f32.mrf.mxu1 }
 0x144   :  { %1977 = vst [vmem:[%s2608_s3 + $0x38] sm:$0xff] %v1849_v36   ;;  %1993 = vst [vmem:[%s2608_s3 + $0xb8] sm:$0xff] %v1929_v37   ;;  %v1230_v48 = vmax.f32 %v1166_v40, 0.0  ;;  %v1262_v49 = vmax.f32 %v1198_v41, 0.0 }
 0x145   :  { %v760_v42 = vpop.f32.mrf.mxu0  ;;  %v888_v43 = vpop.f32.mrf.mxu1 }
 0x146   :  { %v1167_v44 = vadd.f32 %v2443_v18, %v760_v42  ;;  %v1199_v45 = vadd.f32 %v2443_v18, %v888_v43 }
 0x147   :  { %v762_v46 = vpop.f32.mrf.mxu0  ;;  %v890_v47 = vpop.f32.mrf.mxu1 }
 0x148   :  { %v1231_v50 = vmax.f32 %v1167_v44, 0.0  ;;  %v1263_v51 = vmax.f32 %v1199_v45, 0.0 }
 0x149   :  { %v765_v52 = vpop.f32.mrf.mxu0  ;;  %v893_v53 = vpop.f32.mrf.mxu1 }
 0x14a   :  { %v1854_v54 = vpack.c.bf16 %v1231_v50, %v1230_v48  ;;  %v1934_v55 = vpack.c.bf16 %v1263_v51, %v1262_v49  ;;  %v1168_v58 = vadd.f32 %v2443_v18, %v765_v52  ;;  %v1200_v59 = vadd.f32 %v2443_v18, %v893_v53 }
 0x14b   :  { %v767_v56 = vpop.f32.mrf.mxu0  ;;  %v895_v57 = vpop.f32.mrf.mxu1 }
 0x14c   :  { %1978 = vst [vmem:[%s2608_s3 + $0x40] sm:$0xff] %v1854_v54   ;;  %1994 = vst [vmem:[%s2608_s3 + $0xc0] sm:$0xff] %v1934_v55   ;;  %v1232_v2 = vmax.f32 %v1168_v58, 0.0  ;;  %v1264_v3 = vmax.f32 %v1200_v59, 0.0 }
 0x14d   :  { %v768_v60 = vpop.f32.mrf.mxu0  ;;  %v896_v61 = vpop.f32.mrf.mxu1 }
 0x14e   :  { %v1169_v62 = vadd.f32 %v2443_v18, %v768_v60  ;;  %v1201_v63 = vadd.f32 %v2443_v18, %v896_v61 }
 0x14f   :  { %v770_v0 = vpop.f32.mrf.mxu0  ;;  %v898_v1 = vpop.f32.mrf.mxu1 }
 0x150   :  { %v1233_v4 = vmax.f32 %v1169_v62, 0.0  ;;  %v1265_v5 = vmax.f32 %v1201_v63, 0.0 }
 0x151   :  { %v773_v6 = vpop.f32.mrf.mxu0  ;;  %v901_v7 = vpop.f32.mrf.mxu1 }
 0x152   :  { %v1859_v8 = vpack.c.bf16 %v1233_v4, %v1232_v2  ;;  %v1939_v9 = vpack.c.bf16 %v1265_v5, %v1264_v3  ;;  %v1170_v12 = vadd.f32 %v2443_v18, %v773_v6  ;;  %v1202_v13 = vadd.f32 %v2443_v18, %v901_v7 }
 0x153   :  { %v775_v10 = vpop.f32.mrf.mxu0  ;;  %v903_v11 = vpop.f32.mrf.mxu1 }
 0x154   :  { %1979 = vst [vmem:[%s2608_s3 + $0x48] sm:$0xff] %v1859_v8   ;;  %1995 = vst [vmem:[%s2608_s3 + $0xc8] sm:$0xff] %v1939_v9   ;;  %v1234_v21 = vmax.f32 %v1170_v12, 0.0  ;;  %v1266_v22 = vmax.f32 %v1202_v13, 0.0 }
 0x155   :  { %v776_v14 = vpop.f32.mrf.mxu0  ;;  %v904_v15 = vpop.f32.mrf.mxu1 }
 0x156   :  { %v1171_v16 = vadd.f32 %v2443_v18, %v776_v14  ;;  %v1203_v17 = vadd.f32 %v2443_v18, %v904_v15 }
 0x157   :  { %v778_v19 = vpop.f32.mrf.mxu0  ;;  %v906_v20 = vpop.f32.mrf.mxu1 }
 0x158   :  { %v1235_v23 = vmax.f32 %v1171_v16, 0.0  ;;  %v1267_v24 = vmax.f32 %v1203_v17, 0.0 }
 0x159   :  { %v781_v25 = vpop.f32.mrf.mxu0  ;;  %v909_v26 = vpop.f32.mrf.mxu1 }
 0x15a   :  { %v1864_v27 = vpack.c.bf16 %v1235_v23, %v1234_v21  ;;  %v1944_v28 = vpack.c.bf16 %v1267_v24, %v1266_v22  ;;  %v1172_v31 = vadd.f32 %v2443_v18, %v781_v25  ;;  %v1204_v32 = vadd.f32 %v2443_v18, %v909_v26 }
 0x15b   :  { %v783_v29 = vpop.f32.mrf.mxu0  ;;  %v911_v30 = vpop.f32.mrf.mxu1 }
 0x15c   :  { %1980 = vst [vmem:[%s2608_s3 + $0x50] sm:$0xff] %v1864_v27   ;;  %1996 = vst [vmem:[%s2608_s3 + $0xd0] sm:$0xff] %v1944_v28   ;;  %v1236_v39 = vmax.f32 %v1172_v31, 0.0  ;;  %v1268_v40 = vmax.f32 %v1204_v32, 0.0 }
 0x15d   :  { %v784_v33 = vpop.f32.mrf.mxu0  ;;  %v912_v34 = vpop.f32.mrf.mxu1 }
 0x15e   :  { %v1173_v35 = vadd.f32 %v2443_v18, %v784_v33  ;;  %v1205_v36 = vadd.f32 %v2443_v18, %v912_v34 }
 0x15f   :  { %v786_v37 = vpop.f32.mrf.mxu0  ;;  %v914_v38 = vpop.f32.mrf.mxu1 }
 0x160   :  { %v1237_v41 = vmax.f32 %v1173_v35, 0.0  ;;  %v1269_v42 = vmax.f32 %v1205_v36, 0.0 }
 0x161   :  { %v789_v43 = vpop.f32.mrf.mxu0  ;;  %v917_v44 = vpop.f32.mrf.mxu1 }
 0x162   :  { %v1869_v45 = vpack.c.bf16 %v1237_v41, %v1236_v39  ;;  %v1949_v46 = vpack.c.bf16 %v1269_v42, %v1268_v40  ;;  %v1174_v49 = vadd.f32 %v2443_v18, %v789_v43  ;;  %v1206_v50 = vadd.f32 %v2443_v18, %v917_v44 }
 0x163   :  { %v791_v47 = vpop.f32.mrf.mxu0  ;;  %v919_v48 = vpop.f32.mrf.mxu1 }
 0x164   :  { %1981 = vst [vmem:[%s2608_s3 + $0x58] sm:$0xff] %v1869_v45   ;;  %1997 = vst [vmem:[%s2608_s3 + $0xd8] sm:$0xff] %v1949_v46   ;;  %v1238_v57 = vmax.f32 %v1174_v49, 0.0  ;;  %v1270_v58 = vmax.f32 %v1206_v50, 0.0 }
 0x165   :  { %v792_v51 = vpop.f32.mrf.mxu0  ;;  %v920_v52 = vpop.f32.mrf.mxu1 }
 0x166   :  { %v1175_v53 = vadd.f32 %v2443_v18, %v792_v51  ;;  %v1207_v54 = vadd.f32 %v2443_v18, %v920_v52 }
 0x167   :  { %v794_v55 = vpop.f32.mrf.mxu0  ;;  %v922_v56 = vpop.f32.mrf.mxu1 }
 0x168   :  { %v1239_v59 = vmax.f32 %v1175_v53, 0.0  ;;  %v1271_v60 = vmax.f32 %v1207_v54, 0.0 }
 0x169   :  { %v797_v61 = vpop.f32.mrf.mxu0  ;;  %v925_v62 = vpop.f32.mrf.mxu1 }
 0x16a   :  { %v1874_v63 = vpack.c.bf16 %v1239_v59, %v1238_v57  ;;  %v1954_v0 = vpack.c.bf16 %v1271_v60, %v1270_v58  ;;  %v1176_v3 = vadd.f32 %v2443_v18, %v797_v61  ;;  %v1208_v4 = vadd.f32 %v2443_v18, %v925_v62 }
 0x16b   :  { %v799_v1 = vpop.f32.mrf.mxu0  ;;  %v927_v2 = vpop.f32.mrf.mxu1 }
 0x16c   :  { %1982 = vst [vmem:[%s2608_s3 + $0x60] sm:$0xff] %v1874_v63   ;;  %1998 = vst [vmem:[%s2608_s3 + $0xe0] sm:$0xff] %v1954_v0   ;;  %v1240_v11 = vmax.f32 %v1176_v3, 0.0  ;;  %v1272_v12 = vmax.f32 %v1208_v4, 0.0 }
 0x16d   :  { %v800_v5 = vpop.f32.mrf.mxu0  ;;  %v928_v6 = vpop.f32.mrf.mxu1 }
 0x16e   :  { %v1177_v7 = vadd.f32 %v2443_v18, %v800_v5  ;;  %v1209_v8 = vadd.f32 %v2443_v18, %v928_v6 }
 0x16f   :  { %v802_v9 = vpop.f32.mrf.mxu0  ;;  %v930_v10 = vpop.f32.mrf.mxu1 }
 0x170   :  { %v1241_v13 = vmax.f32 %v1177_v7, 0.0  ;;  %v1273_v14 = vmax.f32 %v1209_v8, 0.0 }
 0x171   :  { %v805_v15 = vpop.f32.mrf.mxu0  ;;  %v933_v16 = vpop.f32.mrf.mxu1 }
 0x172   :  { %v1879_v17 = vpack.c.bf16 %v1241_v13, %v1240_v11  ;;  %v1959_v19 = vpack.c.bf16 %v1273_v14, %v1272_v12  ;;  %v1178_v22 = vadd.f32 %v2443_v18, %v805_v15  ;;  %v1210_v23 = vadd.f32 %v2443_v18, %v933_v16 }
 0x173   :  { %v807_v20 = vpop.f32.mrf.mxu0  ;;  %v935_v21 = vpop.f32.mrf.mxu1 }
 0x174   :  { %1983 = vst [vmem:[%s2608_s3 + $0x68] sm:$0xff] %v1879_v17   ;;  %1999 = vst [vmem:[%s2608_s3 + $0xe8] sm:$0xff] %v1959_v19   ;;  %v1242_v30 = vmax.f32 %v1178_v22, 0.0  ;;  %v1274_v31 = vmax.f32 %v1210_v23, 0.0 }
 0x175   :  { %v808_v24 = vpop.f32.mrf.mxu0  ;;  %v936_v25 = vpop.f32.mrf.mxu1 }
 0x176   :  { %v1179_v26 = vadd.f32 %v2443_v18, %v808_v24  ;;  %v1211_v27 = vadd.f32 %v2443_v18, %v936_v25 }
 0x177   :  { %v810_v28 = vpop.f32.mrf.mxu0  ;;  %v938_v29 = vpop.f32.mrf.mxu1 }
 0x178   :  { %v1243_v32 = vmax.f32 %v1179_v26, 0.0  ;;  %v1275_v33 = vmax.f32 %v1211_v27, 0.0 }
 0x179   :  { %v813_v34 = vpop.f32.mrf.mxu0  ;;  %v941_v35 = vpop.f32.mrf.mxu1 }
 0x17a   :  { %v1884_v36 = vpack.c.bf16 %v1243_v32, %v1242_v30  ;;  %v1964_v37 = vpack.c.bf16 %v1275_v33, %v1274_v31  ;;  %v1180_v40 = vadd.f32 %v2443_v18, %v813_v34  ;;  %v1212_v41 = vadd.f32 %v2443_v18, %v941_v35 }
 0x17b   :  { %v815_v38 = vpop.f32.mrf.mxu0  ;;  %v943_v39 = vpop.f32.mrf.mxu1 }
 0x17c   :  { %1984 = vst [vmem:[%s2608_s3 + $0x70] sm:$0xff] %v1884_v36   ;;  %2000 = vst [vmem:[%s2608_s3 + $0xf0] sm:$0xff] %v1964_v37   ;;  %v1244_v48 = vmax.f32 %v1180_v40, 0.0  ;;  %v1276_v49 = vmax.f32 %v1212_v41, 0.0 }
 0x17d   :  { %v816_v42 = vpop.f32.mrf.mxu0  ;;  %v944_v43 = vpop.f32.mrf.mxu1 }
 0x17e   :  { %v1181_v44 = vadd.f32 %v2443_v18, %v816_v42  ;;  %v1213_v45 = vadd.f32 %v2443_v18, %v944_v43 }
 0x17f   :  { %v818_v46 = vpop.f32.mrf.mxu0  ;;  %v946_v47 = vpop.f32.mrf.mxu1 }
 0x180   :  { %v1245_v50 = vmax.f32 %v1181_v44, 0.0  ;;  %v1277_v51 = vmax.f32 %v1213_v45, 0.0 }
 0x182   :  { %v1889_v52 = vpack.c.bf16 %v1245_v50, %v1244_v48  ;;  %v1969_v53 = vpack.c.bf16 %v1277_v51, %v1276_v49 }
 0x184   :  { %1985 = vst [vmem:[%s2608_s3 + $0x78] sm:$0xff] %v1889_v52   ;;  %2001 = vst [vmem:[%s2608_s3 + $0xf8] sm:$0xff] %v1969_v53  }

// kernel: _lambda_.22
= control target key start
LH: loop header
LB: loop body
LE: loop exit
PB: predicated region body
PF: predicated region fallthrough
CT: control target
= control target key end

     0   :  { %s885_s0 = inlined_call_operand.vmem [shape: bf16[128,128], index: 0, kind: input, shape index: {}]   ;;  %s886_s1 = inlined_call_operand.vmem [shape: bf16[128,128], index: 1, kind: input, shape index: {}]   ;;  %s887_s2 = inlined_call_operand.vmem [shape: bf16[128,128], index: 2, kind: input, shape index: {}]   ;;  %s888_s3 = inlined_call_operand.vmem [shape: bf16[128,128], index: 3, kind: input, shape index: {}]   ;;  %s889_s4 = inlined_call_operand.vmem [shape: bf16[128,128], index: 4, kind: input, shape index: {}]   ;;  %s890_s5 = inlined_call_operand.vmem [shape: bf16[128,128], index: 5, kind: input, shape index: {}]   ;;  %s891_s6 = inlined_call_operand.vmem [shape: bf16[128,128], index: 6, kind: input, shape index: {}]   ;;  %s892_s7 = inlined_call_operand.vmem [shape: bf16[128,128], index: 7, kind: input, shape index: {}]   ;;  %s893_s8 = inlined_call_operand.vmem [shape: bf16[128,128], index: 8, kind: input, shape index: {}]   ;;  %s894_s9 = inlined_call_operand.vmem [shape: bf16[128,128], index: 9, kind: output, shape index: {}]  }
   0x1   :  { %v32_v0 = vld [vmem:[%s885_s0] sm:$0xf]  ;;  %v33_v1 = vld [vmem:[%s885_s0 + $0x4] sm:$0xf]  ;;  %v34_v18 = vld [vmem:[%s885_s0 + $0x8] sm:$0xf] }
   0x2   :  { %v48_v2 = vld [vmem:[%s886_s1] sm:$0xf]  ;;  %v49_v3 = vld [vmem:[%s886_s1 + $0x4] sm:$0xf]  ;;  %v35_v19 = vld [vmem:[%s885_s0 + $0xc] sm:$0xf] }
   0x3   :  { %v64_v4 = vld [vmem:[%s887_s2] sm:$0xf]  ;;  %v65_v5 = vld [vmem:[%s887_s2 + $0x4] sm:$0xf]  ;;  %v176_v6 = vmax.bf16 %v48_v2, %v32_v0  ;;  %v177_v8 = vmax.bf16 %v49_v3, %v33_v1  ;;  %v50_v20 = vld [vmem:[%s886_s1 + $0x8] sm:$0xf] }
   0x4   :  { %v80_v7 = vld [vmem:[%s888_s3] sm:$0xf]  ;;  %v81_v9 = vld [vmem:[%s888_s3 + $0x4] sm:$0xf]  ;;  %v51_v22 = vld [vmem:[%s886_s1 + $0xc] sm:$0xf]  ;;  %v178_v25 = vmax.bf16 %v50_v20, %v34_v18 }
   0x5   :  { %v192_v10 = vmax.bf16 %v176_v6, %v64_v4  ;;  %v96_v11 = vld [vmem:[%s889_s4] sm:$0xf]  ;;  %v193_v12 = vmax.bf16 %v177_v8, %v65_v5  ;;  %v97_v13 = vld [vmem:[%s889_s4 + $0x4] sm:$0xf]  ;;  %v66_v23 = vld [vmem:[%s887_s2 + $0x8] sm:$0xf]  ;;  %v179_v29 = vmax.bf16 %v51_v22, %v35_v19 }
   0x6   :  { %v112_v14 = vld [vmem:[%s890_s5] sm:$0xf]  ;;  %v113_v15 = vld [vmem:[%s890_s5 + $0x4] sm:$0xf]  ;;  %v67_v24 = vld [vmem:[%s887_s2 + $0xc] sm:$0xf]  ;;  %v194_v34 = vmax.bf16 %v178_v25, %v66_v23 }
   0x7   :  { %v208_v16 = vmax.bf16 %v192_v10, %v80_v7  ;;  %v209_v17 = vmax.bf16 %v193_v12, %v81_v9  ;;  %v128_v26 = vld [vmem:[%s891_s6] sm:$0xf]  ;;  %v82_v28 = vld [vmem:[%s888_s3 + $0x8] sm:$0xf]  ;;  %v129_v30 = vld [vmem:[%s891_s6 + $0x4] sm:$0xf]  ;;  %v195_v39 = vmax.bf16 %v179_v29, %v67_v24 }
   0x8   :  { %v144_v31 = vld [vmem:[%s892_s7] sm:$0xf]  ;;  %v83_v33 = vld [vmem:[%s888_s3 + $0xc] sm:$0xf]  ;;  %v145_v35 = vld [vmem:[%s892_s7 + $0x4] sm:$0xf]  ;;  %v210_v45 = vmax.bf16 %v194_v34, %v82_v28 }
   0x9   :  { %v224_v21 = vmax.bf16 %v208_v16, %v96_v11  ;;  %v225_v27 = vmax.bf16 %v209_v17, %v97_v13  ;;  %v160_v36 = vld [vmem:[%s893_s8] sm:$0xf]  ;;  %v98_v38 = vld [vmem:[%s889_s4 + $0x8] sm:$0xf]  ;;  %v161_v40 = vld [vmem:[%s893_s8 + $0x4] sm:$0xf]  ;;  %v211_v47 = vmax.bf16 %v195_v39, %v83_v33 }
   0xa   :  { %v99_v42 = vld [vmem:[%s889_s4 + $0xc] sm:$0xf]  ;;  %v114_v43 = vld [vmem:[%s890_s5 + $0x8] sm:$0xf]  ;;  %v36_v48 = vld [vmem:[%s885_s0 + $0x10] sm:$0xf]  ;;  %v226_v52 = vmax.bf16 %v210_v45, %v98_v38 }
   0xb   :  { %v240_v32 = vmax.bf16 %v224_v21, %v112_v14  ;;  %v241_v37 = vmax.bf16 %v225_v27, %v113_v15  ;;  %v115_v44 = vld [vmem:[%s890_s5 + $0xc] sm:$0xf]  ;;  %v37_v49 = vld [vmem:[%s885_s0 + $0x14] sm:$0xf]  ;;  %v52_v50 = vld [vmem:[%s886_s1 + $0x10] sm:$0xf]  ;;  %v227_v59 = vmax.bf16 %v211_v47, %v99_v42 }
   0xc   :  { %v53_v53 = vld [vmem:[%s886_s1 + $0x14] sm:$0xf]  ;;  %v68_v54 = vld [vmem:[%s887_s2 + $0x10] sm:$0xf]  ;;  %v180_v56 = vmax.bf16 %v52_v50, %v36_v48  ;;  %v130_v58 = vld [vmem:[%s891_s6 + $0x8] sm:$0xf]  ;;  %v242_v1 = vmax.bf16 %v226_v52, %v114_v43 }
   0xd   :  { %v256_v41 = vmax.bf16 %v240_v32, %v128_v26  ;;  %v257_v46 = vmax.bf16 %v241_v37, %v129_v30  ;;  %v69_v55 = vld [vmem:[%s887_s2 + $0x14] sm:$0xf]  ;;  %v84_v60 = vld [vmem:[%s888_s3 + $0x10] sm:$0xf]  ;;  %v181_v61 = vmax.bf16 %v53_v53, %v37_v49  ;;  %v131_v63 = vld [vmem:[%s891_s6 + $0xc] sm:$0xf]  ;;  %v243_v7 = vmax.bf16 %v227_v59, %v115_v44 }
   0xe   :  { %v146_v0 = vld [vmem:[%s892_s7 + $0x8] sm:$0xf]  ;;  %v85_v2 = vld [vmem:[%s888_s3 + $0x14] sm:$0xf]  ;;  %v196_v3 = vmax.bf16 %v180_v56, %v68_v54  ;;  %v147_v5 = vld [vmem:[%s892_s7 + $0xc] sm:$0xf]  ;;  %v258_v11 = vmax.bf16 %v242_v1, %v130_v58 }
   0xf   :  { %v272_v51 = vmax.bf16 %v256_v41, %v144_v31  ;;  %v273_v57 = vmax.bf16 %v257_v46, %v145_v35  ;;  %v162_v6 = vld [vmem:[%s893_s8 + $0x8] sm:$0xf]  ;;  %v100_v8 = vld [vmem:[%s889_s4 + $0x10] sm:$0xf]  ;;  %v197_v9 = vmax.bf16 %v181_v61, %v69_v55  ;;  %v163_v10 = vld [vmem:[%s893_s8 + $0xc] sm:$0xf]  ;;  %v259_v17 = vmax.bf16 %v243_v7, %v131_v63 }
  0x10   :  { %v101_v12 = vld [vmem:[%s889_s4 + $0x14] sm:$0xf]  ;;  %v116_v13 = vld [vmem:[%s890_s5 + $0x10] sm:$0xf]  ;;  %v212_v15 = vmax.bf16 %v196_v3, %v84_v60  ;;  %v38_v19 = vld [vmem:[%s885_s0 + $0x18] sm:$0xf]  ;;  %v274_v22 = vmax.bf16 %v258_v11, %v146_v0 }
  0x11   :  { %v288_v62 = vmax.bf16 %v272_v51, %v160_v36  ;;  %v289_v4 = vmax.bf16 %v273_v57, %v161_v40  ;;  %v117_v14 = vld [vmem:[%s890_s5 + $0x14] sm:$0xf]  ;;  %v213_v18 = vmax.bf16 %v197_v9, %v85_v2  ;;  %v39_v20 = vld [vmem:[%s885_s0 + $0x1c] sm:$0xf]  ;;  %v54_v21 = vld [vmem:[%s886_s1 + $0x18] sm:$0xf]  ;;  %v275_v28 = vmax.bf16 %v259_v17, %v147_v5 }
  0x12   :  { %v228_v23 = vmax.bf16 %v212_v15, %v100_v8  ;;  %v55_v24 = vld [vmem:[%s886_s1 + $0x1c] sm:$0xf]  ;;  %v70_v25 = vld [vmem:[%s887_s2 + $0x18] sm:$0xf]  ;;  %v182_v27 = vmax.bf16 %v54_v21, %v38_v19  ;;  %v132_v29 = vld [vmem:[%s891_s6 + $0x10] sm:$0xf]  ;;  %v290_v33 = vmax.bf16 %v274_v22, %v162_v6 }
  0x13   :  { %v364_v16 = vcombine.low %v288_v62, %v289_v4  ;;  %v71_v26 = vld [vmem:[%s887_s2 + $0x1c] sm:$0xf]  ;;  %v229_v30 = vmax.bf16 %v213_v18, %v101_v12  ;;  %v86_v31 = vld [vmem:[%s888_s3 + $0x18] sm:$0xf]  ;;  %v183_v32 = vmax.bf16 %v55_v24, %v39_v20  ;;  %v133_v34 = vld [vmem:[%s891_s6 + $0x14] sm:$0xf]  ;;  %v291_v39 = vmax.bf16 %v275_v28, %v163_v10 }
  0x14   :  { %v148_v35 = vld [vmem:[%s892_s7 + $0x10] sm:$0xf]  ;;  %v244_v36 = vmax.bf16 %v228_v23, %v116_v13  ;;  %v87_v37 = vld [vmem:[%s888_s3 + $0x1c] sm:$0xf]  ;;  %v198_v38 = vmax.bf16 %v182_v27, %v70_v25  ;;  %v149_v40 = vld [vmem:[%s892_s7 + $0x14] sm:$0xf] }
  0x15   :  { %328 = vst [vmem:[%s894_s9] sm:$0xff] %v364_v16   ;;  %v164_v41 = vld [vmem:[%s893_s8 + $0x10] sm:$0xf]  ;;  %v245_v42 = vmax.bf16 %v229_v30, %v117_v14  ;;  %v102_v43 = vld [vmem:[%s889_s4 + $0x18] sm:$0xf]  ;;  %v199_v44 = vmax.bf16 %v183_v32, %v71_v26  ;;  %v165_v45 = vld [vmem:[%s893_s8 + $0x14] sm:$0xf]  ;;  %v365_v51 = vcombine.low %v290_v33, %v291_v39 }
  0x16   :  { %v260_v46 = vmax.bf16 %v244_v36, %v132_v29  ;;  %v103_v47 = vld [vmem:[%s889_s4 + $0x1c] sm:$0xf]  ;;  %v118_v48 = vld [vmem:[%s890_s5 + $0x18] sm:$0xf]  ;;  %v214_v50 = vmax.bf16 %v198_v38, %v86_v31  ;;  %v40_v54 = vld [vmem:[%s885_s0 + $0x20] sm:$0xf] }
  0x17   :  { %v119_v49 = vld [vmem:[%s890_s5 + $0x1c] sm:$0xf]  ;;  %v261_v52 = vmax.bf16 %v245_v42, %v133_v34  ;;  %v215_v53 = vmax.bf16 %v199_v44, %v87_v37  ;;  %v41_v55 = vld [vmem:[%s885_s0 + $0x24] sm:$0xf]  ;;  %v56_v56 = vld [vmem:[%s886_s1 + $0x20] sm:$0xf] }
  0x18   :  { %v276_v57 = vmax.bf16 %v260_v46, %v148_v35  ;;  %v230_v58 = vmax.bf16 %v214_v50, %v102_v43  ;;  %v57_v59 = vld [vmem:[%s886_s1 + $0x24] sm:$0xf]  ;;  %v72_v60 = vld [vmem:[%s887_s2 + $0x20] sm:$0xf]  ;;  %v184_v62 = vmax.bf16 %v56_v56, %v40_v54  ;;  %366 = vst [vmem:[%s894_s9 + $0x8] sm:$0xff] %v365_v51  }
  0x19   :  { %v73_v61 = vld [vmem:[%s887_s2 + $0x24] sm:$0xf]  ;;  %v277_v63 = vmax.bf16 %v261_v52, %v149_v40  ;;  %v134_v0 = vld [vmem:[%s891_s6 + $0x18] sm:$0xf]  ;;  %v231_v1 = vmax.bf16 %v215_v53, %v103_v47  ;;  %v88_v2 = vld [vmem:[%s888_s3 + $0x20] sm:$0xf]  ;;  %v185_v3 = vmax.bf16 %v57_v59, %v41_v55 }
  0x1a   :  { %v292_v4 = vmax.bf16 %v276_v57, %v164_v41  ;;  %v135_v5 = vld [vmem:[%s891_s6 + $0x1c] sm:$0xf]  ;;  %v150_v6 = vld [vmem:[%s892_s7 + $0x18] sm:$0xf]  ;;  %v246_v7 = vmax.bf16 %v230_v58, %v118_v48  ;;  %v89_v8 = vld [vmem:[%s888_s3 + $0x24] sm:$0xf]  ;;  %v200_v9 = vmax.bf16 %v184_v62, %v72_v60 }
  0x1b   :  { %v293_v10 = vmax.bf16 %v277_v63, %v165_v45  ;;  %v151_v11 = vld [vmem:[%s892_s7 + $0x1c] sm:$0xf]  ;;  %v166_v12 = vld [vmem:[%s893_s8 + $0x18] sm:$0xf]  ;;  %v247_v13 = vmax.bf16 %v231_v1, %v119_v49  ;;  %v104_v14 = vld [vmem:[%s889_s4 + $0x20] sm:$0xf]  ;;  %v201_v15 = vmax.bf16 %v185_v3, %v73_v61 }
  0x1c   :  { %v167_v16 = vld [vmem:[%s893_s8 + $0x1c] sm:$0xf]  ;;  %v262_v17 = vmax.bf16 %v246_v7, %v134_v0  ;;  %v105_v18 = vld [vmem:[%s889_s4 + $0x24] sm:$0xf]  ;;  %v120_v19 = vld [vmem:[%s890_s5 + $0x20] sm:$0xf]  ;;  %v216_v21 = vmax.bf16 %v200_v9, %v88_v2 }
  0x1d   :  { %v121_v20 = vld [vmem:[%s890_s5 + $0x24] sm:$0xf]  ;;  %v367_v22 = vcombine.low %v292_v4, %v293_v10  ;;  %v263_v23 = vmax.bf16 %v247_v13, %v135_v5  ;;  %v217_v24 = vmax.bf16 %v201_v15, %v89_v8  ;;  %v42_v25 = vld [vmem:[%s885_s0 + $0x28] sm:$0xf]  ;;  %v43_v26 = vld [vmem:[%s885_s0 + $0x2c] sm:$0xf] }
  0x1e   :  { %v58_v27 = vld [vmem:[%s886_s1 + $0x28] sm:$0xf]  ;;  %v278_v28 = vmax.bf16 %v262_v17, %v150_v6  ;;  %v232_v29 = vmax.bf16 %v216_v21, %v104_v14  ;;  %v59_v30 = vld [vmem:[%s886_s1 + $0x2c] sm:$0xf]  ;;  %v136_v35 = vld [vmem:[%s891_s6 + $0x20] sm:$0xf] }
  0x1f   :  { %v74_v31 = vld [vmem:[%s887_s2 + $0x28] sm:$0xf]  ;;  %v75_v32 = vld [vmem:[%s887_s2 + $0x2c] sm:$0xf]  ;;  %v186_v33 = vmax.bf16 %v58_v27, %v42_v25  ;;  %368 = vst [vmem:[%s894_s9 + $0x10] sm:$0xff] %v367_v22   ;;  %v279_v34 = vmax.bf16 %v263_v23, %v151_v11  ;;  %v233_v36 = vmax.bf16 %v217_v24, %v105_v18  ;;  %v187_v38 = vmax.bf16 %v59_v30, %v43_v26 }
  0x20   :  { %v90_v37 = vld [vmem:[%s888_s3 + $0x28] sm:$0xf]  ;;  %v294_v39 = vmax.bf16 %v278_v28, %v166_v12  ;;  %v137_v40 = vld [vmem:[%s891_s6 + $0x24] sm:$0xf]  ;;  %v152_v41 = vld [vmem:[%s892_s7 + $0x20] sm:$0xf]  ;;  %v248_v42 = vmax.bf16 %v232_v29, %v120_v19 }
  0x21   :  { %v91_v43 = vld [vmem:[%s888_s3 + $0x2c] sm:$0xf]  ;;  %v202_v44 = vmax.bf16 %v186_v33, %v74_v31  ;;  %v295_v45 = vmax.bf16 %v279_v34, %v167_v16  ;;  %v153_v46 = vld [vmem:[%s892_s7 + $0x24] sm:$0xf]  ;;  %v168_v47 = vld [vmem:[%s893_s8 + $0x20] sm:$0xf]  ;;  %v249_v48 = vmax.bf16 %v233_v36, %v121_v20  ;;  %v203_v50 = vmax.bf16 %v187_v38, %v75_v32 }
  0x22   :  { %v106_v49 = vld [vmem:[%s889_s4 + $0x28] sm:$0xf]  ;;  %v169_v51 = vld [vmem:[%s893_s8 + $0x24] sm:$0xf]  ;;  %v264_v52 = vmax.bf16 %v248_v42, %v136_v35  ;;  %v107_v53 = vld [vmem:[%s889_s4 + $0x2c] sm:$0xf] }
  0x23   :  { %v122_v54 = vld [vmem:[%s890_s5 + $0x28] sm:$0xf]  ;;  %v123_v55 = vld [vmem:[%s890_s5 + $0x2c] sm:$0xf]  ;;  %v218_v56 = vmax.bf16 %v202_v44, %v90_v37  ;;  %v369_v57 = vcombine.low %v294_v39, %v295_v45  ;;  %v265_v58 = vmax.bf16 %v249_v48, %v137_v40  ;;  %v219_v59 = vmax.bf16 %v203_v50, %v91_v43  ;;  %v44_v60 = vld [vmem:[%s885_s0 + $0x30] sm:$0xf] }
  0x24   :  { %v45_v61 = vld [vmem:[%s885_s0 + $0x34] sm:$0xf]  ;;  %v60_v62 = vld [vmem:[%s886_s1 + $0x30] sm:$0xf]  ;;  %v280_v63 = vmax.bf16 %v264_v52, %v152_v41  ;;  %v138_v6 = vld [vmem:[%s891_s6 + $0x28] sm:$0xf] }
  0x25   :  { %v234_v0 = vmax.bf16 %v218_v56, %v106_v49  ;;  %v61_v1 = vld [vmem:[%s886_s1 + $0x34] sm:$0xf]  ;;  %v76_v2 = vld [vmem:[%s887_s2 + $0x30] sm:$0xf]  ;;  %v188_v4 = vmax.bf16 %v60_v62, %v44_v60  ;;  %370 = vst [vmem:[%s894_s9 + $0x18] sm:$0xff] %v369_v57   ;;  %v281_v5 = vmax.bf16 %v265_v58, %v153_v46  ;;  %v235_v7 = vmax.bf16 %v219_v59, %v107_v53 }
  0x26   :  { %v77_v3 = vld [vmem:[%s887_s2 + $0x34] sm:$0xf]  ;;  %v92_v8 = vld [vmem:[%s888_s3 + $0x30] sm:$0xf]  ;;  %v189_v9 = vmax.bf16 %v61_v1, %v45_v61  ;;  %v296_v10 = vmax.bf16 %v280_v63, %v168_v47  ;;  %v139_v11 = vld [vmem:[%s891_s6 + $0x2c] sm:$0xf] }
  0x27   :  { %v154_v12 = vld [vmem:[%s892_s7 + $0x28] sm:$0xf]  ;;  %v250_v13 = vmax.bf16 %v234_v0, %v122_v54  ;;  %v93_v14 = vld [vmem:[%s888_s3 + $0x34] sm:$0xf]  ;;  %v204_v15 = vmax.bf16 %v188_v4, %v76_v2  ;;  %v297_v16 = vmax.bf16 %v281_v5, %v169_v51  ;;  %v155_v17 = vld [vmem:[%s892_s7 + $0x2c] sm:$0xf]  ;;  %v251_v19 = vmax.bf16 %v235_v7, %v123_v55 }
  0x28   :  { %v170_v18 = vld [vmem:[%s893_s8 + $0x28] sm:$0xf]  ;;  %v108_v20 = vld [vmem:[%s889_s4 + $0x30] sm:$0xf]  ;;  %v205_v21 = vmax.bf16 %v189_v9, %v77_v3  ;;  %v171_v22 = vld [vmem:[%s893_s8 + $0x2c] sm:$0xf] }
  0x29   :  { %v266_v23 = vmax.bf16 %v250_v13, %v138_v6  ;;  %v109_v24 = vld [vmem:[%s889_s4 + $0x34] sm:$0xf]  ;;  %v124_v25 = vld [vmem:[%s890_s5 + $0x30] sm:$0xf]  ;;  %v220_v27 = vmax.bf16 %v204_v15, %v92_v8  ;;  %v371_v28 = vcombine.low %v296_v10, %v297_v16  ;;  %v267_v29 = vmax.bf16 %v251_v19, %v139_v11  ;;  %v46_v31 = vld [vmem:[%s885_s0 + $0x38] sm:$0xf] }
  0x2a   :  { %v125_v26 = vld [vmem:[%s890_s5 + $0x34] sm:$0xf]  ;;  %v221_v30 = vmax.bf16 %v205_v21, %v93_v14  ;;  %v47_v32 = vld [vmem:[%s885_s0 + $0x3c] sm:$0xf]  ;;  %v62_v33 = vld [vmem:[%s886_s1 + $0x38] sm:$0xf] }
  0x2b   :  { %v282_v34 = vmax.bf16 %v266_v23, %v154_v12  ;;  %v236_v35 = vmax.bf16 %v220_v27, %v108_v20  ;;  %v63_v36 = vld [vmem:[%s886_s1 + $0x3c] sm:$0xf]  ;;  %v78_v37 = vld [vmem:[%s887_s2 + $0x38] sm:$0xf]  ;;  %v190_v39 = vmax.bf16 %v62_v33, %v46_v31  ;;  %372 = vst [vmem:[%s894_s9 + $0x20] sm:$0xff] %v371_v28   ;;  %v283_v40 = vmax.bf16 %v267_v29, %v155_v17 }
  0x2c   :  { %v79_v38 = vld [vmem:[%s887_s2 + $0x3c] sm:$0xf]  ;;  %v140_v41 = vld [vmem:[%s891_s6 + $0x30] sm:$0xf]  ;;  %v237_v42 = vmax.bf16 %v221_v30, %v109_v24  ;;  %v94_v43 = vld [vmem:[%s888_s3 + $0x38] sm:$0xf]  ;;  %v191_v44 = vmax.bf16 %v63_v36, %v47_v32 }
  0x2d   :  { %v298_v45 = vmax.bf16 %v282_v34, %v170_v18  ;;  %v141_v46 = vld [vmem:[%s891_s6 + $0x34] sm:$0xf]  ;;  %v252_v47 = vmax.bf16 %v236_v35, %v124_v25  ;;  %v95_v48 = vld [vmem:[%s888_s3 + $0x3c] sm:$0xf]  ;;  %v206_v49 = vmax.bf16 %v190_v39, %v78_v37  ;;  %v299_v50 = vmax.bf16 %v283_v40, %v171_v22  ;;  %v156_v51 = vld [vmem:[%s892_s7 + $0x30] sm:$0xf] }
  0x2e   :  { %v253_v52 = vmax.bf16 %v237_v42, %v125_v26  ;;  %v110_v53 = vld [vmem:[%s889_s4 + $0x38] sm:$0xf]  ;;  %v207_v54 = vmax.bf16 %v191_v44, %v79_v38  ;;  %v157_v55 = vld [vmem:[%s892_s7 + $0x34] sm:$0xf]  ;;  %v111_v57 = vld [vmem:[%s889_s4 + $0x3c] sm:$0xf] }
  0x2f   :  { %v268_v56 = vmax.bf16 %v252_v47, %v140_v41  ;;  %v222_v58 = vmax.bf16 %v206_v49, %v94_v43  ;;  %v373_v59 = vcombine.low %v298_v45, %v299_v50  ;;  %v172_v60 = vld [vmem:[%s893_s8 + $0x30] sm:$0xf]  ;;  %v126_v62 = vld [vmem:[%s890_s5 + $0x38] sm:$0xf]  ;;  %v173_v0 = vld [vmem:[%s893_s8 + $0x34] sm:$0xf] }
  0x30   :  { %v269_v61 = vmax.bf16 %v253_v52, %v141_v46  ;;  %v223_v63 = vmax.bf16 %v207_v54, %v95_v48  ;;  %v127_v2 = vld [vmem:[%s890_s5 + $0x3c] sm:$0xf]  ;;  %v142_v5 = vld [vmem:[%s891_s6 + $0x38] sm:$0xf] }
  0x31   :  { %v284_v1 = vmax.bf16 %v268_v56, %v156_v51  ;;  %v238_v3 = vmax.bf16 %v222_v58, %v110_v53  ;;  %374 = vst [vmem:[%s894_s9 + $0x28] sm:$0xff] %v373_v59   ;;  %v143_v8 = vld [vmem:[%s891_s6 + $0x3c] sm:$0xf]  ;;  %v158_v11 = vld [vmem:[%s892_s7 + $0x38] sm:$0xf] }
  0x32   :  { %v285_v4 = vmax.bf16 %v269_v61, %v157_v55  ;;  %v239_v6 = vmax.bf16 %v223_v63, %v111_v57  ;;  %v159_v13 = vld [vmem:[%s892_s7 + $0x3c] sm:$0xf]  ;;  %v174_v16 = vld [vmem:[%s893_s8 + $0x38] sm:$0xf] }
  0x33   :  { %v300_v7 = vmax.bf16 %v284_v1, %v172_v60  ;;  %v254_v9 = vmax.bf16 %v238_v3, %v126_v62  ;;  %v175_v18 = vld [vmem:[%s893_s8 + $0x3c] sm:$0xf] }
  0x34   :  { %v301_v10 = vmax.bf16 %v285_v4, %v173_v0  ;;  %v255_v12 = vmax.bf16 %v239_v6, %v127_v2 }
  0x35   :  { %v270_v14 = vmax.bf16 %v254_v9, %v142_v5 }
  0x36   :  { %v375_v15 = vcombine.low %v300_v7, %v301_v10  ;;  %v271_v17 = vmax.bf16 %v255_v12, %v143_v8 }
  0x37   :  { %v286_v19 = vmax.bf16 %v270_v14, %v158_v11 }
  0x38   :  { %376 = vst [vmem:[%s894_s9 + $0x30] sm:$0xff] %v375_v15   ;;  %v287_v20 = vmax.bf16 %v271_v17, %v159_v13 }
  0x39   :  { %v302_v21 = vmax.bf16 %v286_v19, %v174_v16 }
  0x3a   :  { %v303_v22 = vmax.bf16 %v287_v20, %v175_v18 }
  0x3c   :  { %v377_v23 = vcombine.low %v302_v21, %v303_v22 }
  0x3e   :  { %378 = vst [vmem:[%s894_s9 + $0x38] sm:$0xff] %v377_v23  }

// kernel: _lambda_.23
= control target key start
LH: loop header
LB: loop body
LE: loop exit
PB: predicated region body
PF: predicated region fallthrough
CT: control target
= control target key end

     0   :  { %s721_s1 = inlined_call_operand.vmem [shape: bf16[128,128], index: 1, kind: input, shape index: {}]   ;;  %s722_s0 = inlined_call_operand.vmem [shape: bf16[128,128], index: 0, kind: input, shape index: {}]   ;;  %s723_s2 = inlined_call_operand.vmem [shape: f32[1,128], index: 2, kind: input, shape index: {}]   ;;  %s724_s3 = inlined_call_operand.vmem [shape: bf16[128,128], index: 3, kind: output, shape index: {}]  }
   0x1   :  { %v610_v0 = vld [vmem:[%s721_s1 + $0x38] sm:$0xff]   ;;  %v611_v1 = vld [vmem:[%s721_s1 + $0x30] sm:$0xff]   ;;  %v612_v2 = vld [vmem:[%s721_s1 + $0x28] sm:$0xff]  }
   0x2   :  { %562 = vmatprep.subr.bf16.mxu0 %v610_v0  ;;  %594 = vmatprep.subr.bf16.mxu1 %v610_v0  ;;  %v613_v3 = vld [vmem:[%s721_s1 + $0x20] sm:$0xff]   ;;  %v614_v6 = vld [vmem:[%s721_s1 + $0x18] sm:$0xff]   ;;  %v615_v7 = vld [vmem:[%s721_s1 + $0x10] sm:$0xff]  }
   0x3   :  { %563 = vmatpush3.bf16.msra.mxu0 %v610_v0  ;;  %602 = vmatpush3.bf16.msra.mxu1 %v610_v0  ;;  %v618_v4 = vld [vmem:[%s722_s0] sm:$0xff]   ;;  %v616_v8 = vld [vmem:[%s721_s1 + $0x8] sm:$0xff]   ;;  %v622_v12 = vld [vmem:[%s722_s0 + $0x10] sm:$0xff]  }
   0x4   :  { %564 = vmatprep.subr.bf16.mxu0 %v611_v1  ;;  %595 = vmatprep.subr.bf16.mxu1 %v611_v1  ;;  %v619_v5 = vld [vmem:[%s722_s0 + $0x20] sm:$0xff]   ;;  %v620_v10 = vld [vmem:[%s722_s0 + $0x8] sm:$0xff]   ;;  %v623_v13 = vld [vmem:[%s722_s0 + $0x30] sm:$0xff]  }
   0x5   :  { %578 = vmatprep.mubr.bf16.mxu0 %v618_v4  ;;  %586 = vmatprep.mubr.bf16.mxu1 %v619_v5  ;;  %v617_v9 = vld [vmem:[%s721_s1] sm:$0xff]   ;;  %v621_v11 = vld [vmem:[%s722_s0 + $0x28] sm:$0xff]   ;;  %v624_v14 = vld [vmem:[%s722_s0 + $0x18] sm:$0xff]  }
   0x6   :  { %v625_v15 = vld [vmem:[%s722_s0 + $0x38] sm:$0xff]   ;;  %v466_v16 = vld [vmem:[%s723_s2] ss:$0 sm:$0xff] }
   0x7   :  { %565 = vmatpush3.bf16.msra.mxu0 %v611_v1  ;;  %603 = vmatpush3.bf16.msra.mxu1 %v611_v1 }
   0x8   :  { %566 = vmatprep.subr.bf16.mxu0 %v612_v2  ;;  %596 = vmatprep.subr.bf16.mxu1 %v612_v2 }
   0xb   :  { %567 = vmatpush3.bf16.msra.mxu0 %v612_v2  ;;  %604 = vmatpush3.bf16.msra.mxu1 %v612_v2 }
   0xc   :  { %568 = vmatprep.subr.bf16.mxu0 %v613_v3  ;;  %597 = vmatprep.subr.bf16.mxu1 %v613_v3 }
   0xf   :  { %569 = vmatpush3.bf16.msra.mxu0 %v613_v3  ;;  %605 = vmatpush3.bf16.msra.mxu1 %v613_v3 }
  0x10   :  { %570 = vmatprep.subr.bf16.mxu0 %v614_v6  ;;  %598 = vmatprep.subr.bf16.mxu1 %v614_v6 }
  0x13   :  { %571 = vmatpush3.bf16.msra.mxu0 %v614_v6  ;;  %606 = vmatpush3.bf16.msra.mxu1 %v614_v6 }
  0x14   :  { %572 = vmatprep.subr.bf16.mxu0 %v615_v7  ;;  %599 = vmatprep.subr.bf16.mxu1 %v615_v7 }
  0x17   :  { %573 = vmatpush3.bf16.msra.mxu0 %v615_v7  ;;  %607 = vmatpush3.bf16.msra.mxu1 %v615_v7 }
  0x18   :  { %574 = vmatprep.subr.bf16.mxu0 %v616_v8  ;;  %600 = vmatprep.subr.bf16.mxu1 %v616_v8 }
  0x1b   :  { %575 = vmatpush3.bf16.msra.mxu0 %v616_v8  ;;  %608 = vmatpush3.bf16.msra.mxu1 %v616_v8 }
  0x1c   :  { %576 = vmatprep.subr.bf16.mxu0 %v617_v9  ;;  %601 = vmatprep.subr.bf16.mxu1 %v617_v9 }
  0x1f   :  { %577 = vmatpush3.bf16.msra.mxu0 %v617_v9  ;;  %609 = vmatpush3.bf16.msra.mxu1 %v617_v9 }
  0x22   :  { %579 = vmatmul.mubr.bf16.vlgmr.msra.gmra.mxu0 %v620_v10  ;;  %587 = vmatmul.mubr.bf16.vlgmr.msra.gmra.mxu1 %v621_v11 }
  0x23   :  { %582 = vmatprep.mubr.bf16.mxu0 %v622_v12  ;;  %590 = vmatprep.mubr.bf16.mxu1 %v623_v13 }
  0x2a   :  { %583 = vmatmul.mubr.bf16.gmra.mxu0 %v624_v14  ;;  %591 = vmatmul.mubr.bf16.gmra.mxu1 %v625_v15 }
  0xe2   :  { %v580_v17 = vpop.f32.mrf.mxu0  ;;  %v588_v18 = vpop.f32.mrf.mxu1 }
  0xe3   :  { %v336_v19 = vadd.f32 %v580_v17, %v466_v16  ;;  %v344_v20 = vadd.f32 %v588_v18, %v466_v16 }
  0xe4   :  { %v213_v21 = vpop.f32.mrf.mxu0  ;;  %v245_v22 = vpop.f32.mrf.mxu1 }
  0xe5   :  { %v334_v23 = vadd.f32 %v466_v16, %v213_v21  ;;  %v342_v24 = vadd.f32 %v466_v16, %v245_v22  ;;  %v352_v29 = vmax.f32 %v336_v19, 0.0  ;;  %v360_v30 = vmax.f32 %v344_v20, 0.0 }
  0xe6   :  { %v581_v25 = vpop.f32.mrf.mxu0  ;;  %v589_v26 = vpop.f32.mrf.mxu1 }
  0xe7   :  { %v337_v27 = vadd.f32 %v581_v25, %v466_v16  ;;  %v345_v28 = vadd.f32 %v589_v26, %v466_v16  ;;  %v350_v37 = vmax.f32 %v334_v23, 0.0  ;;  %v358_v38 = vmax.f32 %v342_v24, 0.0 }
  0xe8   :  { %v216_v31 = vpop.f32.mrf.mxu0  ;;  %v248_v32 = vpop.f32.mrf.mxu1 }
  0xe9   :  { %v353_v33 = vmax.f32 %v337_v27, 0.0  ;;  %v361_v34 = vmax.f32 %v345_v28, 0.0  ;;  %v335_v35 = vadd.f32 %v466_v16, %v216_v31  ;;  %v343_v36 = vadd.f32 %v466_v16, %v248_v32 }
  0xea   :  { %v584_v39 = vpop.f32.mrf.mxu0  ;;  %v592_v40 = vpop.f32.mrf.mxu1 }
  0xeb   :  { %v507_v41 = vpack.c.bf16 %v353_v33, %v352_v29  ;;  %v527_v42 = vpack.c.bf16 %v361_v34, %v360_v30  ;;  %v351_v43 = vmax.f32 %v335_v35, 0.0  ;;  %v359_v44 = vmax.f32 %v343_v36, 0.0 }
  0xec   :  { %v340_v45 = vadd.f32 %v584_v39, %v466_v16  ;;  %v348_v46 = vadd.f32 %v592_v40, %v466_v16  ;;  %v229_v47 = vpop.f32.mrf.mxu0  ;;  %v261_v48 = vpop.f32.mrf.mxu1 }
  0xed   :  { %539 = vst [vmem:[%s724_s3 + $0x8] sm:$0xff] %v507_v41   ;;  %543 = vst [vmem:[%s724_s3 + $0x28] sm:$0xff] %v527_v42   ;;  %v502_v49 = vpack.c.bf16 %v351_v43, %v350_v37  ;;  %v522_v50 = vpack.c.bf16 %v359_v44, %v358_v38  ;;  %v338_v51 = vadd.f32 %v466_v16, %v229_v47 }
  0xee   :  { %v346_v52 = vadd.f32 %v466_v16, %v261_v48  ;;  %v585_v53 = vpop.f32.mrf.mxu0  ;;  %v593_v54 = vpop.f32.mrf.mxu1  ;;  %v356_v57 = vmax.f32 %v340_v45, 0.0  ;;  %v364_v58 = vmax.f32 %v348_v46, 0.0 }
  0xef   :  { %503 = vst [vmem:[%s724_s3] sm:$0xff] %v502_v49   ;;  %542 = vst [vmem:[%s724_s3 + $0x20] sm:$0xff] %v522_v50   ;;  %v341_v55 = vadd.f32 %v585_v53, %v466_v16  ;;  %v349_v56 = vadd.f32 %v593_v54, %v466_v16  ;;  %v354_v1 = vmax.f32 %v338_v51, 0.0 }
  0xf0   :  { %v232_v59 = vpop.f32.mrf.mxu0  ;;  %v264_v60 = vpop.f32.mrf.mxu1  ;;  %v362_v2 = vmax.f32 %v346_v52, 0.0 }
  0xf1   :  { %v357_v61 = vmax.f32 %v341_v55, 0.0  ;;  %v365_v62 = vmax.f32 %v349_v56, 0.0  ;;  %v339_v63 = vadd.f32 %v466_v16, %v232_v59  ;;  %v347_v0 = vadd.f32 %v466_v16, %v264_v60 }
  0xf3   :  { %v517_v3 = vpack.c.bf16 %v357_v61, %v356_v57  ;;  %v537_v4 = vpack.c.bf16 %v365_v62, %v364_v58  ;;  %v355_v5 = vmax.f32 %v339_v63, 0.0  ;;  %v363_v6 = vmax.f32 %v347_v0, 0.0 }
  0xf5   :  { %541 = vst [vmem:[%s724_s3 + $0x18] sm:$0xff] %v517_v3   ;;  %545 = vst [vmem:[%s724_s3 + $0x38] sm:$0xff] %v537_v4   ;;  %v512_v7 = vpack.c.bf16 %v355_v5, %v354_v1  ;;  %v532_v8 = vpack.c.bf16 %v363_v6, %v362_v2 }
  0xf7   :  { %540 = vst [vmem:[%s724_s3 + $0x10] sm:$0xff] %v512_v7   ;;  %544 = vst [vmem:[%s724_s3 + $0x30] sm:$0xff] %v532_v8  }

// kernel: _lambda_.24
= control target key start
LH: loop header
LB: loop body
LE: loop exit
PB: predicated region body
PF: predicated region fallthrough
CT: control target
= control target key end

     0   :  { %s874_s1 = inlined_call_operand.vmem [shape: bf16[128,128], index: 1, kind: input, shape index: {}]   ;;  %s875_s0 = inlined_call_operand.vmem [shape: bf16[128,128], index: 0, kind: input, shape index: {}]   ;;  %s876_s2 = inlined_call_operand.vmem [shape: f32[1,128], index: 2, kind: input, shape index: {}]   ;;  %s877_s3 = inlined_call_operand.vmem [shape: bf16[128,128], index: 3, kind: input, shape index: {}]   ;;  %s878_s4 = inlined_call_operand.vmem [shape: bf16[128,128], index: 4, kind: output, shape index: {}]  }
   0x1   :  { %v700_v0 = vld [vmem:[%s874_s1 + $0x38] sm:$0xff]   ;;  %v701_v1 = vld [vmem:[%s874_s1 + $0x30] sm:$0xff]   ;;  %v702_v2 = vld [vmem:[%s874_s1 + $0x28] sm:$0xff]  }
   0x2   :  { %652 = vmatprep.subr.bf16.mxu0 %v700_v0  ;;  %684 = vmatprep.subr.bf16.mxu1 %v700_v0  ;;  %v703_v3 = vld [vmem:[%s874_s1 + $0x20] sm:$0xff]   ;;  %v704_v6 = vld [vmem:[%s874_s1 + $0x18] sm:$0xff]   ;;  %v705_v7 = vld [vmem:[%s874_s1 + $0x10] sm:$0xff]  }
   0x3   :  { %653 = vmatpush3.bf16.msra.mxu0 %v700_v0  ;;  %692 = vmatpush3.bf16.msra.mxu1 %v700_v0  ;;  %v708_v4 = vld [vmem:[%s875_s0] sm:$0xff]   ;;  %v706_v8 = vld [vmem:[%s874_s1 + $0x8] sm:$0xff]   ;;  %v712_v12 = vld [vmem:[%s875_s0 + $0x10] sm:$0xff]  }
   0x4   :  { %654 = vmatprep.subr.bf16.mxu0 %v701_v1  ;;  %685 = vmatprep.subr.bf16.mxu1 %v701_v1  ;;  %v709_v5 = vld [vmem:[%s875_s0 + $0x20] sm:$0xff]   ;;  %v710_v10 = vld [vmem:[%s875_s0 + $0x8] sm:$0xff]   ;;  %v713_v13 = vld [vmem:[%s875_s0 + $0x30] sm:$0xff]  }
   0x5   :  { %668 = vmatprep.mubr.bf16.mxu0 %v708_v4  ;;  %676 = vmatprep.mubr.bf16.mxu1 %v709_v5  ;;  %v707_v9 = vld [vmem:[%s874_s1] sm:$0xff]   ;;  %v711_v11 = vld [vmem:[%s875_s0 + $0x28] sm:$0xff]   ;;  %v714_v14 = vld [vmem:[%s875_s0 + $0x18] sm:$0xff]  }
   0x6   :  { %v715_v15 = vld [vmem:[%s875_s0 + $0x38] sm:$0xff]   ;;  %v792_v16 = vld [vmem:[%s876_s2] ss:$0 sm:$0xff]  ;;  %v622_v17 = vld [vmem:[%s877_s3 + $0x8] sm:$0xff]  }
   0x7   :  { %655 = vmatpush3.bf16.msra.mxu0 %v701_v1  ;;  %693 = vmatpush3.bf16.msra.mxu1 %v701_v1  ;;  %v626_v18 = vld [vmem:[%s877_s3 + $0x28] sm:$0xff]   ;;  %v551_v21 = vld [vmem:[%s877_s3] sm:$0xff]   ;;  %v556_v24 = vunpack.c.l.bf16 %v622_v17  ;;  %v811_v29 = vld [vmem:[%s877_s3 + $0x18] sm:$0xff]   ;;  %v557_v38 = vunpack.c.h.bf16 %v622_v17 }
   0x8   :  { %656 = vmatprep.subr.bf16.mxu0 %v702_v2  ;;  %686 = vmatprep.subr.bf16.mxu1 %v702_v2  ;;  %v625_v22 = vld [vmem:[%s877_s3 + $0x20] sm:$0xff]   ;;  %v572_v26 = vunpack.c.l.bf16 %v626_v18  ;;  %v816_v30 = vld [vmem:[%s877_s3 + $0x38] sm:$0xff]   ;;  %v552_v32 = vunpack.c.l.bf16 %v551_v21  ;;  %v823_v35 = vld [vmem:[%s877_s3 + $0x10] sm:$0xff]   ;;  %v573_v40 = vunpack.c.h.bf16 %v626_v18  ;;  %v553_v41 = vunpack.c.h.bf16 %v551_v21 }
   0x9   :  { %v568_v34 = vunpack.c.l.bf16 %v625_v22  ;;  %v828_v36 = vld [vmem:[%s877_s3 + $0x30] sm:$0xff]   ;;  %v569_v42 = vunpack.c.h.bf16 %v625_v22  ;;  %v564_v45 = vunpack.c.l.bf16 %v811_v29  ;;  %v580_v46 = vunpack.c.l.bf16 %v816_v30 }
   0xa   :  { %v560_v51 = vunpack.c.l.bf16 %v823_v35  ;;  %v576_v52 = vunpack.c.l.bf16 %v828_v36  ;;  %v565_v61 = vunpack.c.h.bf16 %v811_v29  ;;  %v581_v62 = vunpack.c.h.bf16 %v816_v30 }
   0xb   :  { %657 = vmatpush3.bf16.msra.mxu0 %v702_v2  ;;  %694 = vmatpush3.bf16.msra.mxu1 %v702_v2  ;;  %v561_v22 = vunpack.c.h.bf16 %v823_v35 }
   0xc   :  { %658 = vmatprep.subr.bf16.mxu0 %v703_v3  ;;  %687 = vmatprep.subr.bf16.mxu1 %v703_v3 }
   0xf   :  { %659 = vmatpush3.bf16.msra.mxu0 %v703_v3  ;;  %695 = vmatpush3.bf16.msra.mxu1 %v703_v3 }
  0x10   :  { %660 = vmatprep.subr.bf16.mxu0 %v704_v6  ;;  %688 = vmatprep.subr.bf16.mxu1 %v704_v6 }
  0x13   :  { %661 = vmatpush3.bf16.msra.mxu0 %v704_v6  ;;  %696 = vmatpush3.bf16.msra.mxu1 %v704_v6 }
  0x14   :  { %662 = vmatprep.subr.bf16.mxu0 %v705_v7  ;;  %689 = vmatprep.subr.bf16.mxu1 %v705_v7 }
  0x17   :  { %663 = vmatpush3.bf16.msra.mxu0 %v705_v7  ;;  %697 = vmatpush3.bf16.msra.mxu1 %v705_v7 }
  0x18   :  { %664 = vmatprep.subr.bf16.mxu0 %v706_v8  ;;  %690 = vmatprep.subr.bf16.mxu1 %v706_v8 }
  0x1b   :  { %665 = vmatpush3.bf16.msra.mxu0 %v706_v8  ;;  %698 = vmatpush3.bf16.msra.mxu1 %v706_v8 }
  0x1c   :  { %666 = vmatprep.subr.bf16.mxu0 %v707_v9  ;;  %691 = vmatprep.subr.bf16.mxu1 %v707_v9 }
  0x1f   :  { %667 = vmatpush3.bf16.msra.mxu0 %v707_v9  ;;  %699 = vmatpush3.bf16.msra.mxu1 %v707_v9 }
  0x22   :  { %669 = vmatmul.mubr.bf16.vlgmr.msra.gmra.mxu0 %v710_v10  ;;  %677 = vmatmul.mubr.bf16.vlgmr.msra.gmra.mxu1 %v711_v11 }
  0x23   :  { %672 = vmatprep.mubr.bf16.mxu0 %v712_v12  ;;  %680 = vmatprep.mubr.bf16.mxu1 %v713_v13 }
  0x2a   :  { %673 = vmatmul.mubr.bf16.gmra.mxu0 %v714_v14  ;;  %681 = vmatmul.mubr.bf16.gmra.mxu1 %v715_v15 }
  0xe2   :  { %v670_v19 = vpop.f32.mrf.mxu0  ;;  %v678_v20 = vpop.f32.mrf.mxu1 }
  0xe3   :  { %v339_v23 = vadd.f32 %v670_v19, %v792_v16  ;;  %v347_v25 = vadd.f32 %v678_v20, %v792_v16 }
  0xe4   :  { %v216_v27 = vpop.f32.mrf.mxu0  ;;  %v248_v28 = vpop.f32.mrf.mxu1 }
  0xe5   :  { %v337_v31 = vadd.f32 %v792_v16, %v216_v27  ;;  %v345_v33 = vadd.f32 %v792_v16, %v248_v28  ;;  %v387_v43 = vadd.f32 %v556_v24, %v339_v23  ;;  %v395_v44 = vadd.f32 %v572_v26, %v347_v25 }
  0xe6   :  { %v671_v37 = vpop.f32.mrf.mxu0  ;;  %v679_v39 = vpop.f32.mrf.mxu1  ;;  %v577_v23 = vunpack.c.h.bf16 %v828_v36 }
  0xe7   :  { %v340_v47 = vadd.f32 %v671_v37, %v792_v16  ;;  %v348_v48 = vadd.f32 %v679_v39, %v792_v16  ;;  %v385_v53 = vadd.f32 %v552_v32, %v337_v31  ;;  %v393_v54 = vadd.f32 %v568_v34, %v345_v33 }
  0xe8   :  { %v219_v49 = vpop.f32.mrf.mxu0  ;;  %v251_v50 = vpop.f32.mrf.mxu1  ;;  %v403_v63 = vmax.f32 %v387_v43, 0.0  ;;  %v411_v0 = vmax.f32 %v395_v44, 0.0 }
  0xe9   :  { %v338_v55 = vadd.f32 %v792_v16, %v219_v49  ;;  %v346_v56 = vadd.f32 %v792_v16, %v251_v50  ;;  %v388_v57 = vadd.f32 %v557_v38, %v340_v47  ;;  %v396_v58 = vadd.f32 %v573_v40, %v348_v48 }
  0xea   :  { %v674_v59 = vpop.f32.mrf.mxu0  ;;  %v682_v60 = vpop.f32.mrf.mxu1  ;;  %v401_v9 = vmax.f32 %v385_v53, 0.0  ;;  %v409_v10 = vmax.f32 %v393_v54, 0.0 }
  0xeb   :  { %v386_v1 = vadd.f32 %v553_v41, %v338_v55  ;;  %v394_v2 = vadd.f32 %v569_v42, %v346_v56  ;;  %v404_v3 = vmax.f32 %v388_v57, 0.0  ;;  %v412_v4 = vmax.f32 %v396_v58, 0.0 }
  0xec   :  { %v343_v5 = vadd.f32 %v674_v59, %v792_v16  ;;  %v351_v6 = vadd.f32 %v682_v60, %v792_v16  ;;  %v232_v7 = vpop.f32.mrf.mxu0  ;;  %v264_v8 = vpop.f32.mrf.mxu1 }
  0xed   :  { %v402_v11 = vmax.f32 %v386_v1, 0.0  ;;  %v410_v12 = vmax.f32 %v394_v2, 0.0  ;;  %v590_v13 = vpack.c.bf16 %v404_v3, %v403_v63  ;;  %v610_v14 = vpack.c.bf16 %v412_v4, %v411_v0 }
  0xee   :  { %v341_v15 = vadd.f32 %v792_v16, %v232_v7  ;;  %v349_v17 = vadd.f32 %v792_v16, %v264_v8  ;;  %v675_v18 = vpop.f32.mrf.mxu0  ;;  %v683_v19 = vpop.f32.mrf.mxu1  ;;  %v391_v24 = vadd.f32 %v564_v45, %v343_v5  ;;  %v399_v25 = vadd.f32 %v580_v46, %v351_v6 }
  0xef   :  { %v585_v20 = vpack.c.bf16 %v402_v11, %v401_v9  ;;  %v605_v21 = vpack.c.bf16 %v410_v12, %v409_v10  ;;  %629 = vst [vmem:[%s878_s4 + $0x8] sm:$0xff] %v590_v13   ;;  %633 = vst [vmem:[%s878_s4 + $0x28] sm:$0xff] %v610_v14   ;;  %v344_v26 = vadd.f32 %v675_v18, %v792_v16 }
  0xf0   :  { %v352_v27 = vadd.f32 %v683_v19, %v792_v16  ;;  %v235_v28 = vpop.f32.mrf.mxu0  ;;  %v267_v29 = vpop.f32.mrf.mxu1  ;;  %v389_v30 = vadd.f32 %v560_v51, %v341_v15  ;;  %v397_v31 = vadd.f32 %v576_v52, %v349_v17  ;;  %v407_v38 = vmax.f32 %v391_v24, 0.0 }
  0xf1   :  { %586 = vst [vmem:[%s878_s4] sm:$0xff] %v585_v20   ;;  %632 = vst [vmem:[%s878_s4 + $0x20] sm:$0xff] %v605_v21   ;;  %v342_v32 = vadd.f32 %v792_v16, %v235_v28  ;;  %v350_v33 = vadd.f32 %v792_v16, %v267_v29  ;;  %v392_v34 = vadd.f32 %v565_v61, %v344_v26  ;;  %v415_v39 = vmax.f32 %v399_v25, 0.0 }
  0xf2   :  { %v400_v35 = vadd.f32 %v581_v62, %v352_v27  ;;  %v405_v42 = vmax.f32 %v389_v30, 0.0  ;;  %v413_v43 = vmax.f32 %v397_v31, 0.0 }
  0xf3   :  { %v390_v36 = vadd.f32 %v561_v22, %v342_v32  ;;  %v398_v37 = vadd.f32 %v577_v23, %v350_v33  ;;  %v408_v40 = vmax.f32 %v392_v34, 0.0 }
  0xf4   :  { %v416_v41 = vmax.f32 %v400_v35, 0.0 }
  0xf5   :  { %v406_v44 = vmax.f32 %v390_v36, 0.0  ;;  %v414_v45 = vmax.f32 %v398_v37, 0.0  ;;  %v600_v46 = vpack.c.bf16 %v408_v40, %v407_v38 }
  0xf6   :  { %v620_v47 = vpack.c.bf16 %v416_v41, %v415_v39 }
  0xf7   :  { %v595_v48 = vpack.c.bf16 %v406_v44, %v405_v42  ;;  %v615_v49 = vpack.c.bf16 %v414_v45, %v413_v43  ;;  %631 = vst [vmem:[%s878_s4 + $0x18] sm:$0xff] %v600_v46  }
  0xf8   :  { %635 = vst [vmem:[%s878_s4 + $0x38] sm:$0xff] %v620_v47  }
  0xf9   :  { %630 = vst [vmem:[%s878_s4 + $0x10] sm:$0xff] %v595_v48   ;;  %634 = vst [vmem:[%s878_s4 + $0x30] sm:$0xff] %v615_v49  }

// kernel: _lambda_.27
= control target key start
LH: loop header
LB: loop body
LE: loop exit
PB: predicated region body
PF: predicated region fallthrough
CT: control target
= control target key end

     0   :  { %s339_s1 = inlined_call_operand.vmem [shape: bf16[128,128], index: 1, kind: input, shape index: {}]   ;;  %s340_s0 = inlined_call_operand.vmem [shape: bf16[32,128], index: 0, kind: input, shape index: {}]   ;;  %s341_s2 = inlined_call_operand.vmem [shape: f32[1,128], index: 2, kind: input, shape index: {}]   ;;  %s342_s3 = inlined_call_operand.vmem [shape: bf16[32,128], index: 3, kind: output, shape index: {}]  }
   0x1   :  { %v270_v0 = vld [vmem:[%s339_s1 + $0x38] sm:$0xff]   ;;  %v271_v1 = vld [vmem:[%s339_s1 + $0x30] sm:$0xff]   ;;  %v272_v2 = vld [vmem:[%s339_s1 + $0x28] sm:$0xff]  }
   0x2   :  { %250 = vmatprep.subr.bf16.mxu0 %v270_v0  ;;  %v273_v3 = vld [vmem:[%s339_s1 + $0x20] sm:$0xff]   ;;  %v274_v5 = vld [vmem:[%s339_s1 + $0x18] sm:$0xff]   ;;  %v275_v6 = vld [vmem:[%s339_s1 + $0x10] sm:$0xff]  }
   0x3   :  { %251 = vmatpush3.bf16.msra.mxu0 %v270_v0  ;;  %v278_v4 = vld [vmem:[%s340_s0] sm:$0xff]   ;;  %v276_v7 = vld [vmem:[%s339_s1 + $0x8] sm:$0xff]  }
   0x4   :  { %252 = vmatprep.subr.bf16.mxu0 %v271_v1  ;;  %266 = vmatprep.mubr.bf16.mxu0 %v278_v4  ;;  %v277_v8 = vld [vmem:[%s339_s1] sm:$0xff]   ;;  %v279_v9 = vld [vmem:[%s340_s0 + $0x8] sm:$0xff]  }
   0x5   :  { %v220_v11 = vld [vmem:[%s341_s2] ss:$0 sm:$0xff] }
   0x7   :  { %253 = vmatpush3.bf16.msra.mxu0 %v271_v1 }
   0x8   :  { %254 = vmatprep.subr.bf16.mxu0 %v272_v2 }
   0xb   :  { %255 = vmatpush3.bf16.msra.mxu0 %v272_v2 }
   0xc   :  { %256 = vmatprep.subr.bf16.mxu0 %v273_v3 }
   0xf   :  { %257 = vmatpush3.bf16.msra.mxu0 %v273_v3 }
  0x10   :  { %258 = vmatprep.subr.bf16.mxu0 %v274_v5 }
  0x13   :  { %259 = vmatpush3.bf16.msra.mxu0 %v274_v5 }
  0x14   :  { %260 = vmatprep.subr.bf16.mxu0 %v275_v6 }
  0x17   :  { %261 = vmatpush3.bf16.msra.mxu0 %v275_v6 }
  0x18   :  { %262 = vmatprep.subr.bf16.mxu0 %v276_v7 }
  0x1b   :  { %263 = vmatpush3.bf16.msra.mxu0 %v276_v7 }
  0x1c   :  { %264 = vmatprep.subr.bf16.mxu0 %v277_v8 }
  0x1f   :  { %265 = vmatpush3.bf16.msra.mxu0 %v277_v8 }
  0x22   :  { %267 = vmatmul.mubr.bf16.vlgmr.msra.gmra.mxu0 %v279_v9 }
  0xe2   :  { %v268_v10 = vpop.f32.mrf.mxu0 }
  0xe3   :  { %v180_v13 = vadd.f32 %v268_v10, %v220_v11 }
  0xe4   :  { %v141_v12 = vpop.f32.mrf.mxu0 }
  0xe5   :  { %v178_v15 = vadd.f32 %v220_v11, %v141_v12  ;;  %v184_v18 = vmax.f32 %v180_v13, 0.0 }
  0xe6   :  { %v269_v14 = vpop.f32.mrf.mxu0 }
  0xe7   :  { %v181_v16 = vadd.f32 %v269_v14, %v220_v11  ;;  %v182_v21 = vmax.f32 %v178_v15, 0.0 }
  0xe8   :  { %v144_v17 = vpop.f32.mrf.mxu0 }
  0xe9   :  { %v185_v19 = vmax.f32 %v181_v16, 0.0  ;;  %v179_v20 = vadd.f32 %v220_v11, %v144_v17 }
  0xeb   :  { %v237_v22 = vpack.c.bf16 %v185_v19, %v184_v18  ;;  %v183_v23 = vmax.f32 %v179_v20, 0.0 }
  0xed   :  { %239 = vst [vmem:[%s342_s3 + $0x8] sm:$0xff] %v237_v22   ;;  %v232_v24 = vpack.c.bf16 %v183_v23, %v182_v21 }
  0xef   :  { %233 = vst [vmem:[%s342_s3] sm:$0xff] %v232_v24  }

// kernel: _lambda_.29
= control target key start
LH: loop header
LB: loop body
LE: loop exit
PB: predicated region body
PF: predicated region fallthrough
CT: control target
= control target key end

     0   :  { %s512_s1 = inlined_call_operand.vmem [shape: bf16[256,128], index: 1, kind: input, shape index: {}]   ;;  %s513_s0 = inlined_call_operand.vmem [shape: bf16[32,256], index: 0, kind: input, shape index: {}]   ;;  %s514_s2 = inlined_call_operand.vmem [shape: f32[1,128], index: 2, kind: input, shape index: {}]   ;;  %s515_s3 = inlined_call_operand.vmem [shape: bf16[32,128], index: 3, kind: input, shape index: {}]   ;;  %s516_s4 = inlined_call_operand.vmem [shape: bf16[32,128], index: 4, kind: output, shape index: {}]  }
   0x1   :  { %v390_v0 = vld [vmem:[%s512_s1 + $0x78] sm:$0xff]   ;;  %v392_v2 = vld [vmem:[%s512_s1 + $0x70] sm:$0xff]   ;;  %v394_v4 = vld [vmem:[%s512_s1 + $0x68] sm:$0xff]  }
   0x2   :  { %v391_v1 = vld [vmem:[%s512_s1 + $0x38] sm:$0xff]   ;;  %346 = vmatprep.subr.bf16.mxu0 %v390_v0  ;;  %374 = vmatprep.subr.bf16.mxu1 %v390_v0  ;;  %v393_v3 = vld [vmem:[%s512_s1 + $0x30] sm:$0xff]   ;;  %v395_v5 = vld [vmem:[%s512_s1 + $0x28] sm:$0xff]  }
   0x3   :  { %347 = vmatpush3.bf16.msra.mxu0 %v391_v1  ;;  %382 = vmatpush3.bf16.msra.mxu1 %v391_v1  ;;  %v396_v6 = vld [vmem:[%s512_s1 + $0x60] sm:$0xff]   ;;  %v398_v8 = vld [vmem:[%s512_s1 + $0x58] sm:$0xff]   ;;  %v400_v10 = vld [vmem:[%s512_s1 + $0x50] sm:$0xff]  }
   0x4   :  { %348 = vmatprep.subr.bf16.mxu0 %v392_v2  ;;  %375 = vmatprep.subr.bf16.mxu1 %v392_v2  ;;  %v397_v7 = vld [vmem:[%s512_s1 + $0x20] sm:$0xff]   ;;  %v399_v9 = vld [vmem:[%s512_s1 + $0x18] sm:$0xff]   ;;  %v401_v13 = vld [vmem:[%s512_s1 + $0x10] sm:$0xff]  }
   0x5   :  { %v408_v11 = vld [vmem:[%s513_s0 + $0x4] ss:$8 sps:$4 sm:$0xff]   ;;  %v411_v12 = vld [vmem:[%s513_s0 + $0x14] ss:$8 sps:$4 sm:$0xff]   ;;  %v406_v18 = vld [vmem:[%s513_s0] ss:$8 sps:$4 sm:$0xff]  }
   0x6   :  { %v402_v14 = vld [vmem:[%s512_s1 + $0x48] sm:$0xff]   ;;  %214 = vmatprep.mubr.bf16.mxu0 %v408_v11  ;;  %222 = vmatprep.mubr.bf16.mxu1 %v411_v12  ;;  %v404_v16 = vld [vmem:[%s512_s1 + $0x40] sm:$0xff]   ;;  %v409_v19 = vld [vmem:[%s513_s0 + $0x10] ss:$8 sps:$4 sm:$0xff]  }
   0x7   :  { %349 = vmatpush3.bf16.msra.mxu0 %v393_v3  ;;  %383 = vmatpush3.bf16.msra.mxu1 %v393_v3  ;;  %v403_v15 = vld [vmem:[%s512_s1 + $0x8] sm:$0xff]   ;;  %v405_v17 = vld [vmem:[%s512_s1] sm:$0xff]  }
   0x8   :  { %350 = vmatprep.subr.bf16.mxu0 %v394_v4  ;;  %376 = vmatprep.subr.bf16.mxu1 %v394_v4  ;;  %v317_v23 = vld [vmem:[%s514_s2] ss:$0 sm:$0xff]  ;;  %v344_v26 = vld [vmem:[%s515_s3 + $0x8] sm:$0xff]  }
   0x9   :  { %v327_v24 = vld [vmem:[%s515_s3] sm:$0xff]   ;;  %v332_v34 = vunpack.c.l.bf16 %v344_v26  ;;  %v333_v40 = vunpack.c.h.bf16 %v344_v26 }
   0xa   :  { %v328_v32 = vunpack.c.l.bf16 %v327_v24  ;;  %v329_v38 = vunpack.c.h.bf16 %v327_v24 }
   0xb   :  { %351 = vmatpush3.bf16.msra.mxu0 %v395_v5  ;;  %384 = vmatpush3.bf16.msra.mxu1 %v395_v5 }
   0xc   :  { %352 = vmatprep.subr.bf16.mxu0 %v396_v6  ;;  %377 = vmatprep.subr.bf16.mxu1 %v396_v6 }
   0xf   :  { %353 = vmatpush3.bf16.msra.mxu0 %v397_v7  ;;  %385 = vmatpush3.bf16.msra.mxu1 %v397_v7 }
  0x10   :  { %354 = vmatprep.subr.bf16.mxu0 %v398_v8  ;;  %378 = vmatprep.subr.bf16.mxu1 %v398_v8 }
  0x13   :  { %355 = vmatpush3.bf16.msra.mxu0 %v399_v9  ;;  %386 = vmatpush3.bf16.msra.mxu1 %v399_v9 }
  0x14   :  { %356 = vmatprep.subr.bf16.mxu0 %v400_v10  ;;  %379 = vmatprep.subr.bf16.mxu1 %v400_v10 }
  0x17   :  { %357 = vmatpush3.bf16.msra.mxu0 %v401_v13  ;;  %387 = vmatpush3.bf16.msra.mxu1 %v401_v13 }
  0x18   :  { %358 = vmatprep.subr.bf16.mxu0 %v402_v14  ;;  %380 = vmatprep.subr.bf16.mxu1 %v402_v14 }
  0x1b   :  { %359 = vmatpush3.bf16.msra.mxu0 %v403_v15  ;;  %388 = vmatpush3.bf16.msra.mxu1 %v403_v15 }
  0x1c   :  { %360 = vmatprep.subr.bf16.mxu0 %v404_v16  ;;  %381 = vmatprep.subr.bf16.mxu1 %v404_v16 }
  0x1f   :  { %361 = vmatpush3.bf16.msra.mxu0 %v405_v17  ;;  %389 = vmatpush3.bf16.msra.mxu1 %v405_v17 }
  0x22   :  { %215 = vmatmul.mubr.bf16.vlgmr.msra.gmra.mxu0 %v406_v18  ;;  %223 = vmatmul.mubr.bf16.vlgmr.msra.gmra.mxu1 %v409_v19 }
  0xe2   :  { %v362_v20 = vpop.f32.mrf.mxu0  ;;  %v368_v21 = vpop.f32.mrf.mxu1 }
  0xe4   :  { %v363_v22 = vpop.f32.mrf.mxu0  ;;  %v369_v25 = vpop.f32.mrf.mxu1 }
  0xe5   :  { %v364_v27 = vadd.f32 %v363_v22, %v362_v20  ;;  %v370_v28 = vadd.f32 %v369_v25, %v368_v21 }
  0xe6   :  { %v365_v29 = vpop.f32.mrf.mxu0  ;;  %v371_v30 = vpop.f32.mrf.mxu1 }
  0xe7   :  { %v253_v31 = vadd.f32 %v364_v27, %v317_v23  ;;  %v255_v33 = vadd.f32 %v370_v28, %v317_v23 }
  0xe8   :  { %v366_v35 = vpop.f32.mrf.mxu0  ;;  %v372_v36 = vpop.f32.mrf.mxu1 }
  0xe9   :  { %v367_v37 = vadd.f32 %v366_v35, %v365_v29  ;;  %v373_v39 = vadd.f32 %v372_v36, %v371_v30  ;;  %v265_v41 = vadd.f32 %v328_v32, %v253_v31  ;;  %v267_v42 = vadd.f32 %v332_v34, %v255_v33 }
  0xeb   :  { %v254_v43 = vadd.f32 %v367_v37, %v317_v23  ;;  %v256_v44 = vadd.f32 %v373_v39, %v317_v23  ;;  %v269_v47 = vmax.f32 %v265_v41, 0.0  ;;  %v271_v48 = vmax.f32 %v267_v42, 0.0 }
  0xed   :  { %v266_v45 = vadd.f32 %v329_v38, %v254_v43  ;;  %v268_v46 = vadd.f32 %v333_v40, %v256_v44 }
  0xef   :  { %v270_v49 = vmax.f32 %v266_v45, 0.0  ;;  %v272_v50 = vmax.f32 %v268_v46, 0.0 }
  0xf1   :  { %v337_v51 = vpack.c.bf16 %v270_v49, %v269_v47  ;;  %v342_v52 = vpack.c.bf16 %v272_v50, %v271_v48 }
  0xf3   :  { %338 = vst [vmem:[%s516_s4] sm:$0xff] %v337_v51   ;;  %345 = vst [vmem:[%s516_s4 + $0x8] sm:$0xff] %v342_v52  }

// kernel: _lambda_.28
= control target key start
LH: loop header
LB: loop body
LE: loop exit
PB: predicated region body
PF: predicated region fallthrough
CT: control target
= control target key end

     0   :  { %s335_s1 = inlined_call_operand.vmem [shape: bf16[128,128], index: 1, kind: input, shape index: {}]   ;;  %s336_s0 = inlined_call_operand.vmem [shape: bf16[32,128], index: 0, kind: input, shape index: {}]   ;;  %s337_s2 = inlined_call_operand.vmem [shape: f32[1,128], index: 2, kind: input, shape index: {}]   ;;  %s338_s3 = inlined_call_operand.vmem [shape: bf16[32,128], index: 3, kind: output, shape index: {}]  }
   0x1   :  { %v266_v0 = vld [vmem:[%s335_s1 + $0x38] sm:$0xff]   ;;  %v267_v1 = vld [vmem:[%s335_s1 + $0x30] sm:$0xff]   ;;  %v268_v2 = vld [vmem:[%s335_s1 + $0x28] sm:$0xff]  }
   0x2   :  { %246 = vmatprep.subr.bf16.mxu0 %v266_v0  ;;  %v269_v3 = vld [vmem:[%s335_s1 + $0x20] sm:$0xff]   ;;  %v270_v5 = vld [vmem:[%s335_s1 + $0x18] sm:$0xff]   ;;  %v271_v6 = vld [vmem:[%s335_s1 + $0x10] sm:$0xff]  }
   0x3   :  { %247 = vmatpush3.bf16.msra.mxu0 %v266_v0  ;;  %v274_v4 = vld [vmem:[%s336_s0] sm:$0xff]   ;;  %v272_v7 = vld [vmem:[%s335_s1 + $0x8] sm:$0xff]  }
   0x4   :  { %248 = vmatprep.subr.bf16.mxu0 %v267_v1  ;;  %262 = vmatprep.mubr.bf16.mxu0 %v274_v4  ;;  %v273_v8 = vld [vmem:[%s335_s1] sm:$0xff]   ;;  %v275_v9 = vld [vmem:[%s336_s0 + $0x8] sm:$0xff]  }
   0x5   :  { %v216_v11 = vld [vmem:[%s337_s2] ss:$0 sm:$0xff] }
   0x7   :  { %249 = vmatpush3.bf16.msra.mxu0 %v267_v1 }
   0x8   :  { %250 = vmatprep.subr.bf16.mxu0 %v268_v2 }
   0xb   :  { %251 = vmatpush3.bf16.msra.mxu0 %v268_v2 }
   0xc   :  { %252 = vmatprep.subr.bf16.mxu0 %v269_v3 }
   0xf   :  { %253 = vmatpush3.bf16.msra.mxu0 %v269_v3 }
  0x10   :  { %254 = vmatprep.subr.bf16.mxu0 %v270_v5 }
  0x13   :  { %255 = vmatpush3.bf16.msra.mxu0 %v270_v5 }
  0x14   :  { %256 = vmatprep.subr.bf16.mxu0 %v271_v6 }
  0x17   :  { %257 = vmatpush3.bf16.msra.mxu0 %v271_v6 }
  0x18   :  { %258 = vmatprep.subr.bf16.mxu0 %v272_v7 }
  0x1b   :  { %259 = vmatpush3.bf16.msra.mxu0 %v272_v7 }
  0x1c   :  { %260 = vmatprep.subr.bf16.mxu0 %v273_v8 }
  0x1f   :  { %261 = vmatpush3.bf16.msra.mxu0 %v273_v8 }
  0x22   :  { %263 = vmatmul.mubr.bf16.vlgmr.msra.gmra.mxu0 %v275_v9 }
  0xe2   :  { %v264_v10 = vpop.f32.mrf.mxu0 }
  0xe3   :  { %v180_v14 = vadd.f32 %v264_v10, %v216_v11 }
  0xe4   :  { %v141_v12 = vpop.f32.mrf.mxu0 }
  0xe5   :  { %v178_v17 = vadd.f32 %v216_v11, %v141_v12 }
  0xe6   :  { %v265_v13 = vpop.f32.mrf.mxu0 }
  0xe7   :  { %v181_v15 = vadd.f32 %v265_v13, %v216_v11 }
  0xe8   :  { %v144_v16 = vpop.f32.mrf.mxu0 }
  0xe9   :  { %v233_v18 = vpack.c.bf16 %v181_v15, %v180_v14  ;;  %v179_v19 = vadd.f32 %v216_v11, %v144_v16 }
  0xeb   :  { %235 = vst [vmem:[%s338_s3 + $0x8] sm:$0xff] %v233_v18   ;;  %v228_v20 = vpack.c.bf16 %v179_v19, %v178_v17 }
  0xed   :  { %229 = vst [vmem:[%s338_s3] sm:$0xff] %v228_v20  }

// kernel: _lambda_.30
= control target key start
LH: loop header
LB: loop body
LE: loop exit
PB: predicated region body
PF: predicated region fallthrough
CT: control target
= control target key end

     0   :  { %s477_s1 = inlined_call_operand.vmem [shape: bf16[256,128], index: 1, kind: input, shape index: {}]   ;;  %s478_s0 = inlined_call_operand.vmem [shape: bf16[32,256], index: 0, kind: input, shape index: {}]   ;;  %s479_s2 = inlined_call_operand.vmem [shape: f32[1,128], index: 2, kind: input, shape index: {}]   ;;  %s480_s3 = inlined_call_operand.vmem [shape: bf16[32,128], index: 3, kind: output, shape index: {}]  }
   0x1   :  { %v366_v0 = vld [vmem:[%s477_s1 + $0x78] sm:$0xff]   ;;  %v368_v2 = vld [vmem:[%s477_s1 + $0x70] sm:$0xff]   ;;  %v370_v4 = vld [vmem:[%s477_s1 + $0x68] sm:$0xff]  }
   0x2   :  { %v367_v1 = vld [vmem:[%s477_s1 + $0x38] sm:$0xff]   ;;  %322 = vmatprep.subr.bf16.mxu0 %v366_v0  ;;  %350 = vmatprep.subr.bf16.mxu1 %v366_v0  ;;  %v369_v3 = vld [vmem:[%s477_s1 + $0x30] sm:$0xff]   ;;  %v371_v5 = vld [vmem:[%s477_s1 + $0x28] sm:$0xff]  }
   0x3   :  { %323 = vmatpush3.bf16.msra.mxu0 %v367_v1  ;;  %358 = vmatpush3.bf16.msra.mxu1 %v367_v1  ;;  %v372_v6 = vld [vmem:[%s477_s1 + $0x60] sm:$0xff]   ;;  %v374_v8 = vld [vmem:[%s477_s1 + $0x58] sm:$0xff]   ;;  %v376_v10 = vld [vmem:[%s477_s1 + $0x50] sm:$0xff]  }
   0x4   :  { %324 = vmatprep.subr.bf16.mxu0 %v368_v2  ;;  %351 = vmatprep.subr.bf16.mxu1 %v368_v2  ;;  %v373_v7 = vld [vmem:[%s477_s1 + $0x20] sm:$0xff]   ;;  %v375_v9 = vld [vmem:[%s477_s1 + $0x18] sm:$0xff]   ;;  %v377_v13 = vld [vmem:[%s477_s1 + $0x10] sm:$0xff]  }
   0x5   :  { %v384_v11 = vld [vmem:[%s478_s0 + $0x4] ss:$8 sps:$4 sm:$0xff]   ;;  %v387_v12 = vld [vmem:[%s478_s0 + $0x14] ss:$8 sps:$4 sm:$0xff]   ;;  %v382_v18 = vld [vmem:[%s478_s0] ss:$8 sps:$4 sm:$0xff]  }
   0x6   :  { %v378_v14 = vld [vmem:[%s477_s1 + $0x48] sm:$0xff]   ;;  %211 = vmatprep.mubr.bf16.mxu0 %v384_v11  ;;  %219 = vmatprep.mubr.bf16.mxu1 %v387_v12  ;;  %v380_v16 = vld [vmem:[%s477_s1 + $0x40] sm:$0xff]   ;;  %v385_v19 = vld [vmem:[%s478_s0 + $0x10] ss:$8 sps:$4 sm:$0xff]  }
   0x7   :  { %325 = vmatpush3.bf16.msra.mxu0 %v369_v3  ;;  %359 = vmatpush3.bf16.msra.mxu1 %v369_v3  ;;  %v379_v15 = vld [vmem:[%s477_s1 + $0x8] sm:$0xff]   ;;  %v381_v17 = vld [vmem:[%s477_s1] sm:$0xff]  }
   0x8   :  { %326 = vmatprep.subr.bf16.mxu0 %v370_v4  ;;  %352 = vmatprep.subr.bf16.mxu1 %v370_v4  ;;  %v302_v26 = vld [vmem:[%s479_s2] ss:$0 sm:$0xff] }
   0xb   :  { %327 = vmatpush3.bf16.msra.mxu0 %v371_v5  ;;  %360 = vmatpush3.bf16.msra.mxu1 %v371_v5 }
   0xc   :  { %328 = vmatprep.subr.bf16.mxu0 %v372_v6  ;;  %353 = vmatprep.subr.bf16.mxu1 %v372_v6 }
   0xf   :  { %329 = vmatpush3.bf16.msra.mxu0 %v373_v7  ;;  %361 = vmatpush3.bf16.msra.mxu1 %v373_v7 }
  0x10   :  { %330 = vmatprep.subr.bf16.mxu0 %v374_v8  ;;  %354 = vmatprep.subr.bf16.mxu1 %v374_v8 }
  0x13   :  { %331 = vmatpush3.bf16.msra.mxu0 %v375_v9  ;;  %362 = vmatpush3.bf16.msra.mxu1 %v375_v9 }
  0x14   :  { %332 = vmatprep.subr.bf16.mxu0 %v376_v10  ;;  %355 = vmatprep.subr.bf16.mxu1 %v376_v10 }
  0x17   :  { %333 = vmatpush3.bf16.msra.mxu0 %v377_v13  ;;  %363 = vmatpush3.bf16.msra.mxu1 %v377_v13 }
  0x18   :  { %334 = vmatprep.subr.bf16.mxu0 %v378_v14  ;;  %356 = vmatprep.subr.bf16.mxu1 %v378_v14 }
  0x1b   :  { %335 = vmatpush3.bf16.msra.mxu0 %v379_v15  ;;  %364 = vmatpush3.bf16.msra.mxu1 %v379_v15 }
  0x1c   :  { %336 = vmatprep.subr.bf16.mxu0 %v380_v16  ;;  %357 = vmatprep.subr.bf16.mxu1 %v380_v16 }
  0x1f   :  { %337 = vmatpush3.bf16.msra.mxu0 %v381_v17  ;;  %365 = vmatpush3.bf16.msra.mxu1 %v381_v17 }
  0x22   :  { %212 = vmatmul.mubr.bf16.vlgmr.msra.gmra.mxu0 %v382_v18  ;;  %220 = vmatmul.mubr.bf16.vlgmr.msra.gmra.mxu1 %v385_v19 }
  0xe2   :  { %v338_v20 = vpop.f32.mrf.mxu0  ;;  %v344_v21 = vpop.f32.mrf.mxu1 }
  0xe4   :  { %v339_v22 = vpop.f32.mrf.mxu0  ;;  %v345_v23 = vpop.f32.mrf.mxu1 }
  0xe5   :  { %v340_v24 = vadd.f32 %v339_v22, %v338_v20  ;;  %v346_v25 = vadd.f32 %v345_v23, %v344_v21 }
  0xe6   :  { %v341_v27 = vpop.f32.mrf.mxu0  ;;  %v347_v28 = vpop.f32.mrf.mxu1 }
  0xe7   :  { %v250_v31 = vadd.f32 %v340_v24, %v302_v26  ;;  %v252_v32 = vadd.f32 %v346_v25, %v302_v26 }
  0xe8   :  { %v342_v29 = vpop.f32.mrf.mxu0  ;;  %v348_v30 = vpop.f32.mrf.mxu1 }
  0xe9   :  { %v343_v33 = vadd.f32 %v342_v29, %v341_v27  ;;  %v349_v34 = vadd.f32 %v348_v30, %v347_v28  ;;  %v254_v37 = vmax.f32 %v250_v31, 0.0  ;;  %v256_v38 = vmax.f32 %v252_v32, 0.0 }
  0xeb   :  { %v251_v35 = vadd.f32 %v343_v33, %v302_v26  ;;  %v253_v36 = vadd.f32 %v349_v34, %v302_v26 }
  0xed   :  { %v255_v39 = vmax.f32 %v251_v35, 0.0  ;;  %v257_v40 = vmax.f32 %v253_v36, 0.0 }
  0xef   :  { %v314_v41 = vpack.c.bf16 %v255_v39, %v254_v37  ;;  %v319_v42 = vpack.c.bf16 %v257_v40, %v256_v38 }
  0xf1   :  { %315 = vst [vmem:[%s480_s3] sm:$0xff] %v314_v41   ;;  %321 = vst [vmem:[%s480_s3 + $0x8] sm:$0xff] %v319_v42  }

// kernel: _lambda_.32
= control target key start
LH: loop header
LB: loop body
LE: loop exit
PB: predicated region body
PF: predicated region fallthrough
CT: control target
= control target key end

     0   :  { %s387_s1 = inlined_call_operand.vmem [shape: bf16[256,128], index: 1, kind: input, shape index: {}]   ;;  %s388_s0 = inlined_call_operand.vmem [shape: bf16[16,256], index: 0, kind: input, shape index: {}]   ;;  %s389_s2 = inlined_call_operand.vmem [shape: f32[1,128], index: 2, kind: input, shape index: {}]   ;;  %s390_s3 = inlined_call_operand.vmem [shape: bf16[16,128], index: 3, kind: output, shape index: {}]  }
   0x1   :  { %v288_v0 = vld [vmem:[%s387_s1 + $0x78] sm:$0xff]   ;;  %v290_v2 = vld [vmem:[%s387_s1 + $0x70] sm:$0xff]   ;;  %v292_v4 = vld [vmem:[%s387_s1 + $0x68] sm:$0xff]  }
   0x2   :  { %v289_v1 = vld [vmem:[%s387_s1 + $0x38] sm:$0xff]   ;;  %266 = vmatprep.subr.bf16.mxu0 %v288_v0  ;;  %v291_v3 = vld [vmem:[%s387_s1 + $0x30] sm:$0xff]   ;;  %v293_v5 = vld [vmem:[%s387_s1 + $0x28] sm:$0xff]  }
   0x3   :  { %267 = vmatpush3.bf16.msra.mxu0 %v289_v1  ;;  %v294_v6 = vld [vmem:[%s387_s1 + $0x60] sm:$0xff]   ;;  %v296_v8 = vld [vmem:[%s387_s1 + $0x58] sm:$0xff]   ;;  %v298_v10 = vld [vmem:[%s387_s1 + $0x50] sm:$0xff]  }
   0x4   :  { %268 = vmatprep.subr.bf16.mxu0 %v290_v2  ;;  %v295_v7 = vld [vmem:[%s387_s1 + $0x20] sm:$0xff]   ;;  %v297_v9 = vld [vmem:[%s387_s1 + $0x18] sm:$0xff]   ;;  %v299_v12 = vld [vmem:[%s387_s1 + $0x10] sm:$0xff]  }
   0x5   :  { %v306_v11 = vld [vmem:[%s388_s0 + $0x4] ss:$8 sps:$4 sm:$0xff]   ;;  %v304_v17 = vld [vmem:[%s388_s0] ss:$8 sps:$4 sm:$0xff]  }
   0x6   :  { %195 = vmatprep.mubr.bf16.mxu0 %v306_v11  ;;  %v300_v13 = vld [vmem:[%s387_s1 + $0x48] sm:$0xff]   ;;  %v302_v15 = vld [vmem:[%s387_s1 + $0x40] sm:$0xff]  }
   0x7   :  { %269 = vmatpush3.bf16.msra.mxu0 %v291_v3  ;;  %v301_v14 = vld [vmem:[%s387_s1 + $0x8] sm:$0xff]   ;;  %v303_v16 = vld [vmem:[%s387_s1] sm:$0xff]  }
   0x8   :  { %270 = vmatprep.subr.bf16.mxu0 %v292_v4  ;;  %v256_v21 = vld [vmem:[%s389_s2] ss:$0 sm:$0xff] }
   0xb   :  { %271 = vmatpush3.bf16.msra.mxu0 %v293_v5 }
   0xc   :  { %272 = vmatprep.subr.bf16.mxu0 %v294_v6 }
   0xf   :  { %273 = vmatpush3.bf16.msra.mxu0 %v295_v7 }
  0x10   :  { %274 = vmatprep.subr.bf16.mxu0 %v296_v8 }
  0x13   :  { %275 = vmatpush3.bf16.msra.mxu0 %v297_v9 }
  0x14   :  { %276 = vmatprep.subr.bf16.mxu0 %v298_v10 }
  0x17   :  { %277 = vmatpush3.bf16.msra.mxu0 %v299_v12 }
  0x18   :  { %278 = vmatprep.subr.bf16.mxu0 %v300_v13 }
  0x1b   :  { %279 = vmatpush3.bf16.msra.mxu0 %v301_v14 }
  0x1c   :  { %280 = vmatprep.subr.bf16.mxu0 %v302_v15 }
  0x1f   :  { %281 = vmatpush3.bf16.msra.mxu0 %v303_v16 }
  0x22   :  { %196 = vmatmul.mubr.bf16.vlgmr.msra.gmra.mxu0 %v304_v17 }
  0xe2   :  { %v282_v18 = vpop.f32.mrf.mxu0 }
  0xe4   :  { %v283_v19 = vpop.f32.mrf.mxu0 }
  0xe5   :  { %v284_v20 = vadd.f32 %v283_v19, %v282_v18 }
  0xe6   :  { %v285_v22 = vpop.f32.mrf.mxu0 }
  0xe7   :  { %v220_v24 = vadd.f32 %v284_v20, %v256_v21 }
  0xe8   :  { %v286_v23 = vpop.f32.mrf.mxu0 }
  0xe9   :  { %v287_v25 = vadd.f32 %v286_v23, %v285_v22  ;;  %v222_v27 = vmax.f32 %v220_v24, 0.0 }
  0xeb   :  { %v221_v26 = vadd.f32 %v287_v25, %v256_v21 }
  0xed   :  { %v223_v28 = vmax.f32 %v221_v26, 0.0 }
  0xef   :  { %v264_v29 = vpack.c.bf16 %v223_v28, %v222_v27 }
  0xf1   :  { %265 = vst [vmem:[%s390_s3] sm:$0xff] %v264_v29  }

// kernel: _lambda_.33
= control target key start
LH: loop header
LB: loop body
LE: loop exit
PB: predicated region body
PF: predicated region fallthrough
CT: control target
= control target key end

     0   :  { %v227_v0 = vmov 0.0   ;;  %vm228_vm0 = vmmov 0   ;;  %s282_s1 = inlined_call_operand.vmem [shape: bf16[128,128], index: 1, kind: input, shape index: {}]   ;;  %s283_s0 = inlined_call_operand.vmem [shape: bf16[16,128], index: 0, kind: input, shape index: {}]   ;;  %s284_s2 = inlined_call_operand.vmem [shape: f32[1,128], index: 2, kind: input, shape index: {}]   ;;  %s285_s3 = inlined_call_operand.vmem [shape: bf16[16,128], index: 3, kind: output, shape index: {}]  }
   0x1   :  { %196 = vmatprep.subr.bf16.mxu0 %v227_v0  ;;  %v218_v1 = vld [vmem:[%s282_s1 + $0x38] sm:$0xff]   ;;  %212 = vmatprep.mubr.msk.bf16.mxu0 %vm228_vm0, %v227_v0  ;;  %v219_v2 = vld [vmem:[%s282_s1 + $0x30] sm:$0xff]   ;;  %v220_v3 = vld [vmem:[%s282_s1 + $0x28] sm:$0xff]  }
   0x2   :  { %197 = vmatpush3.bf16.msra.mxu0 %v218_v1  ;;  %v221_v4 = vld [vmem:[%s282_s1 + $0x20] sm:$0xff]   ;;  %v222_v5 = vld [vmem:[%s282_s1 + $0x18] sm:$0xff]   ;;  %v223_v6 = vld [vmem:[%s282_s1 + $0x10] sm:$0xff]  }
   0x3   :  { %198 = vmatprep.subr.bf16.mxu0 %v227_v0  ;;  %v224_v7 = vld [vmem:[%s282_s1 + $0x8] sm:$0xff]   ;;  %v225_v8 = vld [vmem:[%s282_s1] sm:$0xff]  }
   0x4   :  { %v226_v9 = vld [vmem:[%s283_s0] sm:$0xff]  }
   0x5   :  { %v177_v11 = vld [vmem:[%s284_s2] ss:$0 sm:$0xff] }
   0x6   :  { %199 = vmatpush3.bf16.msra.mxu0 %v219_v2 }
   0x7   :  { %200 = vmatprep.subr.bf16.mxu0 %v227_v0 }
   0xa   :  { %201 = vmatpush3.bf16.msra.mxu0 %v220_v3 }
   0xb   :  { %202 = vmatprep.subr.bf16.mxu0 %v227_v0 }
   0xe   :  { %203 = vmatpush3.bf16.msra.mxu0 %v221_v4 }
   0xf   :  { %204 = vmatprep.subr.bf16.mxu0 %v227_v0 }
  0x12   :  { %205 = vmatpush3.bf16.msra.mxu0 %v222_v5 }
  0x13   :  { %206 = vmatprep.subr.bf16.mxu0 %v227_v0 }
  0x16   :  { %207 = vmatpush3.bf16.msra.mxu0 %v223_v6 }
  0x17   :  { %208 = vmatprep.subr.bf16.mxu0 %v227_v0 }
  0x1a   :  { %209 = vmatpush3.bf16.msra.mxu0 %v224_v7 }
  0x1b   :  { %210 = vmatprep.subr.bf16.mxu0 %v227_v0 }
  0x1e   :  { %211 = vmatpush3.bf16.msra.mxu0 %v225_v8 }
  0x21   :  { %213 = vmatmul.mubr.bf16.vlgmr.msra.gmra.mxu0 %v226_v9 }
  0xe1   :  { %v129_v10 = vpop.f32.mrf.mxu0 }
  0xe2   :  { %v152_v14 = vadd.f32 %v177_v11, %v129_v10 }
  0xe3   :  { %v214_v12 = vpop.f32.mrf.mxu0 }
  0xe5   :  { %v132_v13 = vpop.f32.mrf.mxu0 }
  0xe6   :  { %v153_v15 = vadd.f32 %v177_v11, %v132_v13 }
  0xe7   :  { %v215_v16 = vpop.f32.mrf.mxu0 }
  0xe8   :  { %v185_v17 = vpack.c.bf16 %v153_v15, %v152_v14 }
  0xea   :  { %186 = vst [vmem:[%s285_s3] sm:$0xff] %v185_v17  }

// kernel: _lambda_.34
= control target key start
LH: loop header
LB: loop body
LE: loop exit
PB: predicated region body
PF: predicated region fallthrough
CT: control target
= control target key end

     0   :  { %v482_v0 = vmov 0.0   ;;  %vm483_vm0 = vmmov 0   ;;  %s599_s1 = inlined_call_operand.vmem [shape: bf16[384,128], index: 1, kind: input, shape index: {}]   ;;  %s600_s0 = inlined_call_operand.vmem [shape: bf16[16,384], index: 0, kind: input, shape index: {}]   ;;  %s601_s2 = inlined_call_operand.vmem [shape: f32[1,128], index: 2, kind: input, shape index: {}]   ;;  %s602_s3 = inlined_call_operand.vmem [shape: bf16[16,128], index: 3, kind: input, shape index: {}]   ;;  %s603_s4 = inlined_call_operand.vmem [shape: bf16[16,128], index: 4, kind: output, shape index: {}]  }
   0x1   :  { %432 = vmatprep.subr.bf16.mxu1 %v482_v0  ;;  %v454_v1 = vld [vmem:[%s599_s1 + $0x78] sm:$0xff]   ;;  %448 = vmatprep.mubr.msk.bf16.mxu1 %vm483_vm0, %v482_v0  ;;  %v457_v4 = vld [vmem:[%s599_s1 + $0x70] sm:$0xff]   ;;  %v460_v7 = vld [vmem:[%s599_s1 + $0x68] sm:$0xff]  }
   0x2   :  { %v455_v2 = vld [vmem:[%s599_s1 + $0xb8] sm:$0xff]   ;;  %401 = vmatprep.subr.bf16.mxu0 %v454_v1  ;;  %v458_v5 = vld [vmem:[%s599_s1 + $0xb0] sm:$0xff]   ;;  %v461_v8 = vld [vmem:[%s599_s1 + $0xa8] sm:$0xff]  }
   0x3   :  { %v456_v3 = vld [vmem:[%s599_s1 + $0x38] sm:$0xff]   ;;  %433 = vmatpush3.bf16.msra.mxu1 %v455_v2  ;;  %v459_v6 = vld [vmem:[%s599_s1 + $0x30] sm:$0xff]   ;;  %v462_v9 = vld [vmem:[%s599_s1 + $0x28] sm:$0xff]  }
   0x4   :  { %402 = vmatpush3.bf16.msra.mxu0 %v456_v3  ;;  %434 = vmatprep.subr.bf16.mxu1 %v482_v0  ;;  %v463_v10 = vld [vmem:[%s599_s1 + $0x60] sm:$0xff]   ;;  %v466_v13 = vld [vmem:[%s599_s1 + $0x58] sm:$0xff]   ;;  %v469_v16 = vld [vmem:[%s599_s1 + $0x50] sm:$0xff]  }
   0x5   :  { %403 = vmatprep.subr.bf16.mxu0 %v457_v4  ;;  %v464_v11 = vld [vmem:[%s599_s1 + $0xa0] sm:$0xff]   ;;  %v467_v14 = vld [vmem:[%s599_s1 + $0x98] sm:$0xff]   ;;  %v470_v17 = vld [vmem:[%s599_s1 + $0x90] sm:$0xff]  }
   0x6   :  { %v465_v12 = vld [vmem:[%s599_s1 + $0x20] sm:$0xff]   ;;  %v468_v15 = vld [vmem:[%s599_s1 + $0x18] sm:$0xff]   ;;  %v471_v18 = vld [vmem:[%s599_s1 + $0x10] sm:$0xff]  }
   0x7   :  { %435 = vmatpush3.bf16.msra.mxu1 %v458_v5  ;;  %v472_v19 = vld [vmem:[%s599_s1 + $0x48] sm:$0xff]   ;;  %v475_v22 = vld [vmem:[%s599_s1 + $0x40] sm:$0xff]  }
   0x8   :  { %404 = vmatpush3.bf16.msra.mxu0 %v459_v6  ;;  %436 = vmatprep.subr.bf16.mxu1 %v482_v0  ;;  %v473_v20 = vld [vmem:[%s599_s1 + $0x88] sm:$0xff]   ;;  %v480_v23 = vld [vmem:[%s600_s0 + $0x4] ss:$12 sps:$4 sm:$0xff]   ;;  %v387_v34 = vld [vmem:[%s601_s2] ss:$0 sm:$0xff] }
   0x9   :  { %405 = vmatprep.subr.bf16.mxu0 %v460_v7  ;;  %v474_v21 = vld [vmem:[%s599_s1 + $0x8] sm:$0xff]   ;;  %v476_v24 = vld [vmem:[%s599_s1 + $0x80] sm:$0xff]   ;;  %270 = vmatprep.mubr.bf16.mxu0 %v480_v23 }
   0xa   :  { %v477_v25 = vld [vmem:[%s599_s1] sm:$0xff]   ;;  %v481_v26 = vld [vmem:[%s600_s0 + $0x8] ss:$12 sps:$4 sm:$0xff]  }
   0xb   :  { %437 = vmatpush3.bf16.msra.mxu1 %v461_v8  ;;  %v478_v27 = vld [vmem:[%s600_s0] ss:$12 sps:$4 sm:$0xff]  }
   0xc   :  { %406 = vmatpush3.bf16.msra.mxu0 %v462_v9  ;;  %438 = vmatprep.subr.bf16.mxu1 %v482_v0  ;;  %v393_v35 = vld [vmem:[%s602_s3] sm:$0xff]  }
   0xd   :  { %407 = vmatprep.subr.bf16.mxu0 %v463_v10  ;;  %v394_v41 = vunpack.c.l.bf16 %v393_v35  ;;  %v395_v44 = vunpack.c.h.bf16 %v393_v35 }
   0xf   :  { %439 = vmatpush3.bf16.msra.mxu1 %v464_v11 }
  0x10   :  { %408 = vmatpush3.bf16.msra.mxu0 %v465_v12  ;;  %440 = vmatprep.subr.bf16.mxu1 %v482_v0 }
  0x11   :  { %409 = vmatprep.subr.bf16.mxu0 %v466_v13 }
  0x13   :  { %441 = vmatpush3.bf16.msra.mxu1 %v467_v14 }
  0x14   :  { %410 = vmatpush3.bf16.msra.mxu0 %v468_v15  ;;  %442 = vmatprep.subr.bf16.mxu1 %v482_v0 }
  0x15   :  { %411 = vmatprep.subr.bf16.mxu0 %v469_v16 }
  0x17   :  { %443 = vmatpush3.bf16.msra.mxu1 %v470_v17 }
  0x18   :  { %412 = vmatpush3.bf16.msra.mxu0 %v471_v18  ;;  %444 = vmatprep.subr.bf16.mxu1 %v482_v0 }
  0x19   :  { %413 = vmatprep.subr.bf16.mxu0 %v472_v19 }
  0x1b   :  { %445 = vmatpush3.bf16.msra.mxu1 %v473_v20 }
  0x1c   :  { %414 = vmatpush3.bf16.msra.mxu0 %v474_v21  ;;  %446 = vmatprep.subr.bf16.mxu1 %v482_v0 }
  0x1d   :  { %415 = vmatprep.subr.bf16.mxu0 %v475_v22 }
  0x1f   :  { %447 = vmatpush3.bf16.msra.mxu1 %v476_v24 }
  0x20   :  { %416 = vmatpush3.bf16.msra.mxu0 %v477_v25 }
  0x22   :  { %449 = vmatmul.mubr.bf16.vlgmr.msra.gmra.mxu1 %v481_v26 }
  0x23   :  { %271 = vmatmul.mubr.bf16.vlgmr.msra.gmra.mxu0 %v478_v27 }
  0xe2   :  { %v313_v28 = vpop.f32.mrf.mxu1 }
  0xe3   :  { %v417_v29 = vpop.f32.mrf.mxu0 }
  0xe4   :  { %v450_v30 = vpop.f32.mrf.mxu1 }
  0xe5   :  { %v418_v31 = vpop.f32.mrf.mxu0 }
  0xe6   :  { %v419_v32 = vadd.f32 %v418_v31, %v417_v29  ;;  %v316_v33 = vpop.f32.mrf.mxu1 }
  0xe7   :  { %v420_v36 = vpop.f32.mrf.mxu0 }
  0xe8   :  { %v314_v37 = vadd.f32 %v419_v32, %v313_v28  ;;  %v451_v38 = vpop.f32.mrf.mxu1 }
  0xe9   :  { %v421_v39 = vpop.f32.mrf.mxu0 }
  0xea   :  { %v336_v40 = vadd.f32 %v387_v34, %v314_v37  ;;  %v422_v42 = vadd.f32 %v421_v39, %v420_v36 }
  0xec   :  { %v317_v43 = vadd.f32 %v422_v42, %v316_v33  ;;  %v342_v45 = vadd.f32 %v394_v41, %v336_v40 }
  0xee   :  { %v337_v46 = vadd.f32 %v387_v34, %v317_v43  ;;  %v344_v48 = vmax.f32 %v342_v45, 0.0 }
  0xf0   :  { %v343_v47 = vadd.f32 %v395_v44, %v337_v46 }
  0xf2   :  { %v345_v49 = vmax.f32 %v343_v47, 0.0 }
  0xf4   :  { %v399_v50 = vpack.c.bf16 %v345_v49, %v344_v48 }
  0xf6   :  { %400 = vst [vmem:[%s603_s4] sm:$0xff] %v399_v50  }

// kernel: _lambda_.35
= control target key start
LH: loop header
LB: loop body
LE: loop exit
PB: predicated region body
PF: predicated region fallthrough
CT: control target
= control target key end

     0   :  { %v469_v0 = vmov 0.0   ;;  %vm470_vm0 = vmmov 0   ;;  %s578_s1 = inlined_call_operand.vmem [shape: bf16[384,128], index: 1, kind: input, shape index: {}]   ;;  %s579_s0 = inlined_call_operand.vmem [shape: bf16[16,384], index: 0, kind: input, shape index: {}]   ;;  %s580_s2 = inlined_call_operand.vmem [shape: f32[1,128], index: 2, kind: input, shape index: {}]   ;;  %s581_s3 = inlined_call_operand.vmem [shape: bf16[16,128], index: 3, kind: output, shape index: {}]  }
   0x1   :  { %419 = vmatprep.subr.bf16.mxu1 %v469_v0  ;;  %v441_v1 = vld [vmem:[%s578_s1 + $0x78] sm:$0xff]   ;;  %435 = vmatprep.mubr.msk.bf16.mxu1 %vm470_vm0, %v469_v0  ;;  %v444_v4 = vld [vmem:[%s578_s1 + $0x70] sm:$0xff]   ;;  %v447_v7 = vld [vmem:[%s578_s1 + $0x68] sm:$0xff]  }
   0x2   :  { %v442_v2 = vld [vmem:[%s578_s1 + $0xb8] sm:$0xff]   ;;  %388 = vmatprep.subr.bf16.mxu0 %v441_v1  ;;  %v445_v5 = vld [vmem:[%s578_s1 + $0xb0] sm:$0xff]   ;;  %v448_v8 = vld [vmem:[%s578_s1 + $0xa8] sm:$0xff]  }
   0x3   :  { %v443_v3 = vld [vmem:[%s578_s1 + $0x38] sm:$0xff]   ;;  %420 = vmatpush3.bf16.msra.mxu1 %v442_v2  ;;  %v446_v6 = vld [vmem:[%s578_s1 + $0x30] sm:$0xff]   ;;  %v449_v9 = vld [vmem:[%s578_s1 + $0x28] sm:$0xff]  }
   0x4   :  { %389 = vmatpush3.bf16.msra.mxu0 %v443_v3  ;;  %421 = vmatprep.subr.bf16.mxu1 %v469_v0  ;;  %v450_v10 = vld [vmem:[%s578_s1 + $0x60] sm:$0xff]   ;;  %v453_v13 = vld [vmem:[%s578_s1 + $0x58] sm:$0xff]   ;;  %v456_v16 = vld [vmem:[%s578_s1 + $0x50] sm:$0xff]  }
   0x5   :  { %390 = vmatprep.subr.bf16.mxu0 %v444_v4  ;;  %v451_v11 = vld [vmem:[%s578_s1 + $0xa0] sm:$0xff]   ;;  %v454_v14 = vld [vmem:[%s578_s1 + $0x98] sm:$0xff]   ;;  %v457_v17 = vld [vmem:[%s578_s1 + $0x90] sm:$0xff]  }
   0x6   :  { %v452_v12 = vld [vmem:[%s578_s1 + $0x20] sm:$0xff]   ;;  %v455_v15 = vld [vmem:[%s578_s1 + $0x18] sm:$0xff]   ;;  %v458_v18 = vld [vmem:[%s578_s1 + $0x10] sm:$0xff]  }
   0x7   :  { %422 = vmatpush3.bf16.msra.mxu1 %v445_v5  ;;  %v459_v19 = vld [vmem:[%s578_s1 + $0x48] sm:$0xff]   ;;  %v462_v22 = vld [vmem:[%s578_s1 + $0x40] sm:$0xff]  }
   0x8   :  { %391 = vmatpush3.bf16.msra.mxu0 %v446_v6  ;;  %423 = vmatprep.subr.bf16.mxu1 %v469_v0  ;;  %v460_v20 = vld [vmem:[%s578_s1 + $0x88] sm:$0xff]   ;;  %v467_v23 = vld [vmem:[%s579_s0 + $0x4] ss:$12 sps:$4 sm:$0xff]   ;;  %v378_v37 = vld [vmem:[%s580_s2] ss:$0 sm:$0xff] }
   0x9   :  { %392 = vmatprep.subr.bf16.mxu0 %v447_v7  ;;  %v461_v21 = vld [vmem:[%s578_s1 + $0x8] sm:$0xff]   ;;  %v463_v24 = vld [vmem:[%s578_s1 + $0x80] sm:$0xff]   ;;  %267 = vmatprep.mubr.bf16.mxu0 %v467_v23 }
   0xa   :  { %v464_v25 = vld [vmem:[%s578_s1] sm:$0xff]   ;;  %v468_v26 = vld [vmem:[%s579_s0 + $0x8] ss:$12 sps:$4 sm:$0xff]  }
   0xb   :  { %424 = vmatpush3.bf16.msra.mxu1 %v448_v8  ;;  %v465_v27 = vld [vmem:[%s579_s0] ss:$12 sps:$4 sm:$0xff]  }
   0xc   :  { %393 = vmatpush3.bf16.msra.mxu0 %v449_v9  ;;  %425 = vmatprep.subr.bf16.mxu1 %v469_v0 }
   0xd   :  { %394 = vmatprep.subr.bf16.mxu0 %v450_v10 }
   0xf   :  { %426 = vmatpush3.bf16.msra.mxu1 %v451_v11 }
  0x10   :  { %395 = vmatpush3.bf16.msra.mxu0 %v452_v12  ;;  %427 = vmatprep.subr.bf16.mxu1 %v469_v0 }
  0x11   :  { %396 = vmatprep.subr.bf16.mxu0 %v453_v13 }
  0x13   :  { %428 = vmatpush3.bf16.msra.mxu1 %v454_v14 }
  0x14   :  { %397 = vmatpush3.bf16.msra.mxu0 %v455_v15  ;;  %429 = vmatprep.subr.bf16.mxu1 %v469_v0 }
  0x15   :  { %398 = vmatprep.subr.bf16.mxu0 %v456_v16 }
  0x17   :  { %430 = vmatpush3.bf16.msra.mxu1 %v457_v17 }
  0x18   :  { %399 = vmatpush3.bf16.msra.mxu0 %v458_v18  ;;  %431 = vmatprep.subr.bf16.mxu1 %v469_v0 }
  0x19   :  { %400 = vmatprep.subr.bf16.mxu0 %v459_v19 }
  0x1b   :  { %432 = vmatpush3.bf16.msra.mxu1 %v460_v20 }
  0x1c   :  { %401 = vmatpush3.bf16.msra.mxu0 %v461_v21  ;;  %433 = vmatprep.subr.bf16.mxu1 %v469_v0 }
  0x1d   :  { %402 = vmatprep.subr.bf16.mxu0 %v462_v22 }
  0x1f   :  { %434 = vmatpush3.bf16.msra.mxu1 %v463_v24 }
  0x20   :  { %403 = vmatpush3.bf16.msra.mxu0 %v464_v25 }
  0x22   :  { %436 = vmatmul.mubr.bf16.vlgmr.msra.gmra.mxu1 %v468_v26 }
  0x23   :  { %268 = vmatmul.mubr.bf16.vlgmr.msra.gmra.mxu0 %v465_v27 }
  0xe2   :  { %v310_v28 = vpop.f32.mrf.mxu1 }
  0xe3   :  { %v404_v29 = vpop.f32.mrf.mxu0 }
  0xe4   :  { %v437_v30 = vpop.f32.mrf.mxu1 }
  0xe5   :  { %v405_v31 = vpop.f32.mrf.mxu0 }
  0xe6   :  { %v406_v32 = vadd.f32 %v405_v31, %v404_v29  ;;  %v313_v33 = vpop.f32.mrf.mxu1 }
  0xe7   :  { %v407_v34 = vpop.f32.mrf.mxu0 }
  0xe8   :  { %v311_v35 = vadd.f32 %v406_v32, %v310_v28  ;;  %v438_v36 = vpop.f32.mrf.mxu1 }
  0xe9   :  { %v408_v38 = vpop.f32.mrf.mxu0 }
  0xea   :  { %v409_v39 = vadd.f32 %v408_v38, %v407_v34  ;;  %v333_v40 = vadd.f32 %v378_v37, %v311_v35 }
  0xec   :  { %v314_v41 = vadd.f32 %v409_v39, %v313_v33  ;;  %v335_v43 = vmax.f32 %v333_v40, 0.0 }
  0xee   :  { %v334_v42 = vadd.f32 %v378_v37, %v314_v41 }
  0xf0   :  { %v336_v44 = vmax.f32 %v334_v42, 0.0 }
  0xf2   :  { %v386_v45 = vpack.c.bf16 %v336_v44, %v335_v43 }
  0xf4   :  { %387 = vst [vmem:[%s581_s3] sm:$0xff] %v386_v45  }

// kernel: _lambda_.40
= control target key start
LH: loop header
LB: loop body
LE: loop exit
PB: predicated region body
PF: predicated region fallthrough
CT: control target
= control target key end

     0   :  { %v709_v34 = vmov 0.0   ;;  %vm710_vm0 = vmmov 0   ;;  %s872_s1 = inlined_call_operand.vmem [shape: bf16[640,128], index: 1, kind: input, shape index: {}]   ;;  %s873_s0 = inlined_call_operand.vmem [shape: bf16[16,640], index: 0, kind: input, shape index: {}]   ;;  %s874_s2 = inlined_call_operand.vmem [shape: f32[1,128], index: 2, kind: input, shape index: {}]   ;;  %s875_s3 = inlined_call_operand.vmem [shape: bf16[16,128], index: 3, kind: output, shape index: {}]  }
   0x1   :  { %v662_v0 = vld [vmem:[%s872_s1 + $0x78] sm:$0xff]   ;;  %v666_v4 = vld [vmem:[%s872_s1 + $0x70] sm:$0xff]   ;;  %v670_v8 = vld [vmem:[%s872_s1 + $0x68] sm:$0xff]  }
   0x2   :  { %v663_v1 = vld [vmem:[%s872_s1 + $0xf8] sm:$0xff]   ;;  %587 = vmatprep.subr.bf16.mxu0 %v662_v0  ;;  %v667_v5 = vld [vmem:[%s872_s1 + $0xf0] sm:$0xff]   ;;  %v671_v9 = vld [vmem:[%s872_s1 + $0xe8] sm:$0xff]  }
   0x3   :  { %v664_v2 = vld [vmem:[%s872_s1 + $0x38] sm:$0xff]   ;;  %609 = vmatprep.subr.bf16.mxu1 %v663_v1  ;;  %v668_v6 = vld [vmem:[%s872_s1 + $0x30] sm:$0xff]   ;;  %v672_v10 = vld [vmem:[%s872_s1 + $0x28] sm:$0xff]  }
   0x4   :  { %v665_v3 = vld [vmem:[%s872_s1 + $0xb8] sm:$0xff]   ;;  %588 = vmatpush3.bf16.msra.mxu0 %v664_v2  ;;  %v669_v7 = vld [vmem:[%s872_s1 + $0xb0] sm:$0xff]   ;;  %v673_v11 = vld [vmem:[%s872_s1 + $0xa8] sm:$0xff]  }
   0x5   :  { %610 = vmatpush3.bf16.msra.mxu1 %v665_v3  ;;  %589 = vmatprep.subr.bf16.mxu0 %v666_v4  ;;  %v674_v12 = vld [vmem:[%s872_s1 + $0x60] sm:$0xff]   ;;  %v678_v16 = vld [vmem:[%s872_s1 + $0x58] sm:$0xff]   ;;  %v682_v20 = vld [vmem:[%s872_s1 + $0x50] sm:$0xff]  }
   0x6   :  { %611 = vmatprep.subr.bf16.mxu1 %v667_v5  ;;  %v675_v13 = vld [vmem:[%s872_s1 + $0xe0] sm:$0xff]   ;;  %v679_v17 = vld [vmem:[%s872_s1 + $0xd8] sm:$0xff]   ;;  %v683_v21 = vld [vmem:[%s872_s1 + $0xd0] sm:$0xff]  }
   0x7   :  { %v676_v14 = vld [vmem:[%s872_s1 + $0x20] sm:$0xff]   ;;  %v680_v18 = vld [vmem:[%s872_s1 + $0x18] sm:$0xff]   ;;  %v684_v22 = vld [vmem:[%s872_s1 + $0x10] sm:$0xff]  }
   0x8   :  { %590 = vmatpush3.bf16.msra.mxu0 %v668_v6  ;;  %v677_v15 = vld [vmem:[%s872_s1 + $0xa0] sm:$0xff]   ;;  %v681_v19 = vld [vmem:[%s872_s1 + $0x98] sm:$0xff]   ;;  %v685_v23 = vld [vmem:[%s872_s1 + $0x90] sm:$0xff]  }
   0x9   :  { %612 = vmatpush3.bf16.msra.mxu1 %v669_v7  ;;  %591 = vmatprep.subr.bf16.mxu0 %v670_v8  ;;  %v686_v24 = vld [vmem:[%s872_s1 + $0x48] sm:$0xff]   ;;  %v690_v28 = vld [vmem:[%s872_s1 + $0x40] sm:$0xff]   ;;  %v700_v37 = vld [vmem:[%s872_s1 + $0x138] sm:$0xff]  }
   0xa   :  { %613 = vmatprep.subr.bf16.mxu1 %v671_v9  ;;  %v687_v25 = vld [vmem:[%s872_s1 + $0xc8] sm:$0xff]   ;;  %v691_v29 = vld [vmem:[%s872_s1 + $0xc0] sm:$0xff]   ;;  %v701_v38 = vld [vmem:[%s872_s1 + $0x130] sm:$0xff]  }
   0xb   :  { %v688_v26 = vld [vmem:[%s872_s1 + $0x8] sm:$0xff]   ;;  %v692_v30 = vld [vmem:[%s872_s1] sm:$0xff]   ;;  %v704_v41 = vld [vmem:[%s872_s1 + $0x118] sm:$0xff]  }
   0xc   :  { %592 = vmatpush3.bf16.msra.mxu0 %v672_v10  ;;  %v689_v27 = vld [vmem:[%s872_s1 + $0x88] sm:$0xff]   ;;  %v693_v31 = vld [vmem:[%s872_s1 + $0x80] sm:$0xff]   ;;  %v705_v42 = vld [vmem:[%s872_s1 + $0x110] sm:$0xff]  }
   0xd   :  { %614 = vmatpush3.bf16.msra.mxu1 %v673_v11  ;;  %593 = vmatprep.subr.bf16.mxu0 %v674_v12  ;;  %v694_v32 = vld [vmem:[%s873_s0] ss:$20 sps:$4 sm:$0xff]   ;;  %v696_v33 = vld [vmem:[%s873_s0 + $0x4] ss:$20 sps:$4 sm:$0xff]   ;;  %v697_v35 = vld [vmem:[%s873_s0 + $0x8] ss:$20 sps:$4 sm:$0xff]  }
   0xe   :  { %615 = vmatprep.subr.bf16.mxu1 %v675_v13  ;;  %v699_v36 = vld [vmem:[%s873_s0 + $0xc] ss:$20 sps:$4 sm:$0xff]   ;;  %407 = vmatprep.mubr.bf16.mxu0 %v696_v33  ;;  %v708_v45 = vld [vmem:[%s873_s0 + $0x10] ss:$20 sps:$4 sm:$0xff]  }
   0xf   :  { %448 = vmatprep.mubr.bf16.mxu1 %v699_v36  ;;  %v702_v39 = vld [vmem:[%s872_s1 + $0x128] sm:$0xff]   ;;  %v703_v40 = vld [vmem:[%s872_s1 + $0x120] sm:$0xff]  }
  0x10   :  { %594 = vmatpush3.bf16.msra.mxu0 %v676_v14  ;;  %v706_v43 = vld [vmem:[%s872_s1 + $0x108] sm:$0xff]   ;;  %v707_v44 = vld [vmem:[%s872_s1 + $0x100] sm:$0xff]  }
  0x11   :  { %616 = vmatpush3.bf16.msra.mxu1 %v677_v15  ;;  %595 = vmatprep.subr.bf16.mxu0 %v678_v16  ;;  %v577_v61 = vld [vmem:[%s874_s2] ss:$0 sm:$0xff] }
  0x12   :  { %617 = vmatprep.subr.bf16.mxu1 %v679_v17 }
  0x14   :  { %596 = vmatpush3.bf16.msra.mxu0 %v680_v18 }
  0x15   :  { %618 = vmatpush3.bf16.msra.mxu1 %v681_v19  ;;  %597 = vmatprep.subr.bf16.mxu0 %v682_v20 }
  0x16   :  { %619 = vmatprep.subr.bf16.mxu1 %v683_v21 }
  0x18   :  { %598 = vmatpush3.bf16.msra.mxu0 %v684_v22 }
  0x19   :  { %620 = vmatpush3.bf16.msra.mxu1 %v685_v23  ;;  %599 = vmatprep.subr.bf16.mxu0 %v686_v24 }
  0x1a   :  { %621 = vmatprep.subr.bf16.mxu1 %v687_v25 }
  0x1c   :  { %600 = vmatpush3.bf16.msra.mxu0 %v688_v26 }
  0x1d   :  { %622 = vmatpush3.bf16.msra.mxu1 %v689_v27  ;;  %601 = vmatprep.subr.bf16.mxu0 %v690_v28 }
  0x1e   :  { %623 = vmatprep.subr.bf16.mxu1 %v691_v29 }
  0x20   :  { %602 = vmatpush3.bf16.msra.mxu0 %v692_v30 }
  0x21   :  { %624 = vmatpush3.bf16.msra.mxu1 %v693_v31  ;;  %640 = vmatprep.subr.bf16.mxu0 %v709_v34 }
  0x23   :  { %408 = vmatmul.mubr.bf16.vlgmr.msra.gmra.mxu0 %v694_v32 }
  0x24   :  { %449 = vmatmul.mubr.bf16.vlgmr.msra.gmra.mxu1 %v697_v35  ;;  %641 = vmatpush3.bf16.msra.mxu0 %v700_v37 }
  0x25   :  { %642 = vmatprep.subr.bf16.mxu0 %v709_v34  ;;  %656 = vmatprep.mubr.msk.bf16.mxu0 %vm710_vm0, %v709_v34 }
  0x28   :  { %643 = vmatpush3.bf16.msra.mxu0 %v701_v38 }
  0x29   :  { %644 = vmatprep.subr.bf16.mxu0 %v709_v34 }
  0x2c   :  { %645 = vmatpush3.bf16.msra.mxu0 %v702_v39 }
  0x2d   :  { %646 = vmatprep.subr.bf16.mxu0 %v709_v34 }
  0x30   :  { %647 = vmatpush3.bf16.msra.mxu0 %v703_v40 }
  0x31   :  { %648 = vmatprep.subr.bf16.mxu0 %v709_v34 }
  0x34   :  { %649 = vmatpush3.bf16.msra.mxu0 %v704_v41 }
  0x35   :  { %650 = vmatprep.subr.bf16.mxu0 %v709_v34 }
  0x38   :  { %651 = vmatpush3.bf16.msra.mxu0 %v705_v42 }
  0x39   :  { %652 = vmatprep.subr.bf16.mxu0 %v709_v34 }
  0x3c   :  { %653 = vmatpush3.bf16.msra.mxu0 %v706_v43 }
  0x3d   :  { %654 = vmatprep.subr.bf16.mxu0 %v709_v34 }
  0x40   :  { %655 = vmatpush3.bf16.msra.mxu0 %v707_v44 }
  0x43   :  { %657 = vmatmul.mubr.bf16.vlgmr.msra.gmra.mxu0 %v708_v45 }
  0xe3   :  { %v603_v46 = vpop.f32.mrf.mxu0 }
  0xe4   :  { %v625_v47 = vpop.f32.mrf.mxu1 }
  0xe5   :  { %v604_v48 = vpop.f32.mrf.mxu0 }
  0xe6   :  { %v626_v49 = vpop.f32.mrf.mxu1  ;;  %v605_v52 = vadd.f32 %v604_v48, %v603_v46 }
  0xe7   :  { %v606_v50 = vpop.f32.mrf.mxu0  ;;  %v627_v53 = vadd.f32 %v626_v49, %v625_v47 }
  0xe8   :  { %v628_v51 = vpop.f32.mrf.mxu1 }
  0xe9   :  { %v607_v54 = vpop.f32.mrf.mxu0  ;;  %v451_v58 = vadd.f32 %v627_v53, %v605_v52 }
  0xea   :  { %v629_v55 = vpop.f32.mrf.mxu1  ;;  %v608_v56 = vadd.f32 %v607_v54, %v606_v50 }
  0xeb   :  { %v630_v57 = vadd.f32 %v629_v55, %v628_v51 }
  0xed   :  { %v454_v63 = vadd.f32 %v630_v57, %v608_v56 }
 0x103   :  { %v491_v59 = vpop.f32.mrf.mxu0 }
 0x104   :  { %v492_v60 = vadd.f32 %v491_v59, %v451_v58 }
 0x105   :  { %v658_v62 = vpop.f32.mrf.mxu0 }
 0x106   :  { %v514_v1 = vadd.f32 %v577_v61, %v492_v60 }
 0x107   :  { %v494_v0 = vpop.f32.mrf.mxu0 }
 0x108   :  { %v495_v2 = vadd.f32 %v494_v0, %v454_v63  ;;  %v516_v5 = vmax.f32 %v514_v1, 0.0 }
 0x109   :  { %v659_v3 = vpop.f32.mrf.mxu0 }
 0x10a   :  { %v515_v4 = vadd.f32 %v577_v61, %v495_v2 }
 0x10c   :  { %v517_v6 = vmax.f32 %v515_v4, 0.0 }
 0x10e   :  { %v585_v7 = vpack.c.bf16 %v517_v6, %v516_v5 }
 0x110   :  { %586 = vst [vmem:[%s875_s3] sm:$0xff] %v585_v7  }

// kernel: _lambda_.39
= control target key start
LH: loop header
LB: loop body
LE: loop exit
PB: predicated region body
PF: predicated region fallthrough
CT: control target
= control target key end

     0   :  { %v722_v34 = vmov 0.0   ;;  %vm723_vm0 = vmmov 0   ;;  %s893_s1 = inlined_call_operand.vmem [shape: bf16[640,128], index: 1, kind: input, shape index: {}]   ;;  %s894_s0 = inlined_call_operand.vmem [shape: bf16[16,640], index: 0, kind: input, shape index: {}]   ;;  %s895_s2 = inlined_call_operand.vmem [shape: f32[1,128], index: 2, kind: input, shape index: {}]   ;;  %s896_s3 = inlined_call_operand.vmem [shape: bf16[16,128], index: 3, kind: input, shape index: {}]   ;;  %s897_s4 = inlined_call_operand.vmem [shape: bf16[16,128], index: 4, kind: output, shape index: {}]  }
   0x1   :  { %v675_v0 = vld [vmem:[%s893_s1 + $0x78] sm:$0xff]   ;;  %v679_v4 = vld [vmem:[%s893_s1 + $0x70] sm:$0xff]   ;;  %v683_v8 = vld [vmem:[%s893_s1 + $0x68] sm:$0xff]  }
   0x2   :  { %v676_v1 = vld [vmem:[%s893_s1 + $0xf8] sm:$0xff]   ;;  %600 = vmatprep.subr.bf16.mxu0 %v675_v0  ;;  %v680_v5 = vld [vmem:[%s893_s1 + $0xf0] sm:$0xff]   ;;  %v684_v9 = vld [vmem:[%s893_s1 + $0xe8] sm:$0xff]  }
   0x3   :  { %v677_v2 = vld [vmem:[%s893_s1 + $0x38] sm:$0xff]   ;;  %622 = vmatprep.subr.bf16.mxu1 %v676_v1  ;;  %v681_v6 = vld [vmem:[%s893_s1 + $0x30] sm:$0xff]   ;;  %v685_v10 = vld [vmem:[%s893_s1 + $0x28] sm:$0xff]  }
   0x4   :  { %v678_v3 = vld [vmem:[%s893_s1 + $0xb8] sm:$0xff]   ;;  %601 = vmatpush3.bf16.msra.mxu0 %v677_v2  ;;  %v682_v7 = vld [vmem:[%s893_s1 + $0xb0] sm:$0xff]   ;;  %v686_v11 = vld [vmem:[%s893_s1 + $0xa8] sm:$0xff]  }
   0x5   :  { %623 = vmatpush3.bf16.msra.mxu1 %v678_v3  ;;  %602 = vmatprep.subr.bf16.mxu0 %v679_v4  ;;  %v687_v12 = vld [vmem:[%s893_s1 + $0x60] sm:$0xff]   ;;  %v691_v16 = vld [vmem:[%s893_s1 + $0x58] sm:$0xff]   ;;  %v695_v20 = vld [vmem:[%s893_s1 + $0x50] sm:$0xff]  }
   0x6   :  { %624 = vmatprep.subr.bf16.mxu1 %v680_v5  ;;  %v688_v13 = vld [vmem:[%s893_s1 + $0xe0] sm:$0xff]   ;;  %v692_v17 = vld [vmem:[%s893_s1 + $0xd8] sm:$0xff]   ;;  %v696_v21 = vld [vmem:[%s893_s1 + $0xd0] sm:$0xff]  }
   0x7   :  { %v689_v14 = vld [vmem:[%s893_s1 + $0x20] sm:$0xff]   ;;  %v693_v18 = vld [vmem:[%s893_s1 + $0x18] sm:$0xff]   ;;  %v697_v22 = vld [vmem:[%s893_s1 + $0x10] sm:$0xff]  }
   0x8   :  { %603 = vmatpush3.bf16.msra.mxu0 %v681_v6  ;;  %v690_v15 = vld [vmem:[%s893_s1 + $0xa0] sm:$0xff]   ;;  %v694_v19 = vld [vmem:[%s893_s1 + $0x98] sm:$0xff]   ;;  %v698_v23 = vld [vmem:[%s893_s1 + $0x90] sm:$0xff]  }
   0x9   :  { %625 = vmatpush3.bf16.msra.mxu1 %v682_v7  ;;  %604 = vmatprep.subr.bf16.mxu0 %v683_v8  ;;  %v699_v24 = vld [vmem:[%s893_s1 + $0x48] sm:$0xff]   ;;  %v703_v28 = vld [vmem:[%s893_s1 + $0x40] sm:$0xff]   ;;  %v713_v37 = vld [vmem:[%s893_s1 + $0x138] sm:$0xff]  }
   0xa   :  { %626 = vmatprep.subr.bf16.mxu1 %v684_v9  ;;  %v700_v25 = vld [vmem:[%s893_s1 + $0xc8] sm:$0xff]   ;;  %v704_v29 = vld [vmem:[%s893_s1 + $0xc0] sm:$0xff]   ;;  %v714_v38 = vld [vmem:[%s893_s1 + $0x130] sm:$0xff]  }
   0xb   :  { %v701_v26 = vld [vmem:[%s893_s1 + $0x8] sm:$0xff]   ;;  %v705_v30 = vld [vmem:[%s893_s1] sm:$0xff]   ;;  %v717_v41 = vld [vmem:[%s893_s1 + $0x118] sm:$0xff]  }
   0xc   :  { %605 = vmatpush3.bf16.msra.mxu0 %v685_v10  ;;  %v702_v27 = vld [vmem:[%s893_s1 + $0x88] sm:$0xff]   ;;  %v706_v31 = vld [vmem:[%s893_s1 + $0x80] sm:$0xff]   ;;  %v718_v42 = vld [vmem:[%s893_s1 + $0x110] sm:$0xff]  }
   0xd   :  { %627 = vmatpush3.bf16.msra.mxu1 %v686_v11  ;;  %606 = vmatprep.subr.bf16.mxu0 %v687_v12  ;;  %v707_v32 = vld [vmem:[%s894_s0] ss:$20 sps:$4 sm:$0xff]   ;;  %v709_v33 = vld [vmem:[%s894_s0 + $0x4] ss:$20 sps:$4 sm:$0xff]   ;;  %v710_v35 = vld [vmem:[%s894_s0 + $0x8] ss:$20 sps:$4 sm:$0xff]  }
   0xe   :  { %628 = vmatprep.subr.bf16.mxu1 %v688_v13  ;;  %v712_v36 = vld [vmem:[%s894_s0 + $0xc] ss:$20 sps:$4 sm:$0xff]   ;;  %410 = vmatprep.mubr.bf16.mxu0 %v709_v33  ;;  %v721_v45 = vld [vmem:[%s894_s0 + $0x10] ss:$20 sps:$4 sm:$0xff]  }
   0xf   :  { %451 = vmatprep.mubr.bf16.mxu1 %v712_v36  ;;  %v715_v39 = vld [vmem:[%s893_s1 + $0x128] sm:$0xff]   ;;  %v716_v40 = vld [vmem:[%s893_s1 + $0x120] sm:$0xff]  }
  0x10   :  { %607 = vmatpush3.bf16.msra.mxu0 %v689_v14  ;;  %v719_v43 = vld [vmem:[%s893_s1 + $0x108] sm:$0xff]   ;;  %v720_v44 = vld [vmem:[%s893_s1 + $0x100] sm:$0xff]  }
  0x11   :  { %629 = vmatpush3.bf16.msra.mxu1 %v690_v15  ;;  %608 = vmatprep.subr.bf16.mxu0 %v691_v16  ;;  %v586_v60 = vld [vmem:[%s895_s2] ss:$0 sm:$0xff] }
  0x12   :  { %630 = vmatprep.subr.bf16.mxu1 %v692_v17  ;;  %v592_v61 = vld [vmem:[%s896_s3] sm:$0xff]  }
  0x13   :  { %v593_v1 = vunpack.c.l.bf16 %v592_v61  ;;  %v594_v5 = vunpack.c.h.bf16 %v592_v61 }
  0x14   :  { %609 = vmatpush3.bf16.msra.mxu0 %v693_v18 }
  0x15   :  { %631 = vmatpush3.bf16.msra.mxu1 %v694_v19  ;;  %610 = vmatprep.subr.bf16.mxu0 %v695_v20 }
  0x16   :  { %632 = vmatprep.subr.bf16.mxu1 %v696_v21 }
  0x18   :  { %611 = vmatpush3.bf16.msra.mxu0 %v697_v22 }
  0x19   :  { %633 = vmatpush3.bf16.msra.mxu1 %v698_v23  ;;  %612 = vmatprep.subr.bf16.mxu0 %v699_v24 }
  0x1a   :  { %634 = vmatprep.subr.bf16.mxu1 %v700_v25 }
  0x1c   :  { %613 = vmatpush3.bf16.msra.mxu0 %v701_v26 }
  0x1d   :  { %635 = vmatpush3.bf16.msra.mxu1 %v702_v27  ;;  %614 = vmatprep.subr.bf16.mxu0 %v703_v28 }
  0x1e   :  { %636 = vmatprep.subr.bf16.mxu1 %v704_v29 }
  0x20   :  { %615 = vmatpush3.bf16.msra.mxu0 %v705_v30 }
  0x21   :  { %637 = vmatpush3.bf16.msra.mxu1 %v706_v31  ;;  %653 = vmatprep.subr.bf16.mxu0 %v722_v34 }
  0x23   :  { %411 = vmatmul.mubr.bf16.vlgmr.msra.gmra.mxu0 %v707_v32 }
  0x24   :  { %452 = vmatmul.mubr.bf16.vlgmr.msra.gmra.mxu1 %v710_v35  ;;  %654 = vmatpush3.bf16.msra.mxu0 %v713_v37 }
  0x25   :  { %655 = vmatprep.subr.bf16.mxu0 %v722_v34  ;;  %669 = vmatprep.mubr.msk.bf16.mxu0 %vm723_vm0, %v722_v34 }
  0x28   :  { %656 = vmatpush3.bf16.msra.mxu0 %v714_v38 }
  0x29   :  { %657 = vmatprep.subr.bf16.mxu0 %v722_v34 }
  0x2c   :  { %658 = vmatpush3.bf16.msra.mxu0 %v715_v39 }
  0x2d   :  { %659 = vmatprep.subr.bf16.mxu0 %v722_v34 }
  0x30   :  { %660 = vmatpush3.bf16.msra.mxu0 %v716_v40 }
  0x31   :  { %661 = vmatprep.subr.bf16.mxu0 %v722_v34 }
  0x34   :  { %662 = vmatpush3.bf16.msra.mxu0 %v717_v41 }
  0x35   :  { %663 = vmatprep.subr.bf16.mxu0 %v722_v34 }
  0x38   :  { %664 = vmatpush3.bf16.msra.mxu0 %v718_v42 }
  0x39   :  { %665 = vmatprep.subr.bf16.mxu0 %v722_v34 }
  0x3c   :  { %666 = vmatpush3.bf16.msra.mxu0 %v719_v43 }
  0x3d   :  { %667 = vmatprep.subr.bf16.mxu0 %v722_v34 }
  0x40   :  { %668 = vmatpush3.bf16.msra.mxu0 %v720_v44 }
  0x43   :  { %670 = vmatmul.mubr.bf16.vlgmr.msra.gmra.mxu0 %v721_v45 }
  0xe3   :  { %v616_v46 = vpop.f32.mrf.mxu0 }
  0xe4   :  { %v638_v47 = vpop.f32.mrf.mxu1 }
  0xe5   :  { %v617_v48 = vpop.f32.mrf.mxu0 }
  0xe6   :  { %v639_v49 = vpop.f32.mrf.mxu1  ;;  %v618_v52 = vadd.f32 %v617_v48, %v616_v46 }
  0xe7   :  { %v619_v50 = vpop.f32.mrf.mxu0  ;;  %v640_v53 = vadd.f32 %v639_v49, %v638_v47 }
  0xe8   :  { %v641_v51 = vpop.f32.mrf.mxu1 }
  0xe9   :  { %v620_v54 = vpop.f32.mrf.mxu0  ;;  %v454_v58 = vadd.f32 %v640_v53, %v618_v52 }
  0xea   :  { %v642_v55 = vpop.f32.mrf.mxu1  ;;  %v621_v56 = vadd.f32 %v620_v54, %v619_v50 }
  0xeb   :  { %v643_v57 = vadd.f32 %v642_v55, %v641_v51 }
  0xed   :  { %v457_v2 = vadd.f32 %v643_v57, %v621_v56 }
 0x103   :  { %v494_v59 = vpop.f32.mrf.mxu0 }
 0x104   :  { %v495_v62 = vadd.f32 %v494_v59, %v454_v58 }
 0x105   :  { %v671_v63 = vpop.f32.mrf.mxu0 }
 0x106   :  { %v517_v0 = vadd.f32 %v586_v60, %v495_v62 }
 0x107   :  { %v497_v3 = vpop.f32.mrf.mxu0 }
 0x108   :  { %v498_v4 = vadd.f32 %v497_v3, %v457_v2  ;;  %v523_v7 = vadd.f32 %v593_v1, %v517_v0 }
 0x109   :  { %v672_v6 = vpop.f32.mrf.mxu0 }
 0x10a   :  { %v518_v8 = vadd.f32 %v586_v60, %v498_v4  ;;  %v525_v10 = vmax.f32 %v523_v7, 0.0 }
 0x10c   :  { %v524_v9 = vadd.f32 %v594_v5, %v518_v8 }
 0x10e   :  { %v526_v11 = vmax.f32 %v524_v9, 0.0 }
 0x110   :  { %v598_v12 = vpack.c.bf16 %v526_v11, %v525_v10 }
 0x112   :  { %599 = vst [vmem:[%s897_s4] sm:$0xff] %v598_v12  }

</bundles_post_ra>
